<compile_context>
chip_gen: v6e
topology: v6e:2x2x1
jax: 0.10.0
libtpu: 0.0.40
codegen_flags: <defaults>
</compile_context>

<pallas_src>
import jax
import jax.numpy as jnp
from jax.experimental import pallas as pl
from jax.experimental.pallas import tpu as pltpu

P_BASE = 0.1
P_LIST = (0.1, 0.2, 0.3, 0.4, 0.5)          # the 5 multisample dropout rates
# Per-sample inverted-dropout scale with the shared base-dropout scale
# 1/(1-P_BASE) and the 1/len(P_LIST) mean pre-folded in (saves 2 muls/elem).
SAMPLE_SCALE = tuple(
    1.0 / ((1.0 - P_BASE) * (1.0 - p) * len(P_LIST)) for p in P_LIST
)


def _u32(v):
    return jnp.uint32(v & 0xFFFFFFFF)


def _keep_threshold(p):
    """uint32 threshold t such that P(bits >= t) = 1 - p for uniform bits."""
    return _u32(min(int(round(p * 2.0 ** 32)), 2 ** 32 - 1))


def _fused_multiplier(pos, seed_u):
    """Fused multisample-dropout multiplier for elements keyed by `pos`.

    Shared by the kernel and the pure-JAX reference so they are bit-identical.
    All math is f32 / uint32 (VPU-friendly on v5e, which has no bf16 VALU).
    """

    def random_bits(sample_idx):
        # Cheap 2-round stateless finalizer — dropout-grade, not crypto.
        h = pos + (seed_u + jnp.uint32(sample_idx)) * _u32(0x9E3779B9)
        h = h ^ (h >> 16)
        h = h * _u32(0x85EBCA6B)
        h = h ^ (h >> 15)
        return h

    # Sum of the 5 prescaled per-sample keep multipliers (static unroll).
    s = jnp.zeros(pos.shape, jnp.float32)
    for idx, p in enumerate(P_LIST):
        s = s + jnp.where(random_bits(idx + 1) >= _keep_threshold(p),
                          jnp.float32(SAMPLE_SCALE[idx]), jnp.float32(0.0))
    # Shared base dropout applied as a select (no extra 0/1 mask multiply).
    return jnp.where(random_bits(0) >= _keep_threshold(P_BASE), s,
                     jnp.float32(0.0))


def multisample_dropout_kernel(seed_ref, x_ref, w_ref, b_ref, o_ref, xd_cache):
    i = pl.program_id(0)   # row block
    j = pl.program_id(1)   # output-column block
    k = pl.program_id(2)   # reduction block
    TM, TK = x_ref.shape

    @pl.when(j == 0)
    def _():
        # Masks are computed once per (i, k) block and cached; all j > 0
        # revisits only pay the bf16 matmul. Coordinates are global element
        # indices, so the realization is independent of the tiling.
        rows = (jax.lax.broadcasted_iota(jnp.int32, (TM, TK), 0)
                + i * TM).astype(jnp.uint32)
        cols = (jax.lax.broadcasted_iota(jnp.int32, (TM, TK), 1)
                + k * TK).astype(jnp.uint32)
        pos = rows * _u32(0x9E3779B1) ^ cols * _u32(0x85EBCA77)
        m = _fused_multiplier(pos, seed_ref[0].astype(jnp.uint32))
        # Mask math in f32; single cast to bf16 right before the MXU.
        xd_cache[k] = (x_ref[...] * m).astype(jnp.bfloat16)

    partial = jnp.dot(xd_cache[k], w_ref[...],
                      preferred_element_type=jnp.float32)

    # Accumulate directly into the resident f32 output block (no scratch
    # accumulator); bias folded in at the first reduction step.
    @pl.when(k == 0)
    def _():
        o_ref[...] = partial + b_ref[...]

    @pl.when(k != 0)
    def _():
        o_ref[...] += partial


def multisample_dropout(x, w, b, seed, *, tm=256, tn=512, tk=1024):
    """out = mean_i(Linear(dropout_i(dropout_base(x)))) for a linear head.

    x: (B, H) f32; w: (H, O) f32 (transpose of torch Linear.weight);
    b: (1, O) f32; seed: python int.
    """
    B, H = x.shape
    O = w.shape[1]

    tm = min(tm, B)
    tn = min(tn, O)
    tk = min(tk, H)
    assert B % tm == 0 and O % tn == 0 and H % tk == 0, "shapes must tile evenly"
    assert tm % 8 == 0 and tn % 128 == 0 and tk % 128 == 0, "TPU-tile alignment"

    nk = H // tk
    # Cast the weight once in the wrapper (not per grid step in the kernel).
    w_bf16 = w.astype(jnp.bfloat16)
    seed_arr = jnp.array([seed], dtype=jnp.int32)

    grid = (B // tm, O // tn, nk)

    # VMEM budget: double-buffered inputs + resident output + bf16 xd cache.
    vmem_bytes = (2 * tm * tk * 4        # x blocks (f32, double-buffered)
                  + 2 * tk * tn * 2      # w blocks (bf16, double-buffered)
                  + 2 * 8 * tn * 4       # bias blocks (sublane-padded)
                  + 2 * tm * tn * 4      # output block
                  + tm * H * 2)          # xd cache (bf16), persists across grid
    assert vmem_bytes < (40 << 20), "tiles / xd cache too large for VMEM; shrink tm"
    # Margin for compiler-internal scratch; cap well below v7x's 64 MiB/TC.
    vmem_limit = min(max(int(vmem_bytes * 1.5) + (2 << 20), 16 << 20), 48 << 20)

    return pl.pallas_call(
        multisample_dropout_kernel,
        out_shape=jax.ShapeDtypeStruct((B, O), x.dtype),
        grid_spec=pltpu.PrefetchScalarGridSpec(
            num_scalar_prefetch=1,                               # seed -> SMEM
            grid=grid,
            in_specs=[
                pl.BlockSpec((tm, tk), lambda i, j, k, s: (i, k)),   # x (f32)
                pl.BlockSpec((tk, tn), lambda i, j, k, s: (k, j)),   # w (bf16)
                pl.BlockSpec((1, tn), lambda i, j, k, s: (0, j)),    # b (f32)
            ],
            out_specs=pl.BlockSpec((tm, tn), lambda i, j, k, s: (i, j)),
            scratch_shapes=[pltpu.VMEM((nk, tm, tk), jnp.bfloat16)],  # xd cache
        ),
        compiler_params=pltpu.CompilerParams(
            # Only the row-block axis is parallel: the xd cache filled at
            # j == 0 must be consumed by the same core for j > 0; k is the
            # trailing reduction axis.
            dimension_semantics=("parallel", "arbitrary", "arbitrary"),
            vmem_limit_bytes=vmem_limit,
        ),
    )(seed_arr, x, w_bf16, b)


def multisample_dropout_reference(x, w, b, seed):
    """Pure-JAX reference using the exact same hash as the kernel."""
    B, H = x.shape
    rows = jnp.arange(B, dtype=jnp.uint32)[:, None]
    cols = jnp.arange(H, dtype=jnp.uint32)[None, :]
    pos = rows * _u32(0x9E3779B1) ^ cols * _u32(0x85EBCA77)
    m = _fused_multiplier(pos, jnp.uint32(seed))
    xd = (x * m).astype(jnp.bfloat16)
    out = jnp.dot(xd, w.astype(jnp.bfloat16),
                  preferred_element_type=jnp.float32) + b
    return out, m


if __name__ == "__main__":
    # Small, TPU-tile-aligned demo; explicit tiles give a real (2, 2, 2) grid
    # (cache reuse across j, accumulation across k).
    B, H, O = 256, 512, 512
    SEED = 0

    key = jax.random.PRNGKey(0)
    kx, kw, kb = jax.random.split(key, 3)

    x = jax.random.normal(kx, (B, H), dtype=jnp.float32)
    # Deterministic Linear params (Kaiming-uniform-ish scale like nn.Linear).
    bound = 1.0 / (H ** 0.5)
    w = jax.random.uniform(kw, (H, O), jnp.float32, minval=-bound, maxval=bound)
    b = jax.random.uniform(kb, (1, O), jnp.float32, minval=-bound, maxval=bound)

    out = multisample_dropout(x, w, b, seed=SEED, tm=128, tn=256, tk=256)
    out = jax.block_until_ready(out)

    assert out.shape == (B, O) and out.dtype == jnp.float32
    assert bool(jnp.all(jnp.isfinite(out)))

    # End-to-end check against the pure-JAX reference (same hash, same bf16
    # rounding); only f32 accumulation order differs between the two.
    ref, m = multisample_dropout_reference(x, w, b, SEED)
    max_err = float(jnp.max(jnp.abs(out - ref)))
    assert max_err < 1e-2, f"kernel/reference mismatch: max_err={max_err}"

    # Statistical checks on the fused dropout multiplier:
    #   P(m == 0) ~= base drop rate 0.1 (the all-5-dropped event adds ~1e-3),
    #   E[m] == 1 (inverted-dropout scaling preserves the mean).
    frac_zero = float(jnp.mean((m == 0.0).astype(jnp.float32)))
    mean_m = float(jnp.mean(m))
    assert abs(frac_zero - P_BASE) < 0.02, f"drop rate off: {frac_zero}"
    assert abs(mean_m - 1.0) < 0.05, f"multiplier mean off: {mean_m}"

    print("KERNEL_OK")
</pallas_src>

<mosaic_0001>
module attributes {stable_mosaic.version = 11 : i64} {
  func.func @multisample_dropout_kernel(%arg0: i32, %arg1: i32, %arg2: i32, %arg3: memref<1xi32, #tpu.memory_space<smem>>, %arg4: memref<128x256xf32, #tpu.memory_space<vmem>>, %arg5: memref<256x256xbf16, #tpu.memory_space<vmem>>, %arg6: memref<1x256xf32, #tpu.memory_space<vmem>>, %arg7: memref<128x256xf32, #tpu.memory_space<vmem>>, %arg8: memref<2x128x256xbf16, #tpu.memory_space<vmem>>) attributes {dimension_semantics = [#tpu.dimension_semantics<parallel>, #tpu.dimension_semantics<arbitrary>, #tpu.dimension_semantics<arbitrary>], iteration_bounds = array<i64: 2, 2, 2>, scalar_prefetch = 1 : i64, scratch_operands = 1 : i64, tpu.core_type = #tpu.core_type<tc>, window_params = [{transform_indices = @transform_0, window_bounds = array<i64: 128, 256>}, {transform_indices = @transform_1, window_bounds = array<i64: 256, 256>}, {transform_indices = @transform_2, window_bounds = array<i64: 1, 256>}, {transform_indices = @transform_3, window_bounds = array<i64: 128, 256>}]} {
    %c0_i32 = arith.constant 0 : i32
    %0 = arith.cmpi eq, %arg1, %c0_i32 : i32
    %1 = arith.extui %0 : i1 to i32
    %c0_i32_0 = arith.constant 0 : i32
    %2 = arith.cmpi ne, %1, %c0_i32_0 : i32
    scf.if %2 {
      %14 = tpu.iota {dimensions = array<i32: 0>} : vector<128x256xi32>
      %c128_i32 = arith.constant 128 : i32
      %15 = arith.muli %arg0, %c128_i32 : i32
      %16 = vector.broadcast %15 : i32 to vector<128x256xi32>
      %17 = arith.addi %14, %16 : vector<128x256xi32>
      %18 = tpu.iota {dimensions = array<i32: 1>} : vector<128x256xi32>
      %c256_i32 = arith.constant 256 : i32
      %19 = arith.muli %arg2, %c256_i32 : i32
      %20 = vector.broadcast %19 : i32 to vector<128x256xi32>
      %21 = arith.addi %18, %20 : vector<128x256xi32>
      %c-1640531535_i32 = arith.constant -1640531535 : i32
      %22 = vector.broadcast %c-1640531535_i32 : i32 to vector<128x256xi32>
      %23 = arith.muli %17, %22 : vector<128x256xi32>
      %c-2048144777_i32 = arith.constant -2048144777 : i32
      %24 = vector.broadcast %c-2048144777_i32 : i32 to vector<128x256xi32>
      %25 = arith.muli %21, %24 : vector<128x256xi32>
      %26 = arith.xori %23, %25 : vector<128x256xi32>
      %c0_8 = arith.constant 0 : index
      %27 = memref.load %arg3[%c0_8] : memref<1xi32, #tpu.memory_space<smem>>
      %cst_9 = arith.constant 0.000000e+00 : f32
      %28 = vector.broadcast %cst_9 : f32 to vector<128x256xf32>
      %c1_i32 = arith.constant 1 : i32
      %29 = arith.addi %27, %c1_i32 : i32
      %c-1640531527_i32 = arith.constant -1640531527 : i32
      %30 = arith.muli %29, %c-1640531527_i32 : i32
      %31 = vector.broadcast %30 : i32 to vector<128x256xi32>
      %32 = arith.addi %26, %31 : vector<128x256xi32>
      %c16_i32 = arith.constant 16 : i32
      %33 = vector.broadcast %c16_i32 : i32 to vector<128x256xi32>
      %34 = arith.shrui %32, %33 : vector<128x256xi32>
      %35 = arith.xori %32, %34 : vector<128x256xi32>
      %c-2048144789_i32 = arith.constant -2048144789 : i32
      %36 = vector.broadcast %c-2048144789_i32 : i32 to vector<128x256xi32>
      %37 = arith.muli %35, %36 : vector<128x256xi32>
      %c15_i32 = arith.constant 15 : i32
      %38 = vector.broadcast %c15_i32 : i32 to vector<128x256xi32>
      %39 = arith.shrui %37, %38 : vector<128x256xi32>
      %40 = arith.xori %37, %39 : vector<128x256xi32>
      %c429496730_i32 = arith.constant 429496730 : i32
      %41 = vector.broadcast %c429496730_i32 : i32 to vector<128x256xi32>
      %42 = arith.cmpi uge, %40, %41 : vector<128x256xi32>
      %cst_10 = arith.constant 0.246913582 : f32
      %cst_11 = arith.constant 0.000000e+00 : f32
      %43 = vector.broadcast %cst_10 : f32 to vector<128x256xf32>
      %44 = vector.broadcast %cst_11 : f32 to vector<128x256xf32>
      %45 = arith.select %42, %43, %44 : vector<128x256xi1>, vector<128x256xf32>
      %46 = arith.addf %28, %45 : vector<128x256xf32>
      %c2_i32 = arith.constant 2 : i32
      %47 = arith.addi %27, %c2_i32 : i32
      %c-1640531527_i32_12 = arith.constant -1640531527 : i32
      %48 = arith.muli %47, %c-1640531527_i32_12 : i32
      %49 = vector.broadcast %48 : i32 to vector<128x256xi32>
      %50 = arith.addi %26, %49 : vector<128x256xi32>
      %c16_i32_13 = arith.constant 16 : i32
      %51 = vector.broadcast %c16_i32_13 : i32 to vector<128x256xi32>
      %52 = arith.shrui %50, %51 : vector<128x256xi32>
      %53 = arith.xori %50, %52 : vector<128x256xi32>
      %c-2048144789_i32_14 = arith.constant -2048144789 : i32
      %54 = vector.broadcast %c-2048144789_i32_14 : i32 to vector<128x256xi32>
      %55 = arith.muli %53, %54 : vector<128x256xi32>
      %c15_i32_15 = arith.constant 15 : i32
      %56 = vector.broadcast %c15_i32_15 : i32 to vector<128x256xi32>
      %57 = arith.shrui %55, %56 : vector<128x256xi32>
      %58 = arith.xori %55, %57 : vector<128x256xi32>
      %c858993459_i32 = arith.constant 858993459 : i32
      %59 = vector.broadcast %c858993459_i32 : i32 to vector<128x256xi32>
      %60 = arith.cmpi uge, %58, %59 : vector<128x256xi32>
      %cst_16 = arith.constant 0.277777791 : f32
      %cst_17 = arith.constant 0.000000e+00 : f32
      %61 = vector.broadcast %cst_16 : f32 to vector<128x256xf32>
      %62 = vector.broadcast %cst_17 : f32 to vector<128x256xf32>
      %63 = arith.select %60, %61, %62 : vector<128x256xi1>, vector<128x256xf32>
      %64 = arith.addf %46, %63 : vector<128x256xf32>
      %c3_i32 = arith.constant 3 : i32
      %65 = arith.addi %27, %c3_i32 : i32
      %c-1640531527_i32_18 = arith.constant -1640531527 : i32
      %66 = arith.muli %65, %c-1640531527_i32_18 : i32
      %67 = vector.broadcast %66 : i32 to vector<128x256xi32>
      %68 = arith.addi %26, %67 : vector<128x256xi32>
      %c16_i32_19 = arith.constant 16 : i32
      %69 = vector.broadcast %c16_i32_19 : i32 to vector<128x256xi32>
      %70 = arith.shrui %68, %69 : vector<128x256xi32>
      %71 = arith.xori %68, %70 : vector<128x256xi32>
      %c-2048144789_i32_20 = arith.constant -2048144789 : i32
      %72 = vector.broadcast %c-2048144789_i32_20 : i32 to vector<128x256xi32>
      %73 = arith.muli %71, %72 : vector<128x256xi32>
      %c15_i32_21 = arith.constant 15 : i32
      %74 = vector.broadcast %c15_i32_21 : i32 to vector<128x256xi32>
      %75 = arith.shrui %73, %74 : vector<128x256xi32>
      %76 = arith.xori %73, %75 : vector<128x256xi32>
      %c1288490189_i32 = arith.constant 1288490189 : i32
      %77 = vector.broadcast %c1288490189_i32 : i32 to vector<128x256xi32>
      %78 = arith.cmpi uge, %76, %77 : vector<128x256xi32>
      %cst_22 = arith.constant 0.317460328 : f32
      %cst_23 = arith.constant 0.000000e+00 : f32
      %79 = vector.broadcast %cst_22 : f32 to vector<128x256xf32>
      %80 = vector.broadcast %cst_23 : f32 to vector<128x256xf32>
      %81 = arith.select %78, %79, %80 : vector<128x256xi1>, vector<128x256xf32>
      %82 = arith.addf %64, %81 : vector<128x256xf32>
      %c4_i32 = arith.constant 4 : i32
      %83 = arith.addi %27, %c4_i32 : i32
      %c-1640531527_i32_24 = arith.constant -1640531527 : i32
      %84 = arith.muli %83, %c-1640531527_i32_24 : i32
      %85 = vector.broadcast %84 : i32 to vector<128x256xi32>
      %86 = arith.addi %26, %85 : vector<128x256xi32>
      %c16_i32_25 = arith.constant 16 : i32
      %87 = vector.broadcast %c16_i32_25 : i32 to vector<128x256xi32>
      %88 = arith.shrui %86, %87 : vector<128x256xi32>
      %89 = arith.xori %86, %88 : vector<128x256xi32>
      %c-2048144789_i32_26 = arith.constant -2048144789 : i32
      %90 = vector.broadcast %c-2048144789_i32_26 : i32 to vector<128x256xi32>
      %91 = arith.muli %89, %90 : vector<128x256xi32>
      %c15_i32_27 = arith.constant 15 : i32
      %92 = vector.broadcast %c15_i32_27 : i32 to vector<128x256xi32>
      %93 = arith.shrui %91, %92 : vector<128x256xi32>
      %94 = arith.xori %91, %93 : vector<128x256xi32>
      %c1717986918_i32 = arith.constant 1717986918 : i32
      %95 = vector.broadcast %c1717986918_i32 : i32 to vector<128x256xi32>
      %96 = arith.cmpi uge, %94, %95 : vector<128x256xi32>
      %cst_28 = arith.constant 0.370370358 : f32
      %cst_29 = arith.constant 0.000000e+00 : f32
      %97 = vector.broadcast %cst_28 : f32 to vector<128x256xf32>
      %98 = vector.broadcast %cst_29 : f32 to vector<128x256xf32>
      %99 = arith.select %96, %97, %98 : vector<128x256xi1>, vector<128x256xf32>
      %100 = arith.addf %82, %99 : vector<128x256xf32>
      %c5_i32 = arith.constant 5 : i32
      %101 = arith.addi %27, %c5_i32 : i32
      %c-1640531527_i32_30 = arith.constant -1640531527 : i32
      %102 = arith.muli %101, %c-1640531527_i32_30 : i32
      %103 = vector.broadcast %102 : i32 to vector<128x256xi32>
      %104 = arith.addi %26, %103 : vector<128x256xi32>
      %c16_i32_31 = arith.constant 16 : i32
      %105 = vector.broadcast %c16_i32_31 : i32 to vector<128x256xi32>
      %106 = arith.shrui %104, %105 : vector<128x256xi32>
      %107 = arith.xori %104, %106 : vector<128x256xi32>
      %c-2048144789_i32_32 = arith.constant -2048144789 : i32
      %108 = vector.broadcast %c-2048144789_i32_32 : i32 to vector<128x256xi32>
      %109 = arith.muli %107, %108 : vector<128x256xi32>
      %c15_i32_33 = arith.constant 15 : i32
      %110 = vector.broadcast %c15_i32_33 : i32 to vector<128x256xi32>
      %111 = arith.shrui %109, %110 : vector<128x256xi32>
      %112 = arith.xori %109, %111 : vector<128x256xi32>
      %c-2147483648_i32 = arith.constant -2147483648 : i32
      %113 = vector.broadcast %c-2147483648_i32 : i32 to vector<128x256xi32>
      %114 = arith.cmpi uge, %112, %113 : vector<128x256xi32>
      %cst_34 = arith.constant 0.444444448 : f32
      %cst_35 = arith.constant 0.000000e+00 : f32
      %115 = vector.broadcast %cst_34 : f32 to vector<128x256xf32>
      %116 = vector.broadcast %cst_35 : f32 to vector<128x256xf32>
      %117 = arith.select %114, %115, %116 : vector<128x256xi1>, vector<128x256xf32>
      %118 = arith.addf %100, %117 : vector<128x256xf32>
      %c0_i32_36 = arith.constant 0 : i32
      %119 = arith.addi %27, %c0_i32_36 : i32
      %c-1640531527_i32_37 = arith.constant -1640531527 : i32
      %120 = arith.muli %119, %c-1640531527_i32_37 : i32
      %121 = vector.broadcast %120 : i32 to vector<128x256xi32>
      %122 = arith.addi %26, %121 : vector<128x256xi32>
      %c16_i32_38 = arith.constant 16 : i32
      %123 = vector.broadcast %c16_i32_38 : i32 to vector<128x256xi32>
      %124 = arith.shrui %122, %123 : vector<128x256xi32>
      %125 = arith.xori %122, %124 : vector<128x256xi32>
      %c-2048144789_i32_39 = arith.constant -2048144789 : i32
      %126 = vector.broadcast %c-2048144789_i32_39 : i32 to vector<128x256xi32>
      %127 = arith.muli %125, %126 : vector<128x256xi32>
      %c15_i32_40 = arith.constant 15 : i32
      %128 = vector.broadcast %c15_i32_40 : i32 to vector<128x256xi32>
      %129 = arith.shrui %127, %128 : vector<128x256xi32>
      %130 = arith.xori %127, %129 : vector<128x256xi32>
      %c429496730_i32_41 = arith.constant 429496730 : i32
      %131 = vector.broadcast %c429496730_i32_41 : i32 to vector<128x256xi32>
      %132 = arith.cmpi uge, %130, %131 : vector<128x256xi32>
      %cst_42 = arith.constant 0.000000e+00 : f32
      %133 = vector.broadcast %cst_42 : f32 to vector<128x256xf32>
      %134 = arith.select %132, %118, %133 : vector<128x256xi1>, vector<128x256xf32>
      %c0_43 = arith.constant 0 : index
      %c0_44 = arith.constant 0 : index
      %135 = vector.load %arg4[%c0_43, %c0_44] : memref<128x256xf32, #tpu.memory_space<vmem>>, vector<128x256xf32>
      %136 = arith.mulf %135, %134 : vector<128x256xf32>
      %137 = arith.truncf %136 : vector<128x256xf32> to vector<128x256xbf16>
      %138 = arith.index_cast %arg2 : i32 to index
      %c0_45 = arith.constant 0 : index
      %c0_46 = arith.constant 0 : index
      %139 = vector.load %arg8[%138, %c0_45, %c0_46] : memref<2x128x256xbf16, #tpu.memory_space<vmem>>, vector<1x128x256xbf16>
      %140 = vector.shape_cast %139 : vector<1x128x256xbf16> to vector<128x256xbf16>
      %141 = vector.shape_cast %137 : vector<128x256xbf16> to vector<1x128x256xbf16>
      tpu.vector_store %arg8[%138, %c0_45, %c0_46], %141 {strides = array<i32>} : memref<2x128x256xbf16, #tpu.memory_space<vmem>>, vector<1x128x256xbf16>,
    } else {
    }
    %3 = arith.index_cast %arg2 : i32 to index
    %c0 = arith.constant 0 : index
    %c0_1 = arith.constant 0 : index
    %4 = vector.load %arg8[%3, %c0, %c0_1] : memref<2x128x256xbf16, #tpu.memory_space<vmem>>, vector<1x128x256xbf16>
    %5 = vector.shape_cast %4 : vector<1x128x256xbf16> to vector<128x256xbf16>
    %c0_2 = arith.constant 0 : index
    %c0_3 = arith.constant 0 : index
    %6 = vector.load %arg5[%c0_2, %c0_3] : memref<256x256xbf16, #tpu.memory_space<vmem>>, vector<256x256xbf16>
    %cst = arith.constant dense<0.000000e+00> : vector<128x256xf32>
    %7 = tpu.matmul %5, %6, %cst {dimension_numbers = #tpu.dot_dimension_numbers<[1], [0], [0], [1], [0, 0, 1, 1], [], []>} : vector<128x256xbf16>, vector<256x256xbf16>, vector<128x256xf32> -> vector<128x256xf32>
    %c0_i32_4 = arith.constant 0 : i32
    %8 = arith.cmpi eq, %arg2, %c0_i32_4 : i32
    %9 = arith.extui %8 : i1 to i32
    %c0_i32_5 = arith.constant 0 : i32
    %10 = arith.cmpi ne, %9, %c0_i32_5 : i32
    scf.if %10 {
      %c0_8 = arith.constant 0 : index
      %c0_9 = arith.constant 0 : index
      %14 = vector.load %arg6[%c0_8, %c0_9] : memref<1x256xf32, #tpu.memory_space<vmem>>, vector<1x256xf32>
      %15 = vector.broadcast %14 : vector<1x256xf32> to vector<128x256xf32>
      %16 = arith.addf %7, %15 : vector<128x256xf32>
      %c0_10 = arith.constant 0 : index
      %c0_11 = arith.constant 0 : index
      %17 = vector.load %arg7[%c0_10, %c0_11] : memref<128x256xf32, #tpu.memory_space<vmem>>, vector<128x256xf32>
      tpu.vector_store %arg7[%c0_10, %c0_11], %16 {strides = array<i32>} : memref<128x256xf32, #tpu.memory_space<vmem>>, vector<128x256xf32>,
    } else {
    }
    %c0_i32_6 = arith.constant 0 : i32
    %11 = arith.cmpi ne, %arg2, %c0_i32_6 : i32
    %12 = arith.extui %11 : i1 to i32
    %c0_i32_7 = arith.constant 0 : i32
    %13 = arith.cmpi ne, %12, %c0_i32_7 : i32
    scf.if %13 {
      %c0_8 = arith.constant 0 : index
      %c0_9 = arith.constant 0 : index
      %14 = vector.load %arg7[%c0_8, %c0_9] : memref<128x256xf32, #tpu.memory_space<vmem>>, vector<128x256xf32>
      %15 = arith.addf %14, %7 : vector<128x256xf32>
      %c0_10 = arith.constant 0 : index
      %c0_11 = arith.constant 0 : index
      %16 = vector.load %arg7[%c0_10, %c0_11] : memref<128x256xf32, #tpu.memory_space<vmem>>, vector<128x256xf32>
      tpu.vector_store %arg7[%c0_10, %c0_11], %15 {strides = array<i32>} : memref<128x256xf32, #tpu.memory_space<vmem>>, vector<128x256xf32>,
    } else {
    }
    return
  }
  func.func @transform_0(%arg0: i32, %arg1: i32, %arg2: i32, %arg3: memref<1xi32, #tpu.memory_space<smem>>) -> (i32, i32) {
    %c0_i32 = arith.constant 0 : i32
    return %arg0, %arg2 : i32, i32
  }
  func.func @transform_1(%arg0: i32, %arg1: i32, %arg2: i32, %arg3: memref<1xi32, #tpu.memory_space<smem>>) -> (i32, i32) {
    %c0_i32 = arith.constant 0 : i32
    return %arg2, %arg1 : i32, i32
  }
  func.func @transform_2(%arg0: i32, %arg1: i32, %arg2: i32, %arg3: memref<1xi32, #tpu.memory_space<smem>>) -> (i32, i32) {
    %c0_i32 = arith.constant 0 : i32
    %c0_i32_0 = arith.constant 0 : i32
    return %c0_i32, %arg1 : i32, i32
  }
  func.func @transform_3(%arg0: i32, %arg1: i32, %arg2: i32, %arg3: memref<1xi32, #tpu.memory_space<smem>>) -> (i32, i32) {
    %c0_i32 = arith.constant 0 : i32
    return %arg0, %arg1 : i32, i32
  }
}

</mosaic_0001>

<bundles_post_ra>
// kernel: tpu_custom_call.1
= control target key start
LH: loop header
LB: loop body
LE: loop exit
PB: predicated region body
PF: predicated region fallthrough
CT: control target
= control target key end

     0   :  { %s8111_s0 = inlined_call_operand.<no memory space> [shape: s32[1], index: 0, kind: input, shape index: {}]   ;;  %s8112_s1 = inlined_call_operand.hbm [shape: f32[256,512], index: 1, kind: input, shape index: {}]   ;;  %s8113_s2 = inlined_call_operand.hbm [shape: bf16[512,512], index: 2, kind: input, shape index: {}]   ;;  %s8114_s3 = inlined_call_operand.vmem [shape: f32[1,512], index: 3, kind: input, shape index: {}]   ;;  %s8115_s4 = inlined_call_operand.hbm [shape: f32[256,512], index: 4, kind: output, shape index: {}]  }
   0x1   :  { %8418 = sst [smem:[#allocation106_spill]] %s8112_s1 }
   0x2   :  { %8419 = sst [smem:[#allocation107_spill]] %s8113_s2 }
   0x3   :  { %8420 = sst [smem:[#allocation108_spill]] %s8114_s3 }
   0x4   :  { %8421 = sst [smem:[#allocation109_spill]] %s8115_s4 }
   0x5   :  { %9 = sst [smem:[#allocation4]] %s8111_s0 }
   0x6   :  { %10 = vsyncpa [#allocation6], 0 }
   0x7   :  { %12 = vsyncpa [#allocation6 + $0x1], 0 }
   0x8   :  { %13 = vsyncpa [#allocation9], 0 }
   0x9   :  { %15 = vsyncpa [#allocation9 + $0x1], 0 }
   0xa   :  { %16 = vsyncpa [#allocation7], 0 }
   0xb   :  { %18 = vsyncpa [#allocation7 + $0x1], 0  ;;  %s3654_s17 = smov 0   ;;  %s3656_s18 = smov 0  }
   0xc   :  { %s3658_s19 = smov 0   ;;  %s3660_s20 = smov 0  }
   0xd   :  { %s3662_s21 = smov 0   ;;  %s3664_s22 = smov 0  }
   0xe   :  { %s3666_s23 = smov 0   ;;  %s3668_s0 = smov 0  }
   0xf   :  { %s3670_s24 = smov 0   ;;  %s3672_s25 = smov 0  }
  0x10   :  { %s3674_s26 = smov 0   ;;  %s3676_s27 = smov 0  }
  0x11   :  { %s3678_s28 = smov 0   ;;  %s3680_s29 = smov 0  }
  0x12   :  { %s3682_s30 = smov 0   ;;  %s3684_s5 = smov 0  }
  0x13 LB: > { %8422 = sst [smem:[#allocation14_spill]] %s3580_s0  ;;  %s3012_s6 = sadd.s32 4294967295, %s3612_s5   ;;  %s3612_s5 = sphi %s3684_s5, %s24_s5   ;;  %s3608_s30 = sphi %s3682_s30, %s9417_s30   ;;  %s3604_s29 = sphi %s3680_s29, %s9416_s29   ;;  %s3600_s28 = sphi %s3678_s28, %s9428_s28   ;;  %s3596_s27 = sphi %s3676_s27, %s9414_s27   ;;  %s3592_s26 = sphi %s3674_s26, %s9427_s26   ;;  %s3588_s25 = sphi %s3672_s25, %s9426_s25   ;;  %s3584_s24 = sphi %s3670_s24, %s9425_s24   ;;  %s3580_s0 = sphi %s3668_s0, %s9424_s0   ;;  %s3576_s23 = sphi %s3666_s23, %s9411_s23   ;;  %s3572_s22 = sphi %s3664_s22, %s9423_s22   ;;  %s3568_s21 = sphi %s3662_s21, %s9422_s21   ;;  %s3564_s20 = sphi %s3660_s20, %s9421_s20   ;;  %s3560_s19 = sphi %s3658_s19, %s9420_s19   ;;  %s3556_s18 = sphi %s3656_s18, %s9419_s18   ;;  %s3552_s17 = sphi %s3654_s17, %s9418_s17  }
  0x14   : > { %8423 = sst [smem:[#allocation15_spill]] %s3588_s25  ;;  %s36_s7 = sadd.s32 1, %s3600_s28 }
  0x15   : > { %8424 = sst [smem:[#allocation16_spill]] %s3592_s26  ;;  %p3734_p0 = scmp.ge.s32.totalorder %s36_s7, 2 }
  0x16   : > { %8425 = sst [smem:[#allocation17_spill]] %s3596_s27  ;;  %p59_p1 = scmp.ne.s32.totalorder %s3584_s24, %s3580_s0 }
  0x17   : > { %8426 = sst [smem:[#allocation18_spill]] %s3604_s29  ;;  %s9430_s7 = smov (%p3734_p0, %s36_s7), 0 }
  0x18   : > { %8427 = sst [smem:[#allocation19_spill]] %s3608_s30  ;;  %p8125_p2 = scmp.eq.s32.totalorder %s3612_s5, 0 }
  0x19   : > { %8429 = sst [smem:[#allocation20_spill]] %s9430_s7  ;;  %p65_p3 = scmp.ne.s32.totalorder %s3580_s0, %s3576_s23 }
  0x1a   : > { %s3750_s11 = ssub.s32 %s3600_s28, %s9430_s7  ;;  %p3752_p4 = scmp.eq.s32.totalorder %s3012_s6, 0 }
  0x1b   : > { %p3758_p5 = por %p8125_p2, %p59_p1  ;;  %p3762_p6 = scmp.eq.s32.totalorder %s3012_s6, 7 }
  0x1c   : > { %p3768_p7 = por %p3752_p4, %p65_p3  ;;  %p8124_p8 = scmp.lt.s32.totalorder %s3612_s5, 8 }
  0x1d   : > { %s171_s16 = sand.u32 1, %s3584_s24   ;;  %s3018_s10 = sshll.u32 %s3600_s28, 1 }
  0x1e   : > { %s8433_s15 = scalar_select %p3768_p7, 1, 0 }
  0x1f   : > { %s3016_s23 = sshll.u32 %s171_s16, 8  ;;  %s3111_s9 = sshll.u32 %s3608_s30, 6 }
  0x20   : > { %8434 = sst [smem:[#allocation21_spill]] %s8433_s15  ;;  %s175_s7 = scalar_lea.vmem [#allocation5], %s3016_s23 }
  0x21   : > { %s185_s4 = sshll.u32 %s175_s7, 4  ;;  %s182_s25 = sadd.s32 %s3111_s9, %s3018_s10  ;;  %s186_s4 = int_to_ptr.vmem [resolvable:$true] %s185_s4 }
  0x22   : > { %s3020_s27 = sshll.u32 %s182_s25, 7  ;;  %p3780_p9 = pnand %p8124_p8, %p3758_p5 }
  0x23   : > { %s8436_s1 = sld [smem:[#allocation106_spill]]  ;;  %p3026_p10 = scmp.ge.s32.totalorder %s3612_s5, 1 }
  0x24   : > { %s172_s0 = scalar_lea.sflag [#allocation6], %s171_s16  ;;  %p3394_p11 = pneg %p3780_p9 }
  0x25   : > { %s3405_s23 = scalar_lea.vmem %s186_s4, 4096  ;;  %s3614_s25 = smov [#allocation5]  }
  0x26   : > { %p3406_p12 = scmp.ne.s32.totalorder %s186_s4, %s3405_s23  ;;  %s3410_s7 = sshll.u32 %s3614_s25, 4  ;;  %s3411_s7 = int_to_ptr.vmem [resolvable:$false] %s3410_s7 }
  0x27   : > { %s3412_s9 = scalar_lea.vmem %s3411_s7, 8192  ;;  %p3413_p3 = scmp.lt.s32.totalorder %s186_s4, %s3411_s7 }
  0x28   : > { %p3408_p13 = pnand %p3406_p12, %p3394_p11  ;;  %p3414_p5 = scmp.lt.s32.totalorder %s3412_s9, %s3405_s23 }
  0x29   : > { %s184_s15 = scalar_lea.hbm %s8436_s1, %s3020_s27 }
  0x2a   : > { %p3409_p1 = pneg %p3408_p13  ;;  %p3415_p8 = por %p3414_p5, %p3413_p3 }
  0x2c   : > { %p3416_p2 = pnand %p3415_p8, %p3409_p1 }
  0x2e   : > { %3419 = shalt.err (!%p3416_p2)
}
  0x2f   : > { %s3615_s3 = smov 512   ;;  %s8126_s26 = smov 256  }
  0x30   : > { %s3617_s27 = smov 16   ;;  %p225_p2 = scmp.lt.s32.totalorder %s3612_s5, 9 }
  0x31   : > { %3173 = dma.hbm_to_vmem [thread:$0]  (!%p3780_p9), %s184_s15, 4096, %s186_s4, %s172_s0, %s3615_s3, %s8126_s26, %s3617_s27  }
  0x32   : > { %p3796_p8 = pnand %p3026_p10, %p225_p2  ;;  %s3013_s13 = sadd.s32 4294967294, %s3612_s5  }
  0x33   : > { %s39_s16 = sadd.s32 1, %s3604_s29  ;;  %s80_s23 = sadd.s32 1, %s3572_s22 }
  0x34   : > { %s9432_s16 = smov (!%p3734_p0, %s39_s16), %s3604_s29  ;;  %p87_p11 = scmp.ne.s32.totalorder %s3572_s22, %s3568_s21 }
  0x35   : > { %p41_p12 = scmp.ge.s32.totalorder %s9432_s16, 2  ;;  %p93_p9 = scmp.ne.s32.totalorder %s3568_s21, %s3564_s20 }
  0x36   : > { %p8438_p13 = scmp.eq.s32.totalorder %s3612_s5, 0  ;;  %s134_s0 = sadd.s32 1, %s3560_s19 }
  0x37   : > { %s9434_s16 = smov (%p41_p12, %s9432_s16), 0  ;;  %s8441_s15 = sadd.s32 1, %s3608_s30 }
  0x38   : > { %p3812_p1 = por %p87_p11, %p8438_p13  ;;  %8440 = sst [smem:[#allocation22_spill]] %s9434_s16 }
  0x39   : > { %s9436_s15 = smov (!%p41_p12, %s8441_s15), %s3608_s30  ;;  %s76_s8 = ssub.s32 %s3604_s29, %s9434_s16 }
  0x3a   : > { %p3826_p0 = por %p93_p9, %p3752_p4  ;;  %p45_p10 = scmp.ge.s32.totalorder %s9436_s15, 2 }
  0x3b   : > { %s77_s20 = sor.u32 %s76_s8, %s3750_s11  ;;  %p144_p5 = scmp.ne.s32.totalorder %s3560_s19, %s3556_s18 }
  0x3c   : > { %p78_p3 = scmp.eq.s32.totalorder %s77_s20, 0  ;;  %s9438_s15 = smov (%p45_p10, %s9436_s15), 0 }
  0x3d   : > { %8443 = sst [smem:[#allocation23_spill]] %s9438_s15  ;;  %s47_s12 = ssub.s32 %s3608_s30, %s9438_s15 }
  0x3e   : > { %s3836_s25 = scalar_select %p78_p3, %s3572_s22, %s80_s23  }
  0x3f   : > { %p3842_p2 = por %p3762_p6, %p144_p5  ;;  %s49_s9 = sor.u32 %s3750_s11, %s47_s12 }
  0x40   : > { %s131_s3 = sor.u32 %s76_s8, %s47_s12  ;;  %p50_p4 = scmp.eq.s32.totalorder %s49_s9, 0 }
  0x41   : > { %p132_p11 = scmp.eq.s32.totalorder %s131_s3, 0  ;;  %p150_p12 = scmp.ne.s32.totalorder %s3556_s18, %s3552_s17 }
  0x42   : > { %p151_p9 = scmp.eq.s32.totalorder %s3013_s13, 7  ;;  %s8445_s27 = sadd.s32 1, %s3584_s24 }
  0x43   : > { %s3852_s20 = scalar_select %p50_p4, %s3584_s24, %s8445_s27  }
  0x44   : > { %s3855_s26 = scalar_select %p132_p11, %s3560_s19, %s134_s0  }
  0x45   : > { %p3857_p13 = por %p151_p9, %p150_p12  ;;  %s195_s14 = sand.u32 1, %s3572_s22  }
  0x46   : > { %s3021_s1 = sshll.u32 %s195_s14, 8  ;;  %s3023_s15 = sshll.u32 %s3604_s29, 1 }
  0x47   : > { %s3112_s11 = sshll.u32 %s3600_s28, 7  ;;  %s199_s8 = scalar_lea.vmem [#allocation8], %s3021_s1 }
  0x48   : > { %s209_s12 = sshll.u32 %s199_s8, 4  ;;  %s206_s9 = sadd.s32 %s3112_s11, %s3023_s15  ;;  %s210_s12 = int_to_ptr.vmem [resolvable:$true] %s209_s12 }
  0x49   : > { %s3025_s3 = sshll.u32 %s206_s9, 6  ;;  %p8447_p6 = scmp.lt.s32.totalorder %s3612_s5, 8 }
  0x4a   : > { %s8449_s2 = sld [smem:[#allocation107_spill]]  ;;  %s196_s30 = scalar_lea.sflag [#allocation9], %s195_s14 }
  0x4b   : > { %p3868_p10 = pnand %p8447_p6, %p3812_p1  ;;  %s3433_s29 = scalar_lea.vmem %s210_s12, 4096 }
  0x4c   : > { %p3434_p5 = scmp.ne.s32.totalorder %s210_s12, %s3433_s29  ;;  %s3618_s1 = smov [#allocation8]  }
  0x4d   : > { %p3422_p3 = pneg %p3868_p10  ;;  %s3438_s15 = sshll.u32 %s3618_s1, 4  ;;  %s3439_s15 = int_to_ptr.vmem [resolvable:$false] %s3438_s15 }
  0x4e   : > { %s3440_s4 = scalar_lea.vmem %s3439_s15, 8192  ;;  %p3441_p1 = scmp.lt.s32.totalorder %s210_s12, %s3439_s15 }
  0x4f   : > { %p3436_p4 = pnand %p3434_p5, %p3422_p3  ;;  %p3442_p12 = scmp.lt.s32.totalorder %s3440_s4, %s3433_s29 }
  0x50   : > { %s208_s16 = scalar_lea.hbm %s8449_s2, %s3025_s3 }
  0x51   : > { %p3437_p11 = pneg %p3436_p4  ;;  %p3443_p9 = por %p3442_p12, %p3441_p1 }
  0x53   : > { %p3444_p6 = pnand %p3443_p9, %p3437_p11 }
  0x55   : > { %3447 = shalt.err (!%p3444_p6)
}
  0x56   : > { %s3619_s11 = smov 128   ;;  %s3620_s8 = smov 8  }
  0x57   : > { %s8450_s14 = smov 256   ;;  %229 = sbr.rel (%p3796_p8) target bundleno = 1033 (0x409), region = 32 }
  0x58   : > { %3176 = dma.hbm_to_vmem [thread:$0]  (!%p3868_p10), %s208_s16, 4096, %s210_s12, %s196_s30, %s8450_s14, %s3619_s11, %s3620_s8  }
  0x59   : > { %s8451_s9 = sld [smem:[#allocation14_spill]] (!%p3796_p8) }
  0x5f   : > { %s231_s0 = sand.u32 1, %s8451_s9  }
  0x60   : > { %s3027_s27 = sshll.u32 %s231_s0, 8  ;;  %s232_s1 = scalar_lea.sflag [#allocation6], %s231_s0 }
  0x61   : > { %s3883_s2 = scalar_lea.vmem [#allocation5], %s3027_s27 }
  0x62   : > { %3539 = dma.done.wait (%p3768_p7), %s232_s1, 4096  }
  0x63   : > { %3541 = vsyncadd (%p3768_p7), %s232_s1, 4294963200  ;;  %s240_s29 = sand.u32 1, %s3568_s21  }
  0x64   : > { %s3028_s13 = sshll.u32 %s240_s29, 8  ;;  %s241_s30 = scalar_lea.sflag [#allocation9], %s240_s29 }
  0x65   : > { %s3890_s16 = scalar_lea.vmem [#allocation8], %s3028_s13 }
  0x66   : > { %3543 = dma.done.wait (%p3826_p0), %s241_s30, 4096  }
  0x67   : > { %3545 = vsyncadd (%p3826_p0), %s241_s30, 4294963200  ;;  %s8453_s10 = sld [smem:[#allocation16_spill]]  ;;  %s273_s12 = sand.u32 1, %s3556_s18  }
  0x68   : > { %s3029_s4 = sshll.u32 %s273_s12, 8  ;;  %s8454_s9 = sld [smem:[#allocation108_spill]] }
  0x69   : > { %s3910_s6 = scalar_lea.vmem [#allocation10], %s3029_s4 }
  0x6d   : > { %s3898_s15 = sshll.u32 %s8453_s10, 1  ;;  %p3031_p8 = scmp.ne.s32.totalorder %s8453_s10, 0 }
  0x6e   : > { %p281_p7 = scmp.lt.s32.totalorder %s3898_s15, 3 }
  0x6f   : > { %290 = sbr.rel (%p3031_p8) target bundleno = 656 (0x290), region = 44 }
  0x70   : > { %s3904_s11 = scalar_select %p281_p7, %s3898_s15, 3 }
  0x72   : > { %s283_s3 = scalar_lea.vmem %s8454_s9, %s3904_s11 }
  0x74   : > { %v291_v0 = vlaneseq  ;;  %s8455_s0 = sld [smem:[#allocation17_spill]] }
  0x75   : > { %s8456_s27 = sld [smem:[#allocation15_spill]] }
  0x76   : > { %v292_v1 = vshrl.u32 %v291_v0, 7  ;;  %s3914_s29 = sld [smem:[#allocation4]]  ;;  %v327_v3 = vand.u32 127, %v291_v0 }
  0x78   : > { %v293_v2 = vadd.s32 8, %v292_v1  ;;  %v294_v4 = vadd.s32 16, %v292_v1  ;;  %v295_v5 = vadd.s32 24, %v292_v1  ;;  %v296_v7 = vadd.s32 32, %v292_v1 }
  0x79   : > { %v297_v8 = vadd.s32 40, %v292_v1  ;;  %v298_v9 = vadd.s32 48, %v292_v1  ;;  %v299_v10 = vadd.s32 56, %v292_v1  ;;  %v300_v11 = vadd.s32 64, %v292_v1 }
  0x7a   : > { %s3032_s1 = sshll.u32 %s8455_s0, 7  ;;  %v301_v13 = vadd.s32 72, %v292_v1  ;;  %v328_v16 = vadd.s32 128, %v327_v3  ;;  %v302_v17 = vadd.s32 80, %v292_v1  ;;  %v303_v18 = vadd.s32 88, %v292_v1 }
  0x7b   : > { %s3033_s13 = sshll.u32 %s8456_s27, 8  ;;  %v309_v6 = vstv %s3032_s1  ;;  %v304_v21 = vadd.s32 96, %v292_v1  ;;  %v305_v22 = vadd.s32 104, %v292_v1  ;;  %v306_v25 = vadd.s32 112, %v292_v1 }
  0x7c   : > { %v330_v12 = vstv %s3033_s13  ;;  %v310_v14 = vadd.s32 %v309_v6, %v292_v1  ;;  %v311_v15 = vadd.s32 %v309_v6, %v293_v2  ;;  %v312_v19 = vadd.s32 %v309_v6, %v294_v4  ;;  %s384_s30 = sadd.s32 1, %s3914_s29  ;;  %s675_s10 = sadd.s32 2, %s3914_s29 }
  0x7d   : > { %v313_v20 = vadd.s32 %v309_v6, %v295_v5  ;;  %v314_v23 = vadd.s32 %v309_v6, %v296_v7  ;;  %v315_v24 = vadd.s32 %v309_v6, %v297_v8  ;;  %v307_v26 = vadd.s32 120, %v292_v1  ;;  %s385_s4 = smul.u32 2654435769, %s384_s30  ;;  %s966_s14 = sadd.s32 3, %s3914_s29 }
  0x7e   : > { %v316_v27 = vadd.s32 %v309_v6, %v298_v9  ;;  %v317_v28 = vadd.s32 %v309_v6, %v299_v10  ;;  %v331_v29 = vadd.s32 %v330_v12, %v327_v3  ;;  %v332_v30 = vadd.s32 %v330_v12, %v328_v16  ;;  %s676_s8 = smul.u32 2654435769, %s675_s10  ;;  %s1257_s9 = sadd.s32 4, %s3914_s29 }
  0x7f   : > { %v333_v31 = vmul.u32 2654435761, %v310_v14  ;;  %v334_v32 = vmul.u32 2654435761, %v311_v15  ;;  %v318_v33 = vadd.s32 %v309_v6, %v300_v11  ;;  %v319_v34 = vadd.s32 %v309_v6, %v301_v13  ;;  %s967_s0 = smul.u32 2654435769, %s966_s14 }
  0x80   : > { %v335_v35 = vmul.u32 2654435761, %v312_v19  ;;  %v336_v36 = vmul.u32 2654435761, %v313_v20  ;;  %v320_v37 = vadd.s32 %v309_v6, %v302_v17  ;;  %v321_v38 = vadd.s32 %v309_v6, %v303_v18  ;;  %s1258_s1 = smul.u32 2654435769, %s1257_s9 }
  0x81   : > { %v337_v39 = vmul.u32 2654435761, %v314_v23  ;;  %v338_v40 = vmul.u32 2654435761, %v315_v24  ;;  %v322_v41 = vadd.s32 %v309_v6, %v304_v21  ;;  %v323_v42 = vadd.s32 %v309_v6, %v305_v22  ;;  %s1548_s13 = sadd.s32 5, %s3914_s29 }
  0x82   : > { %v339_v43 = vmul.u32 2654435761, %v316_v27  ;;  %v340_v44 = vmul.u32 2654435761, %v317_v28  ;;  %v324_v45 = vadd.s32 %v309_v6, %v306_v25  ;;  %v325_v46 = vadd.s32 %v309_v6, %v307_v26  ;;  %s1549_s30 = smul.u32 2654435769, %s1548_s13 }
  0x83   : > { %v349_v47 = vmul.u32 2246822519, %v331_v29  ;;  %v350_v48 = vmul.u32 2246822519, %v332_v30  ;;  %v3919_v55 = vstv %s385_s4  ;;  %v3921_v56 = vstv %s676_s8  ;;  %s1839_s10 = smul.u32 2654435769, %s3914_s29 }
  0x84   : > { %v341_v49 = vmul.u32 2654435761, %v318_v33  ;;  %v342_v50 = vmul.u32 2654435761, %v319_v34  ;;  %8457 = vst [vmem:[#allocation24_spill] sm:$0xff] %v3921_v56  ;;  %s3129_s29 = sshll.u32 %s8456_s27, 7 }
  0x85   : > { %v343_v51 = vmul.u32 2654435761, %v320_v37  ;;  %v344_v52 = vmul.u32 2654435761, %v321_v38  ;;  %v3923_v59 = vxor.u32 %v349_v47, %v333_v31  ;;  %v3925_v60 = vxor.u32 %v350_v48, %v333_v31 }
  0x86   : > { %v345_v53 = vmul.u32 2654435761, %v322_v41  ;;  %v346_v54 = vmul.u32 2654435761, %v323_v42  ;;  %v3927_v61 = vxor.u32 %v349_v47, %v334_v32  ;;  %v3929_v62 = vxor.u32 %v350_v48, %v334_v32 }
  0x87   : > { %v347_v57 = vmul.u32 2654435761, %v324_v45  ;;  %v348_v58 = vmul.u32 2654435761, %v325_v46  ;;  %8458 = vst [vmem:[#allocation25_spill] sm:$0xff] %v3923_v59  ;;  %8459 = vst [vmem:[#allocation26_spill] sm:$0xff] %v3925_v60  ;;  %v3931_v63 = vxor.u32 %v349_v47, %v335_v35  ;;  %v3933_v0 = vxor.u32 %v350_v48, %v335_v35 }
  0x88   : > { %8460 = vst [vmem:[#allocation27_spill] sm:$0xff] %v3927_v61  ;;  %8461 = vst [vmem:[#allocation28_spill] sm:$0xff] %v3929_v62  ;;  %v3935_v1 = vxor.u32 %v349_v47, %v336_v36  ;;  %v3937_v2 = vxor.u32 %v350_v48, %v336_v36  ;;  %v3939_v3 = vxor.u32 %v349_v47, %v337_v39 }
  0x89   : > { %8462 = vst [vmem:[#allocation29_spill] sm:$0xff] %v3931_v63  ;;  %8463 = vst [vmem:[#allocation30_spill] sm:$0xff] %v3933_v0  ;;  %v3941_v4 = vxor.u32 %v350_v48, %v337_v39  ;;  %v3943_v5 = vxor.u32 %v349_v47, %v338_v40  ;;  %v3945_v6 = vxor.u32 %v350_v48, %v338_v40 }
  0x8a   : > { %8464 = vst [vmem:[#allocation31_spill] sm:$0xff] %v3935_v1  ;;  %8465 = vst [vmem:[#allocation32_spill] sm:$0xff] %v3937_v2  ;;  %v3947_v7 = vxor.u32 %v349_v47, %v339_v43  ;;  %v3949_v8 = vxor.u32 %v350_v48, %v339_v43  ;;  %v3951_v9 = vxor.u32 %v349_v47, %v340_v44 }
  0x8b   : > { %8466 = vst [vmem:[#allocation33_spill] sm:$0xff] %v3939_v3  ;;  %8467 = vst [vmem:[#allocation34_spill] sm:$0xff] %v3941_v4  ;;  %v3953_v10 = vxor.u32 %v350_v48, %v340_v44  ;;  %v3955_v11 = vxor.u32 %v349_v47, %v341_v49  ;;  %v3957_v12 = vxor.u32 %v350_v48, %v341_v49 }
  0x8c   : > { %8468 = vst [vmem:[#allocation35_spill] sm:$0xff] %v3943_v5  ;;  %8469 = vst [vmem:[#allocation36_spill] sm:$0xff] %v3945_v6  ;;  %v3959_v13 = vxor.u32 %v349_v47, %v342_v50  ;;  %v3961_v14 = vxor.u32 %v350_v48, %v342_v50  ;;  %v3963_v15 = vxor.u32 %v349_v47, %v343_v51 }
  0x8d   : > { %8470 = vst [vmem:[#allocation37_spill] sm:$0xff] %v3947_v7  ;;  %8471 = vst [vmem:[#allocation38_spill] sm:$0xff] %v3949_v8  ;;  %v3965_v16 = vxor.u32 %v350_v48, %v343_v51  ;;  %v3967_v17 = vxor.u32 %v349_v47, %v344_v52  ;;  %v3969_v18 = vxor.u32 %v350_v48, %v344_v52 }
  0x8e   : > { %8472 = vst [vmem:[#allocation39_spill] sm:$0xff] %v3951_v9  ;;  %8473 = vst [vmem:[#allocation40_spill] sm:$0xff] %v3953_v10  ;;  %v3971_v19 = vxor.u32 %v349_v47, %v345_v53  ;;  %v3973_v20 = vxor.u32 %v350_v48, %v345_v53  ;;  %v3975_v21 = vxor.u32 %v349_v47, %v346_v54 }
  0x8f   : > { %8474 = vst [vmem:[#allocation41_spill] sm:$0xff] %v3955_v11  ;;  %8475 = vst [vmem:[#allocation42_spill] sm:$0xff] %v3957_v12  ;;  %v3977_v22 = vxor.u32 %v350_v48, %v346_v54  ;;  %v3979_v23 = vxor.u32 %v349_v47, %v347_v57  ;;  %v3981_v24 = vxor.u32 %v350_v48, %v347_v57 }
  0x90   : > { %8476 = vst [vmem:[#allocation43_spill] sm:$0xff] %v3959_v13  ;;  %8477 = vst [vmem:[#allocation44_spill] sm:$0xff] %v3961_v14  ;;  %v3983_v25 = vxor.u32 %v349_v47, %v348_v58  ;;  %v3985_v26 = vxor.u32 %v350_v48, %v348_v58  ;;  %v3989_v27 = vadd.s32 %v3919_v55, %v3923_v59 }
  0x91   : > { %8478 = vst [vmem:[#allocation45_spill] sm:$0xff] %v3963_v15  ;;  %8479 = vst [vmem:[#allocation46_spill] sm:$0xff] %v3965_v16  ;;  %v3993_v28 = vadd.s32 %v3919_v55, %v3925_v60  ;;  %v3997_v29 = vadd.s32 %v3919_v55, %v3927_v61  ;;  %v4001_v30 = vadd.s32 %v3919_v55, %v3929_v62 }
  0x92   : > { %8480 = vst [vmem:[#allocation47_spill] sm:$0xff] %v3967_v17  ;;  %8481 = vst [vmem:[#allocation48_spill] sm:$0xff] %v3969_v18  ;;  %v4005_v31 = vadd.s32 %v3919_v55, %v3931_v63  ;;  %v4009_v32 = vadd.s32 %v3919_v55, %v3933_v0  ;;  %v4013_v33 = vadd.s32 %v3919_v55, %v3935_v1 }
  0x93   : > { %8482 = vst [vmem:[#allocation49_spill] sm:$0xff] %v3971_v19  ;;  %8483 = vst [vmem:[#allocation50_spill] sm:$0xff] %v3973_v20  ;;  %v4017_v34 = vadd.s32 %v3919_v55, %v3937_v2  ;;  %v4021_v35 = vadd.s32 %v3919_v55, %v3939_v3  ;;  %v4025_v36 = vadd.s32 %v3919_v55, %v3941_v4 }
  0x94   : > { %8484 = vst [vmem:[#allocation51_spill] sm:$0xff] %v3975_v21  ;;  %8485 = vst [vmem:[#allocation52_spill] sm:$0xff] %v3977_v22  ;;  %v4029_v37 = vadd.s32 %v3919_v55, %v3943_v5  ;;  %v4033_v38 = vadd.s32 %v3919_v55, %v3945_v6  ;;  %v4037_v39 = vadd.s32 %v3919_v55, %v3947_v7 }
  0x95   : > { %8486 = vst [vmem:[#allocation53_spill] sm:$0xff] %v3979_v23  ;;  %8487 = vst [vmem:[#allocation54_spill] sm:$0xff] %v3981_v24  ;;  %v4041_v40 = vadd.s32 %v3919_v55, %v3949_v8  ;;  %v4045_v41 = vadd.s32 %v3919_v55, %v3951_v9  ;;  %v4049_v42 = vadd.s32 %v3919_v55, %v3953_v10 }
  0x96   : > { %8488 = vst [vmem:[#allocation55_spill] sm:$0xff] %v3983_v25  ;;  %8489 = vst [vmem:[#allocation56_spill] sm:$0xff] %v3985_v26  ;;  %v4053_v43 = vadd.s32 %v3919_v55, %v3955_v11  ;;  %v4057_v44 = vadd.s32 %v3919_v55, %v3957_v12  ;;  %v4061_v45 = vadd.s32 %v3919_v55, %v3959_v13  ;;  %v431_v13 = vshrl.u32 %v4037_v39, 16 }
  0x97   : > { %v4065_v46 = vadd.s32 %v3919_v55, %v3961_v14  ;;  %v4069_v47 = vadd.s32 %v3919_v55, %v3963_v15  ;;  %v4073_v48 = vadd.s32 %v3919_v55, %v3965_v16  ;;  %v4077_v49 = vadd.s32 %v3919_v55, %v3967_v17 }
  0x98   : > { %v4081_v50 = vadd.s32 %v3919_v55, %v3969_v18  ;;  %v4085_v51 = vadd.s32 %v3919_v55, %v3971_v19  ;;  %v4089_v52 = vadd.s32 %v3919_v55, %v3973_v20  ;;  %v4093_v53 = vadd.s32 %v3919_v55, %v3975_v21 }
  0x99   : > { %8490 = vst [vmem:[#allocation57_spill] sm:$0xff] %v4077_v49  ;;  %v4097_v54 = vadd.s32 %v3919_v55, %v3977_v22  ;;  %v4101_v57 = vadd.s32 %v3919_v55, %v3979_v23  ;;  %v4105_v58 = vadd.s32 %v3919_v55, %v3981_v24  ;;  %v4109_v20 = vadd.s32 %v3919_v55, %v3983_v25 }
  0x9a   : > { %8491 = vst [vmem:[#allocation58_spill] sm:$0xff] %v4081_v50  ;;  %8492 = vst [vmem:[#allocation59_spill] sm:$0xff] %v4089_v52  ;;  %v4113_v21 = vadd.s32 %v3919_v55, %v3985_v26  ;;  %v419_v19 = vshrl.u32 %v3989_v27, 16  ;;  %v420_v22 = vshrl.u32 %v3993_v28, 16  ;;  %v421_v18 = vshrl.u32 %v3997_v29, 16 }
  0x9b   : > { %8493 = vst [vmem:[#allocation60_spill] sm:$0xff] %v4093_v53  ;;  %8494 = vst [vmem:[#allocation61_spill] sm:$0xff] %v4101_v57  ;;  %v422_v23 = vshrl.u32 %v4001_v30, 16  ;;  %v423_v17 = vshrl.u32 %v4005_v31, 16  ;;  %v424_v24 = vshrl.u32 %v4009_v32, 16  ;;  %v425_v16 = vshrl.u32 %v4013_v33, 16 }
  0x9c   : > { %8495 = vst [vmem:[#allocation62_spill] sm:$0xff] %v4105_v58  ;;  %8496 = vst [vmem:[#allocation63_spill] sm:$0xff] %v4113_v21  ;;  %v426_v25 = vshrl.u32 %v4017_v34, 16  ;;  %v427_v15 = vshrl.u32 %v4021_v35, 16  ;;  %v428_v55 = vshrl.u32 %v4025_v36, 16  ;;  %v429_v26 = vshrl.u32 %v4029_v37, 16 }
  0x9d   : > { %v430_v14 = vshrl.u32 %v4033_v38, 16  ;;  %v432_v12 = vshrl.u32 %v4041_v40, 16  ;;  %v433_v11 = vshrl.u32 %v4045_v41, 16  ;;  %v434_v10 = vshrl.u32 %v4049_v42, 16 }
  0x9e   : > { %v435_v9 = vshrl.u32 %v4053_v43, 16  ;;  %v436_v8 = vshrl.u32 %v4057_v44, 16  ;;  %v437_v7 = vshrl.u32 %v4061_v45, 16  ;;  %v438_v6 = vshrl.u32 %v4065_v46, 16 }
  0x9f   : > { %v439_v5 = vshrl.u32 %v4069_v47, 16  ;;  %v440_v4 = vshrl.u32 %v4073_v48, 16  ;;  %v441_v3 = vshrl.u32 %v4077_v49, 16  ;;  %v442_v2 = vshrl.u32 %v4081_v50, 16 }
  0xa0   : > { %v443_v1 = vshrl.u32 %v4085_v51, 16  ;;  %v444_v0 = vshrl.u32 %v4089_v52, 16  ;;  %v445_v63 = vshrl.u32 %v4093_v53, 16  ;;  %v446_v62 = vshrl.u32 %v4097_v54, 16 }
  0xa1   : > { %v447_v61 = vshrl.u32 %v4101_v57, 16  ;;  %v448_v60 = vshrl.u32 %v4105_v58, 16  ;;  %v449_v56 = vshrl.u32 %v4109_v20, 16  ;;  %v450_v59 = vshrl.u32 %v4113_v21, 16 }
  0xa2   : > { %v4148_v49 = vxor.u32 %v419_v19, %v3989_v27  ;;  %v4151_v50 = vxor.u32 %v420_v22, %v3993_v28  ;;  %v4154_v52 = vxor.u32 %v421_v18, %v3997_v29  ;;  %v4157_v53 = vxor.u32 %v422_v23, %v4001_v30 }
  0xa3   : > { %v4160_v57 = vxor.u32 %v423_v17, %v4005_v31  ;;  %v4163_v58 = vxor.u32 %v424_v24, %v4009_v32  ;;  %v4166_v21 = vxor.u32 %v425_v16, %v4013_v33  ;;  %v4169_v19 = vxor.u32 %v426_v25, %v4017_v34  ;;  %v8510_v32 = vld [vmem:[#allocation60_spill] sm:$0xff] }
  0xa4   : > { %v4172_v22 = vxor.u32 %v427_v15, %v4021_v35  ;;  %v4175_v18 = vxor.u32 %v428_v55, %v4025_v36  ;;  %v4178_v23 = vxor.u32 %v429_v26, %v4029_v37  ;;  %v4181_v17 = vxor.u32 %v430_v14, %v4033_v38  ;;  %v8511_v35 = vld [vmem:[#allocation61_spill] sm:$0xff]  ;;  %v8512_v36 = vld [vmem:[#allocation62_spill] sm:$0xff] }
  0xa5   : > { %8497 = vst [vmem:[#allocation64_spill] sm:$0xff] %v4166_v21  ;;  %8498 = vst [vmem:[#allocation65_spill] sm:$0xff] %v4169_v19  ;;  %v4184_v24 = vxor.u32 %v431_v13, %v4037_v39  ;;  %v4187_v16 = vxor.u32 %v432_v12, %v4041_v40  ;;  %v4190_v25 = vxor.u32 %v433_v11, %v4045_v41  ;;  %v8207_v33 = vmul.u32 2246822507, %v4160_v57  ;;  %v8513_v39 = vld [vmem:[#allocation63_spill] sm:$0xff] }
  0xa6   : > { %8499 = vst [vmem:[#allocation66_spill] sm:$0xff] %v4172_v22  ;;  %8500 = vst [vmem:[#allocation67_spill] sm:$0xff] %v4175_v18  ;;  %v4193_v15 = vxor.u32 %v434_v10, %v4049_v42  ;;  %v4196_v27 = vxor.u32 %v435_v9, %v4053_v43  ;;  %v4199_v26 = vxor.u32 %v436_v8, %v4057_v44  ;;  %v8507_v10 = vld [vmem:[#allocation57_spill] sm:$0xff]  ;;  %v8508_v9 = vld [vmem:[#allocation58_spill] sm:$0xff]  ;;  %v8203_v8 = vmul.u32 2246822507, %v4148_v49 }
  0xa7   : > { %8501 = vst [vmem:[#allocation68_spill] sm:$0xff] %v4178_v23  ;;  %8502 = vst [vmem:[#allocation69_spill] sm:$0xff] %v4181_v17  ;;  %v4202_v14 = vxor.u32 %v437_v7, %v4061_v45  ;;  %v4205_v13 = vxor.u32 %v438_v6, %v4065_v46  ;;  %v4208_v12 = vxor.u32 %v439_v5, %v4069_v47  ;;  %v8204_v7 = vmul.u32 2246822507, %v4151_v50  ;;  %v8509_v6 = vld [vmem:[#allocation59_spill] sm:$0xff]  ;;  %v8515_v43 = vld [vmem:[#allocation24_spill] sm:$0xff] }
  0xa8   : > { %8503 = vst [vmem:[#allocation70_spill] sm:$0xff] %v4184_v24  ;;  %8504 = vst [vmem:[#allocation71_spill] sm:$0xff] %v4187_v16  ;;  %v4211_v11 = vxor.u32 %v440_v4, %v4073_v48  ;;  %v4214_v28 = vxor.u32 %v441_v3, %v8507_v10  ;;  %v4217_v29 = vxor.u32 %v442_v2, %v8508_v9  ;;  %v8205_v5 = vmul.u32 2246822507, %v4154_v52  ;;  %v8517_v45 = vld [vmem:[#allocation26_spill] sm:$0xff]  ;;  %v8521_v48 = vld [vmem:[#allocation28_spill] sm:$0xff] }
  0xa9   : > { %8505 = vst [vmem:[#allocation72_spill] sm:$0xff] %v4190_v25  ;;  %8506 = vst [vmem:[#allocation73_spill] sm:$0xff] %v4193_v15  ;;  %v4222_v30 = vxor.u32 %v443_v1, %v4085_v51  ;;  %v4225_v31 = vxor.u32 %v444_v0, %v8509_v6  ;;  %v8206_v4 = vmul.u32 2246822507, %v4157_v53  ;;  %v4230_v3 = vxor.u32 %v445_v63, %v8510_v32 }
  0xaa   : > { %v4233_v2 = vxor.u32 %v446_v62, %v4097_v54  ;;  %v8208_v34 = vmul.u32 2246822507, %v4163_v58  ;;  %v4238_v1 = vxor.u32 %v447_v61, %v8511_v35  ;;  %v4241_v0 = vxor.u32 %v448_v60, %v8512_v36  ;;  %v8514_v60 = vld [vmem:[#allocation25_spill] sm:$0xff] }
  0xab   : > { %v8209_v37 = vmul.u32 2246822507, %v4166_v21  ;;  %v8210_v38 = vmul.u32 2246822507, %v4169_v19  ;;  %v4246_v63 = vxor.u32 %v449_v56, %v4109_v20  ;;  %v4249_v62 = vxor.u32 %v450_v59, %v8513_v39  ;;  %v8519_v20 = vld [vmem:[#allocation27_spill] sm:$0xff] }
  0xac   : > { %v8211_v40 = vmul.u32 2246822507, %v4172_v22  ;;  %v8212_v41 = vmul.u32 2246822507, %v4175_v18  ;;  %v4257_v44 = vadd.s32 %v8515_v43, %v8514_v60  ;;  %v4261_v46 = vadd.s32 %v8515_v43, %v8517_v45 }
  0xad   : > { %v8213_v61 = vmul.u32 2246822507, %v4178_v23  ;;  %v8214_v42 = vmul.u32 2246822507, %v4181_v17  ;;  %v4267_v47 = vadd.s32 %v8515_v43, %v8519_v20  ;;  %v4271_v51 = vadd.s32 %v8515_v43, %v8521_v48 }
  0xae   : > { %8516 = vst [vmem:[#allocation57_spill] sm:$0xff] %v4257_v44  ;;  %8518 = vst [vmem:[#allocation58_spill] sm:$0xff] %v4261_v46  ;;  %v8215_v56 = vmul.u32 2246822507, %v4184_v24  ;;  %v8217_v59 = vmul.u32 2246822507, %v4187_v16 }
  0xaf   : > { %8520 = vst [vmem:[#allocation59_spill] sm:$0xff] %v4267_v47  ;;  %8522 = vst [vmem:[#allocation60_spill] sm:$0xff] %v4271_v51  ;;  %v8222_v54 = vmul.u32 2246822507, %v4190_v25  ;;  %v515_v10 = vshrl.u32 %v8203_v8, 15  ;;  %v516_v9 = vshrl.u32 %v8204_v7, 15 }
  0xb0   : > { %v499_v6 = vmul.u32 2246822507, %v4196_v27  ;;  %v500_v32 = vmul.u32 2246822507, %v4199_v26  ;;  %v517_v35 = vshrl.u32 %v8205_v5, 15  ;;  %v518_v36 = vshrl.u32 %v8206_v4, 15 }
  0xb1   : > { %v501_v39 = vmul.u32 2246822507, %v4202_v14  ;;  %v502_v55 = vmul.u32 2246822507, %v4205_v13  ;;  %v519_v8 = vshrl.u32 %v8207_v33, 15  ;;  %v520_v7 = vshrl.u32 %v8208_v34, 15 }
  0xb2   : > { %v503_v27 = vmul.u32 2246822507, %v4208_v12  ;;  %v504_v26 = vmul.u32 2246822507, %v4211_v11  ;;  %v521_v5 = vshrl.u32 %v8209_v37, 15  ;;  %v522_v4 = vshrl.u32 %v8210_v38, 15 }
  0xb3   : > { %v505_v14 = vmul.u32 2246822507, %v4214_v28  ;;  %v506_v13 = vmul.u32 2246822507, %v4217_v29  ;;  %v523_v33 = vshrl.u32 %v8211_v40, 15  ;;  %v524_v34 = vshrl.u32 %v8212_v41, 15 }
  0xb4   : > { %v507_v12 = vmul.u32 2246822507, %v4222_v30  ;;  %v508_v11 = vmul.u32 2246822507, %v4225_v31  ;;  %v525_v37 = vshrl.u32 %v8213_v61, 15  ;;  %v526_v38 = vshrl.u32 %v8214_v42, 15 }
  0xb5   : > { %v509_v28 = vmul.u32 2246822507, %v4230_v3  ;;  %v510_v29 = vmul.u32 2246822507, %v4233_v2  ;;  %v527_v40 = vshrl.u32 %v8215_v56, 15  ;;  %v528_v41 = vshrl.u32 %v8217_v59, 15 }
  0xb6   : > { %v511_v30 = vmul.u32 2246822507, %v4238_v1  ;;  %v512_v31 = vmul.u32 2246822507, %v4241_v0  ;;  %v529_v61 = vshrl.u32 %v8222_v54, 15  ;;  %v531_v20 = vshrl.u32 %v499_v6, 15 }
  0xb7   : > { %v8523_v48 = vmul.u32 2246822507, %v4193_v15  ;;  %v513_v3 = vmul.u32 2246822507, %v4246_v63  ;;  %v532_v45 = vshrl.u32 %v500_v32, 15  ;;  %v533_v56 = vshrl.u32 %v501_v39, 15 }
  0xb8   : > { %v514_v2 = vmul.u32 2246822507, %v4249_v62  ;;  %v534_v60 = vshrl.u32 %v502_v55, 15  ;;  %v535_v51 = vshrl.u32 %v503_v27, 15  ;;  %v536_v59 = vshrl.u32 %v504_v26, 15 }
  0xb9   : > { %v530_v42 = vshrl.u32 %v8523_v48, 15  ;;  %v537_v47 = vshrl.u32 %v505_v14, 15  ;;  %v538_v1 = vshrl.u32 %v506_v13, 15  ;;  %v539_v46 = vshrl.u32 %v507_v12, 15 }
  0xba   : > { %v540_v0 = vshrl.u32 %v508_v11, 15  ;;  %v541_v44 = vshrl.u32 %v509_v28, 15  ;;  %v542_v43 = vshrl.u32 %v510_v29, 15  ;;  %v543_v54 = vshrl.u32 %v511_v30, 15 }
  0xbb   : > { %v544_v25 = vshrl.u32 %v512_v31, 15  ;;  %v545_v15 = vshrl.u32 %v513_v3, 15  ;;  %v546_v48 = vshrl.u32 %v514_v2, 15  ;;  %v8524_v63 = vmul.u32 2246822507, %v4148_v49 }
  0xbc   : > { %v8525_v62 = vmul.u32 2246822507, %v4151_v50  ;;  %v8526_v17 = vmul.u32 2246822507, %v4154_v52 }
  0xbd   : > { %v4325_v16 = vxor.u32 %v515_v10, %v8524_v63  ;;  %v8527_v18 = vmul.u32 2246822507, %v4157_v53  ;;  %v8528_v19 = vmul.u32 2246822507, %v4160_v57  ;;  %v8530_v63 = vld [vmem:[#allocation64_spill] sm:$0xff] }
  0xbe   : > { %v4329_v24 = vxor.u32 %v516_v9, %v8525_v62  ;;  %v4333_v23 = vxor.u32 %v517_v35, %v8526_v17  ;;  %v8529_v49 = vmul.u32 2246822507, %v4163_v58  ;;  %v8531_v50 = vmul.u32 2246822507, %v8530_v63  ;;  %v8532_v62 = vld [vmem:[#allocation65_spill] sm:$0xff]  ;;  %v8534_v35 = vld [vmem:[#allocation66_spill] sm:$0xff] }
  0xbf   : > { %v4337_v22 = vxor.u32 %v518_v36, %v8527_v18  ;;  %v4341_v21 = vxor.u32 %v519_v8, %v8528_v19  ;;  %v8533_v52 = vmul.u32 2246822507, %v8532_v62  ;;  %v8535_v53 = vmul.u32 2246822507, %v8534_v35  ;;  %v8536_v36 = vld [vmem:[#allocation67_spill] sm:$0xff]  ;;  %v8538_v8 = vld [vmem:[#allocation68_spill] sm:$0xff] }
  0xc0   : > { %v4345_v10 = vxor.u32 %v520_v7, %v8529_v49  ;;  %v4349_v9 = vxor.u32 %v521_v5, %v8531_v50  ;;  %v8537_v57 = vmul.u32 2246822507, %v8536_v36  ;;  %v8539_v58 = vmul.u32 2246822507, %v8538_v8  ;;  %v8540_v49 = vld [vmem:[#allocation69_spill] sm:$0xff]  ;;  %v8542_v50 = vld [vmem:[#allocation70_spill] sm:$0xff] }
  0xc1   : > { %v4353_v17 = vxor.u32 %v522_v4, %v8533_v52  ;;  %v4357_v18 = vxor.u32 %v523_v33, %v8535_v53  ;;  %v8541_v63 = vmul.u32 2246822507, %v8540_v49  ;;  %v8543_v62 = vmul.u32 2246822507, %v8542_v50  ;;  %v8544_v52 = vld [vmem:[#allocation71_spill] sm:$0xff]  ;;  %v8546_v53 = vld [vmem:[#allocation72_spill] sm:$0xff] }
  0xc2   : > { %v4361_v19 = vxor.u32 %v524_v34, %v8537_v57  ;;  %v4365_v7 = vxor.u32 %v525_v37, %v8539_v58  ;;  %v8545_v35 = vmul.u32 2246822507, %v8544_v52  ;;  %v8547_v36 = vmul.u32 2246822507, %v8546_v53  ;;  %v8548_v57 = vld [vmem:[#allocation73_spill] sm:$0xff] }
  0xc3   : > { %v4369_v5 = vxor.u32 %v526_v38, %v8541_v63  ;;  %v4373_v4 = vxor.u32 %v527_v40, %v8543_v62  ;;  %v8549_v8 = vmul.u32 2246822507, %v8548_v57  ;;  %v4387_v58 = vxor.u32 %v531_v20, %v499_v6 }
  0xc4   : > { %v4377_v33 = vxor.u32 %v528_v41, %v8545_v35  ;;  %v4381_v34 = vxor.u32 %v529_v61, %v8547_v36  ;;  %v4389_v38 = vxor.u32 %v532_v45, %v500_v32  ;;  %v4391_v49 = vxor.u32 %v533_v56, %v501_v39  ;;  %v8555_v32 = vld [vmem:[#allocation33_spill] sm:$0xff]  ;;  %v8568_v35 = vld [vmem:[#allocation40_spill] sm:$0xff] }
  0xc5   : > { %v4385_v37 = vxor.u32 %v530_v42, %v8549_v8  ;;  %v4393_v40 = vxor.u32 %v534_v60, %v502_v55  ;;  %v4395_v63 = vxor.u32 %v535_v51, %v503_v27  ;;  %v4397_v41 = vxor.u32 %v536_v59, %v504_v26  ;;  %v8554_v55 = vld [vmem:[#allocation32_spill] sm:$0xff]  ;;  %v8556_v27 = vld [vmem:[#allocation34_spill] sm:$0xff]  ;;  %v8572_v36 = vld [vmem:[#allocation41_spill] sm:$0xff] }
  0xc6   : > { %v4399_v50 = vxor.u32 %v537_v47, %v505_v14  ;;  %v4401_v61 = vxor.u32 %v538_v1, %v506_v13  ;;  %v4403_v62 = vxor.u32 %v539_v46, %v507_v12  ;;  %v4405_v42 = vxor.u32 %v540_v0, %v508_v11  ;;  %v8553_v47 = vld [vmem:[#allocation31_spill] sm:$0xff]  ;;  %v8558_v12 = vld [vmem:[#allocation36_spill] sm:$0xff]  ;;  %v8578_v8 = vld [vmem:[#allocation42_spill] sm:$0xff] }
  0xc7   : > { %v4407_v20 = vxor.u32 %v541_v44, %v509_v28  ;;  %v4409_v45 = vxor.u32 %v542_v43, %v510_v29  ;;  %v4411_v56 = vxor.u32 %v543_v54, %v511_v30  ;;  %v4413_v60 = vxor.u32 %v544_v25, %v512_v31  ;;  %v8550_v43 = vld [vmem:[#allocation29_spill] sm:$0xff]  ;;  %v8551_v44 = vld [vmem:[#allocation24_spill] sm:$0xff]  ;;  %v8552_v25 = vld [vmem:[#allocation30_spill] sm:$0xff] }
  0xc8   : > { %v4415_v51 = vxor.u32 %v545_v15, %v513_v3  ;;  %v4417_v59 = vxor.u32 %v546_v48, %v514_v2  ;;  %vm579_vm0 = vcmp.ge.u32.totalorder %v4325_v16, 429496730  ;;  %vm580_vm1 = vcmp.ge.u32.totalorder %v4329_v24, 429496730  ;;  %v8557_v14 = vld [vmem:[#allocation35_spill] sm:$0xff]  ;;  %v8559_v28 = vld [vmem:[#allocation37_spill] sm:$0xff] }
  0xc9   : > { %vm581_vm2 = vcmp.ge.u32.totalorder %v4333_v23, 429496730  ;;  %vm582_vm3 = vcmp.ge.u32.totalorder %v4337_v22, 429496730  ;;  %vm583_vm4 = vcmp.ge.u32.totalorder %v4341_v21, 429496730  ;;  %v4426_v46 = vadd.s32 %v8551_v44, %v8550_v43 }
  0xca   : > { %vm584_vm5 = vcmp.ge.u32.totalorder %v4345_v10, 429496730  ;;  %vm585_vm6 = vcmp.ge.u32.totalorder %v4349_v9, 429496730  ;;  %vm586_vm7 = vcmp.ge.u32.totalorder %v4353_v17, 429496730  ;;  %v4433_v15 = vadd.s32 %v8551_v44, %v8552_v25 }
  0xcb   : > { %vm587_vm8 = vcmp.ge.u32.totalorder %v4357_v18, 429496730  ;;  %vm588_vm9 = vcmp.ge.u32.totalorder %v4361_v19, 429496730  ;;  %v4440_v54 = vadd.s32 %v8551_v44, %v8553_v47  ;;  %v4447_v6 = vadd.s32 %v8551_v44, %v8554_v55  ;;  %v8560_v30 = vld [vmem:[#allocation38_spill] sm:$0xff]  ;;  %v8564_v48 = vld [vmem:[#allocation39_spill] sm:$0xff] }
  0xcc   : > { %v4454_v39 = vadd.s32 %v8551_v44, %v8555_v32  ;;  %v4461_v26 = vadd.s32 %v8551_v44, %v8556_v27  ;;  %v4468_v13 = vadd.s32 %v8551_v44, %v8557_v14  ;;  %v4475_v11 = vadd.s32 %v8551_v44, %v8558_v12 }
  0xcd   : > { %vm605_vm14 = vcmp.ge.u32.totalorder %v4407_v20, 429496730  ;;  %vm606_vm15 = vcmp.ge.u32.totalorder %v4409_v45, 429496730  ;;  %vm607_vm10 = vcmp.ge.u32.totalorder %v4411_v56, 429496730  ;;  %v4482_v29 = vadd.s32 %v8551_v44, %v8559_v28 }
  0xce   : > { %vm608_vm11 = vcmp.ge.u32.totalorder %v4413_v60, 429496730  ;;  %vm609_vm12 = vcmp.ge.u32.totalorder %v4415_v51, 429496730  ;;  %vm610_vm13 = vcmp.ge.u32.totalorder %v4417_v59, 429496730  ;;  %v4489_v31 = vadd.s32 %v8551_v44, %v8560_v30 }
  0xcf   : > { %v8233_v3 = vmov 0.0   ;;  %v4508_v52 = vadd.s32 %v8551_v44, %v8564_v48  ;;  %v4527_v53 = vadd.s32 %v8551_v44, %v8568_v35  ;;  %v4546_v57 = vadd.s32 %v8551_v44, %v8572_v36  ;;  %v8585_v36 = vld [vmem:[#allocation43_spill] sm:$0xff]  ;;  %v8622_v60 = vld [vmem:[#allocation50_spill] sm:$0xff]  ;;  %v8626_v51 = vld [vmem:[#allocation52_spill] sm:$0xff] }
  0xd0   : > { %v4494_v2 = vsel %vm579_vm0, 0.24691358, %v8233_v3  ;;  %v4499_v1 = vsel %vm580_vm1, 0.24691358, %v8233_v3  ;;  %v4504_v0 = vsel %vm581_vm2, 0.24691358, %v8233_v3  ;;  %v4565_v35 = vadd.s32 %v8551_v44, %v8578_v8 }
  0xd1   : > { %8561 = vst [vmem:[#allocation61_spill] sm:$0xff] %v4494_v2  ;;  %8562 = vst [vmem:[#allocation62_spill] sm:$0xff] %v4499_v1  ;;  %v4513_v16 = vsel %vm582_vm3, 0.24691358, %v8233_v3  ;;  %v4518_v24 = vsel %vm583_vm4, 0.24691358, %v8233_v3  ;;  %v4584_v48 = vadd.s32 %v8551_v44, %v8585_v36 }
  0xd2   : > { %8563 = vst [vmem:[#allocation63_spill] sm:$0xff] %v4504_v0  ;;  %8565 = vst [vmem:[#allocation64_spill] sm:$0xff] %v4513_v16  ;;  %v4523_v23 = vsel %vm584_vm5, 0.24691358, %v8233_v3  ;;  %v4532_v22 = vsel %vm585_vm6, 0.24691358, %v8233_v3 }
  0xd3   : > { %8566 = vst [vmem:[#allocation65_spill] sm:$0xff] %v4518_v24  ;;  %8567 = vst [vmem:[#allocation66_spill] sm:$0xff] %v4523_v23  ;;  %v4537_v21 = vsel %vm586_vm7, 0.24691358, %v8233_v3  ;;  %v4542_v10 = vsel %vm587_vm8, 0.24691358, %v8233_v3 }
  0xd4   : > { %8569 = vst [vmem:[#allocation67_spill] sm:$0xff] %v4532_v22  ;;  %8570 = vst [vmem:[#allocation68_spill] sm:$0xff] %v4537_v21  ;;  %v4551_v9 = vsel %vm588_vm9, 0.24691358, %v8233_v3  ;;  %vm8574_vm0 = vcmp.ge.u32.totalorder %v4365_v7, 429496730 }
  0xd5   : > { %8571 = vst [vmem:[#allocation69_spill] sm:$0xff] %v4542_v10  ;;  %8573 = vst [vmem:[#allocation70_spill] sm:$0xff] %v4551_v9  ;;  %v4556_v17 = vsel %vm8574_vm0, 0.24691358, %v8233_v3  ;;  %vm8576_vm1 = vcmp.ge.u32.totalorder %v4369_v5, 429496730 }
  0xd6   : > { %8575 = vst [vmem:[#allocation71_spill] sm:$0xff] %v4556_v17  ;;  %v4561_v18 = vsel %vm8576_vm1, 0.24691358, %v8233_v3  ;;  %vm8579_vm2 = vcmp.ge.u32.totalorder %v4373_v4, 429496730  ;;  %v8592_v8 = vld [vmem:[#allocation44_spill] sm:$0xff] }
  0xd7   : > { %8577 = vst [vmem:[#allocation72_spill] sm:$0xff] %v4561_v18  ;;  %v4570_v19 = vsel %vm8579_vm2, 0.24691358, %v8233_v3  ;;  %vm8581_vm3 = vcmp.ge.u32.totalorder %v4377_v33, 429496730  ;;  %v4603_v30 = vadd.s32 %v8551_v44, %v8592_v8  ;;  %v8599_v36 = vld [vmem:[#allocation45_spill] sm:$0xff] }
  0xd8   : > { %8580 = vst [vmem:[#allocation73_spill] sm:$0xff] %v4570_v19  ;;  %v4575_v7 = vsel %vm8581_vm3, 0.24691358, %v8233_v3  ;;  %vm8583_vm4 = vcmp.ge.u32.totalorder %v4381_v34, 429496730  ;;  %v8606_v8 = vld [vmem:[#allocation46_spill] sm:$0xff] }
  0xd9   : > { %8582 = vst [vmem:[#allocation24_spill] sm:$0xff] %v4575_v7  ;;  %v4580_v5 = vsel %vm8583_vm4, 0.24691358, %v8233_v3  ;;  %vm8586_vm5 = vcmp.ge.u32.totalorder %v4385_v37, 429496730  ;;  %v716_v7 = vshrl.u32 %v4440_v54, 16 }
  0xda   : > { %8584 = vst [vmem:[#allocation74_spill] sm:$0xff] %v4580_v5  ;;  %v4589_v4 = vsel %vm8586_vm5, 0.24691358, %v8233_v3  ;;  %vm8588_vm6 = vcmp.ge.u32.totalorder %v4387_v58, 429496730  ;;  %v714_v5 = vshrl.u32 %v4426_v46, 16 }
  0xdb   : > { %8587 = vst [vmem:[#allocation75_spill] sm:$0xff] %v4589_v4  ;;  %v4594_v33 = vsel %vm8588_vm6, 0.24691358, %v8233_v3  ;;  %vm8590_vm7 = vcmp.ge.u32.totalorder %v4389_v38, 429496730  ;;  %v718_v19 = vshrl.u32 %v4454_v39, 16 }
  0xdc   : > { %8589 = vst [vmem:[#allocation76_spill] sm:$0xff] %v4594_v33  ;;  %v4599_v34 = vsel %vm8590_vm7, 0.24691358, %v8233_v3  ;;  %vm8593_vm8 = vcmp.ge.u32.totalorder %v4391_v49, 429496730  ;;  %v721_v18 = vshrl.u32 %v4475_v11, 16 }
  0xdd   : > { %8591 = vst [vmem:[#allocation77_spill] sm:$0xff] %v4599_v34  ;;  %v4608_v37 = vsel %vm8593_vm8, 0.24691358, %v8233_v3  ;;  %vm8595_vm9 = vcmp.ge.u32.totalorder %v4393_v40, 429496730  ;;  %v4622_v34 = vadd.s32 %v8551_v44, %v8599_v36  ;;  %v8612_v36 = vld [vmem:[#allocation47_spill] sm:$0xff] }
  0xde   : > { %8594 = vst [vmem:[#allocation78_spill] sm:$0xff] %v4608_v37  ;;  %v4613_v58 = vsel %vm8595_vm9, 0.24691358, %v8233_v3  ;;  %vm8597_vm0 = vcmp.ge.u32.totalorder %v4395_v63, 429496730  ;;  %v8636_v37 = vld [vmem:[#allocation59_spill] sm:$0xff] }
  0xdf   : > { %8596 = vst [vmem:[#allocation79_spill] sm:$0xff] %v4613_v58  ;;  %v4618_v38 = vsel %vm8597_vm0, 0.24691358, %v8233_v3  ;;  %vm8600_vm1 = vcmp.ge.u32.totalorder %v4397_v41, 429496730  ;;  %v712_v33 = vshrl.u32 %v8636_v37, 16 }
  0xe0   : > { %8598 = vst [vmem:[#allocation80_spill] sm:$0xff] %v4618_v38  ;;  %v4627_v49 = vsel %vm8600_vm1, 0.24691358, %v8233_v3  ;;  %vm8602_vm2 = vcmp.ge.u32.totalorder %v4399_v50, 429496730  ;;  %v4641_v38 = vadd.s32 %v8551_v44, %v8606_v8  ;;  %v8617_v8 = vld [vmem:[#allocation48_spill] sm:$0xff] }
  0xe1   : > { %8601 = vst [vmem:[#allocation81_spill] sm:$0xff] %v4627_v49  ;;  %v4632_v40 = vsel %vm8602_vm2, 0.24691358, %v8233_v3  ;;  %vm8604_vm3 = vcmp.ge.u32.totalorder %v4401_v61, 429496730  ;;  %v722_v17 = vshrl.u32 %v4482_v29, 16 }
  0xe2   : > { %8603 = vst [vmem:[#allocation82_spill] sm:$0xff] %v4632_v40  ;;  %v4637_v63 = vsel %vm8604_vm3, 0.24691358, %v8233_v3  ;;  %vm8607_vm4 = vcmp.ge.u32.totalorder %v4403_v62, 429496730  ;;  %v8634_v40 = vld [vmem:[#allocation57_spill] sm:$0xff] }
  0xe3   : > { %8605 = vst [vmem:[#allocation83_spill] sm:$0xff] %v4637_v63  ;;  %v4646_v41 = vsel %vm8607_vm4, 0.24691358, %v8233_v3  ;;  %vm8609_vm5 = vcmp.ge.u32.totalorder %v4405_v42, 429496730  ;;  %v4660_v63 = vadd.s32 %v8551_v44, %v8612_v36  ;;  %v8620_v36 = vld [vmem:[#allocation49_spill] sm:$0xff] }
  0xe4   : > { %8608 = vst [vmem:[#allocation84_spill] sm:$0xff] %v4646_v41  ;;  %v4651_v50 = vsel %vm8609_vm5, 0.24691358, %v8233_v3  ;;  %v4656_v61 = vsel %vm605_vm14, 0.24691358, %v8233_v3  ;;  %v8632_v41 = vld [vmem:[#allocation56_spill] sm:$0xff] }
  0xe5   : > { %8610 = vst [vmem:[#allocation85_spill] sm:$0xff] %v4651_v50  ;;  %8611 = vst [vmem:[#allocation86_spill] sm:$0xff] %v4656_v61  ;;  %v4665_v62 = vsel %vm606_vm15, 0.24691358, %v8233_v3  ;;  %v4670_v42 = vsel %vm607_vm10, 0.24691358, %v8233_v3  ;;  %v4679_v61 = vadd.s32 %v8551_v44, %v8617_v8 }
  0xe6   : > { %8613 = vst [vmem:[#allocation87_spill] sm:$0xff] %v4660_v63  ;;  %8614 = vst [vmem:[#allocation88_spill] sm:$0xff] %v4665_v62  ;;  %v4675_v20 = vsel %vm608_vm11, 0.24691358, %v8233_v3  ;;  %v4684_v45 = vsel %vm609_vm12, 0.24691358, %v8233_v3 }
  0xe7   : > { %8615 = vst [vmem:[#allocation89_spill] sm:$0xff] %v4670_v42  ;;  %8616 = vst [vmem:[#allocation90_spill] sm:$0xff] %v4675_v20  ;;  %v4689_v56 = vsel %vm610_vm13, 0.24691358, %v8233_v3  ;;  %v4693_v42 = vadd.s32 %v8551_v44, %v8620_v36  ;;  %v4697_v20 = vadd.s32 %v8551_v44, %v8622_v60  ;;  %v8624_v8 = vld [vmem:[#allocation51_spill] sm:$0xff]  ;;  %v8627_v50 = vld [vmem:[#allocation53_spill] sm:$0xff] }
  0xe8   : > { %8618 = vst [vmem:[#allocation91_spill] sm:$0xff] %v4684_v45  ;;  %8619 = vst [vmem:[#allocation92_spill] sm:$0xff] %v4689_v56  ;;  %v4701_v62 = vadd.s32 %v8551_v44, %v8624_v8  ;;  %v4705_v45 = vadd.s32 %v8551_v44, %v8626_v51  ;;  %v4709_v59 = vadd.s32 %v8551_v44, %v8627_v50  ;;  %v8629_v3 = vld [vmem:[#allocation54_spill] sm:$0xff]  ;;  %v8630_v56 = vld [vmem:[#allocation55_spill] sm:$0xff]  ;;  %v710_v49 = vshrl.u32 %v8634_v40, 16 }
  0xe9   : > { %8621 = vst [vmem:[#allocation93_spill] sm:$0xff] %v4693_v42  ;;  %8623 = vst [vmem:[#allocation94_spill] sm:$0xff] %v4697_v20  ;;  %v4713_v36 = vadd.s32 %v8551_v44, %v8629_v3  ;;  %v4717_v60 = vadd.s32 %v8551_v44, %v8630_v56  ;;  %v4721_v8 = vadd.s32 %v8551_v44, %v8632_v41  ;;  %v8635_v51 = vld [vmem:[#allocation58_spill] sm:$0xff]  ;;  %v8637_v50 = vld [vmem:[#allocation60_spill] sm:$0xff]  ;;  %v715_v3 = vshrl.u32 %v4433_v15, 16 }
  0xea   : > { %8625 = vst [vmem:[#allocation95_spill] sm:$0xff] %v4701_v62  ;;  %8628 = vst [vmem:[#allocation96_spill] sm:$0xff] %v4709_v59  ;;  %v711_v58 = vshrl.u32 %v8635_v51, 16  ;;  %v713_v4 = vshrl.u32 %v8637_v50, 16  ;;  %v717_v56 = vshrl.u32 %v4447_v6, 16  ;;  %v719_v44 = vshrl.u32 %v4461_v26, 16 }
  0xeb   : > { %8631 = vst [vmem:[#allocation97_spill] sm:$0xff] %v4717_v60  ;;  %8633 = vst [vmem:[#allocation98_spill] sm:$0xff] %v4721_v8  ;;  %v720_v41 = vshrl.u32 %v4468_v13, 16  ;;  %v723_v9 = vshrl.u32 %v4489_v31, 16  ;;  %v724_v10 = vshrl.u32 %v4508_v52, 16  ;;  %v725_v21 = vshrl.u32 %v4527_v53, 16 }
  0xec   : > { %v726_v22 = vshrl.u32 %v4546_v57, 16  ;;  %v727_v23 = vshrl.u32 %v4565_v35, 16  ;;  %v728_v24 = vshrl.u32 %v4584_v48, 16  ;;  %v729_v16 = vshrl.u32 %v4603_v30, 16 }
  0xed   : > { %v730_v0 = vshrl.u32 %v4622_v34, 16  ;;  %v731_v1 = vshrl.u32 %v4641_v38, 16  ;;  %v732_v2 = vshrl.u32 %v4660_v63, 16  ;;  %v733_v28 = vshrl.u32 %v4679_v61, 16 }
  0xee   : > { %v734_v12 = vshrl.u32 %v4693_v42, 16  ;;  %v735_v14 = vshrl.u32 %v4697_v20, 16  ;;  %v736_v27 = vshrl.u32 %v4701_v62, 16  ;;  %v737_v32 = vshrl.u32 %v4705_v45, 16 }
  0xef   : > { %v738_v55 = vshrl.u32 %v4709_v59, 16  ;;  %v739_v47 = vshrl.u32 %v4713_v36, 16  ;;  %v740_v25 = vshrl.u32 %v4717_v60, 16  ;;  %v741_v43 = vshrl.u32 %v4721_v8, 16 }
  0xf0   : > { %v4756_v63 = vxor.u32 %v710_v49, %v8634_v40  ;;  %v4759_v42 = vxor.u32 %v711_v58, %v8635_v51  ;;  %v4762_v20 = vxor.u32 %v712_v33, %v8636_v37  ;;  %v4765_v62 = vxor.u32 %v713_v4, %v8637_v50  ;;  %v8659_v50 = vld [vmem:[#allocation26_spill] sm:$0xff] }
  0xf1   : > { %v4768_v59 = vxor.u32 %v714_v5, %v4426_v46  ;;  %v4771_v60 = vxor.u32 %v715_v3, %v4433_v15  ;;  %v4774_v8 = vxor.u32 %v716_v7, %v4440_v54  ;;  %v4777_v49 = vxor.u32 %v717_v56, %v4447_v6 }
  0xf2   : > { %v4780_v58 = vxor.u32 %v718_v19, %v4454_v39  ;;  %v4783_v33 = vxor.u32 %v719_v44, %v4461_v26  ;;  %v4787_v4 = vxor.u32 %v720_v41, %v4468_v13  ;;  %v4790_v46 = vxor.u32 %v721_v18, %v4475_v11 }
  0xf3   : > { %8638 = vst [vmem:[#allocation57_spill] sm:$0xff] %v4774_v8  ;;  %8639 = vst [vmem:[#allocation58_spill] sm:$0xff] %v4777_v49  ;;  %v4793_v15 = vxor.u32 %v722_v17, %v4482_v29  ;;  %v4796_v54 = vxor.u32 %v723_v9, %v4489_v31  ;;  %v4799_v6 = vxor.u32 %v724_v10, %v4508_v52  ;;  %v8648_v52 = vld [vmem:[#allocation87_spill] sm:$0xff]  ;;  %v8244_v10 = vmul.u32 2246822507, %v4768_v59 }
  0xf4   : > { %8640 = vst [vmem:[#allocation59_spill] sm:$0xff] %v4780_v58  ;;  %8641 = vst [vmem:[#allocation60_spill] sm:$0xff] %v4783_v33  ;;  %v4802_v39 = vxor.u32 %v725_v21, %v4527_v53  ;;  %v4805_v26 = vxor.u32 %v726_v22, %v4546_v57  ;;  %v4808_v13 = vxor.u32 %v727_v23, %v4565_v35  ;;  %v8253_v35 = vmul.u32 2246822507, %v4756_v63 }
  0xf5   : > { %8642 = vst [vmem:[#allocation99_spill] sm:$0xff] %v4787_v4  ;;  %8643 = vst [vmem:[#allocation100_spill] sm:$0xff] %v4790_v46  ;;  %v4812_v11 = vxor.u32 %v728_v24, %v4584_v48  ;;  %v4815_v29 = vxor.u32 %v729_v16, %v4603_v30  ;;  %v4818_v31 = vxor.u32 %v730_v0, %v4622_v34  ;;  %v8252_v48 = vmul.u32 2246822507, %v4759_v42  ;;  %v8649_v24 = vld [vmem:[#allocation93_spill] sm:$0xff]  ;;  %v8650_v16 = vld [vmem:[#allocation94_spill] sm:$0xff] }
  0xf6   : > { %8644 = vst [vmem:[#allocation101_spill] sm:$0xff] %v4793_v15  ;;  %8645 = vst [vmem:[#allocation102_spill] sm:$0xff] %v4796_v54  ;;  %v4821_v3 = vxor.u32 %v731_v1, %v4641_v38  ;;  %v4824_v53 = vxor.u32 %v732_v2, %v8648_v52  ;;  %v4827_v23 = vxor.u32 %v733_v28, %v4679_v61  ;;  %v8242_v1 = vmul.u32 2246822507, %v4762_v20  ;;  %v8651_v2 = vld [vmem:[#allocation95_spill] sm:$0xff]  ;;  %v8655_v34 = vld [vmem:[#allocation98_spill] sm:$0xff] }
  0xf7   : > { %8646 = vst [vmem:[#allocation103_spill] sm:$0xff] %v4799_v6  ;;  %8647 = vst [vmem:[#allocation104_spill] sm:$0xff] %v4802_v39  ;;  %v4832_v30 = vxor.u32 %v734_v12, %v8649_v24  ;;  %v4835_v0 = vxor.u32 %v735_v14, %v8650_v16  ;;  %v8243_v22 = vmul.u32 2246822507, %v4765_v62  ;;  %v4840_v21 = vxor.u32 %v736_v27, %v8651_v2  ;;  %v8652_v12 = vld [vmem:[#allocation96_spill] sm:$0xff]  ;;  %v8654_v27 = vld [vmem:[#allocation97_spill] sm:$0xff] }
  0xf8   : > { %v4843_v28 = vxor.u32 %v737_v32, %v4705_v45  ;;  %v8245_v57 = vmul.u32 2246822507, %v4771_v60  ;;  %v4848_v9 = vxor.u32 %v738_v55, %v8652_v12  ;;  %v8246_v14 = vmul.u32 2246822507, %v4774_v8 }
  0xf9   : > { %v8247_v17 = vmul.u32 2246822507, %v4777_v49  ;;  %v4852_v18 = vstv %s967_s0  ;;  %v4855_v19 = vxor.u32 %v739_v47, %v4713_v36  ;;  %v4858_v7 = vxor.u32 %v740_v25, %v8654_v27  ;;  %v8657_v36 = vld [vmem:[#allocation25_spill] sm:$0xff] }
  0xfa   : > { %8653 = vst [vmem:[#allocation87_spill] sm:$0xff] %v4852_v18  ;;  %v8248_v32 = vmul.u32 2246822507, %v4780_v58  ;;  %v8249_v5 = vmul.u32 2246822507, %v4783_v33  ;;  %v4863_v37 = vxor.u32 %v741_v43, %v8655_v34  ;;  %v4867_v40 = vstv %s1258_s1 }
  0xfb   : > { %v8250_v55 = vmul.u32 2246822507, %v4787_v4  ;;  %v8251_v38 = vmul.u32 2246822507, %v4790_v46  ;;  %8656 = vst [vmem:[#allocation93_spill] sm:$0xff] %v4867_v40  ;;  %v4873_v25 = vadd.s32 %v4852_v18, %v8657_v36  ;;  %v4877_v61 = vadd.s32 %v4852_v18, %v8659_v50 }
  0xfc   : > { %v8254_v41 = vmul.u32 2246822507, %v4793_v15  ;;  %v8256_v47 = vmul.u32 2246822507, %v4796_v54  ;;  %v806_v56 = vshrl.u32 %v8253_v35, 15  ;;  %v807_v51 = vshrl.u32 %v8252_v48, 15 }
  0xfd   : > { %8658 = vst [vmem:[#allocation94_spill] sm:$0xff] %v4873_v25  ;;  %8660 = vst [vmem:[#allocation95_spill] sm:$0xff] %v4877_v61  ;;  %v8261_v43 = vmul.u32 2246822507, %v4799_v6  ;;  %v8264_v45 = vmul.u32 2246822507, %v4802_v39 }
  0xfe   : > { %v790_v44 = vmul.u32 2246822507, %v4805_v26  ;;  %v791_v52 = vmul.u32 2246822507, %v4808_v13  ;;  %v808_v24 = vshrl.u32 %v8242_v1, 15  ;;  %v809_v16 = vshrl.u32 %v8243_v22, 15 }
  0xff   : > { %v792_v2 = vmul.u32 2246822507, %v4812_v11  ;;  %v793_v12 = vmul.u32 2246822507, %v4815_v29  ;;  %v810_v27 = vshrl.u32 %v8244_v10, 15  ;;  %v811_v34 = vshrl.u32 %v8245_v57, 15 }
 0x100   : > { %v794_v26 = vmul.u32 2246822507, %v4818_v31  ;;  %v795_v13 = vmul.u32 2246822507, %v4821_v3  ;;  %v812_v1 = vshrl.u32 %v8246_v14, 15  ;;  %v813_v22 = vshrl.u32 %v8247_v17, 15 }
 0x101   : > { %v796_v11 = vmul.u32 2246822507, %v4824_v53  ;;  %v797_v29 = vmul.u32 2246822507, %v4827_v23  ;;  %v814_v10 = vshrl.u32 %v8248_v32, 15  ;;  %v815_v57 = vshrl.u32 %v8249_v5, 15 }
 0x102   : > { %v798_v31 = vmul.u32 2246822507, %v4832_v30  ;;  %v799_v3 = vmul.u32 2246822507, %v4835_v0  ;;  %v816_v14 = vshrl.u32 %v8250_v55, 15  ;;  %v817_v17 = vshrl.u32 %v8251_v38, 15 }
 0x103   : > { %v800_v53 = vmul.u32 2246822507, %v4840_v21  ;;  %v801_v23 = vmul.u32 2246822507, %v4843_v28  ;;  %v818_v32 = vshrl.u32 %v8254_v41, 15  ;;  %v819_v5 = vshrl.u32 %v8256_v47, 15 }
 0x104   : > { %v802_v30 = vmul.u32 2246822507, %v4848_v9  ;;  %v803_v0 = vmul.u32 2246822507, %v4855_v19  ;;  %v820_v55 = vshrl.u32 %v8261_v43, 15  ;;  %v821_v38 = vshrl.u32 %v8264_v45, 15 }
 0x105   : > { %v804_v21 = vmul.u32 2246822507, %v4858_v7  ;;  %v805_v28 = vmul.u32 2246822507, %v4863_v37  ;;  %v822_v48 = vshrl.u32 %v790_v44, 15  ;;  %v823_v35 = vshrl.u32 %v791_v52, 15 }
 0x106   : > { %v824_v41 = vshrl.u32 %v792_v2, 15  ;;  %v825_v50 = vshrl.u32 %v793_v12, 15  ;;  %v826_v40 = vshrl.u32 %v794_v26, 15  ;;  %v827_v47 = vshrl.u32 %v795_v13, 15 }
 0x107   : > { %v828_v36 = vshrl.u32 %v796_v11, 15  ;;  %v829_v9 = vshrl.u32 %v797_v29, 15  ;;  %v830_v61 = vshrl.u32 %v798_v31, 15  ;;  %v831_v19 = vshrl.u32 %v799_v3, 15 }
 0x108   : > { %v832_v25 = vshrl.u32 %v800_v53, 15  ;;  %v833_v18 = vshrl.u32 %v801_v23, 15  ;;  %v834_v43 = vshrl.u32 %v802_v30, 15  ;;  %v835_v6 = vshrl.u32 %v803_v0, 15 }
 0x109   : > { %v836_v39 = vshrl.u32 %v804_v21, 15  ;;  %v837_v45 = vshrl.u32 %v805_v28, 15  ;;  %v8661_v7 = vmul.u32 2246822507, %v4756_v63  ;;  %v8662_v37 = vmul.u32 2246822507, %v4759_v42 }
 0x10a   : > { %v8663_v46 = vmul.u32 2246822507, %v4762_v20  ;;  %v8664_v33 = vmul.u32 2246822507, %v4765_v62 }
 0x10b   : > { %v4931_v54 = vxor.u32 %v806_v56, %v8661_v7  ;;  %v4935_v15 = vxor.u32 %v807_v51, %v8662_v37  ;;  %v8665_v49 = vmul.u32 2246822507, %v4768_v59  ;;  %v8666_v63 = vmul.u32 2246822507, %v4771_v60  ;;  %v8667_v7 = vld [vmem:[#allocation57_spill] sm:$0xff]  ;;  %v8669_v37 = vld [vmem:[#allocation58_spill] sm:$0xff] }
 0x10c   : > { %v4939_v4 = vxor.u32 %v808_v24, %v8663_v46  ;;  %v4943_v58 = vxor.u32 %v809_v16, %v8664_v33  ;;  %v8668_v42 = vmul.u32 2246822507, %v8667_v7  ;;  %v8670_v20 = vmul.u32 2246822507, %v8669_v37  ;;  %v8671_v24 = vld [vmem:[#allocation59_spill] sm:$0xff]  ;;  %v8673_v16 = vld [vmem:[#allocation60_spill] sm:$0xff] }
 0x10d   : > { %v4947_v8 = vxor.u32 %v810_v27, %v8665_v49  ;;  %v4951_v56 = vxor.u32 %v811_v34, %v8666_v63  ;;  %v8672_v62 = vmul.u32 2246822507, %v8671_v24  ;;  %v8674_v59 = vmul.u32 2246822507, %v8673_v16  ;;  %v8675_v27 = vld [vmem:[#allocation99_spill] sm:$0xff]  ;;  %v8677_v63 = vld [vmem:[#allocation100_spill] sm:$0xff] }
 0x10e   : > { %v4955_v51 = vxor.u32 %v812_v1, %v8668_v42  ;;  %v4959_v46 = vxor.u32 %v813_v22, %v8670_v20  ;;  %v8676_v60 = vmul.u32 2246822507, %v8675_v27  ;;  %v8678_v7 = vmul.u32 2246822507, %v8677_v63  ;;  %v8679_v42 = vld [vmem:[#allocation101_spill] sm:$0xff]  ;;  %v8681_v20 = vld [vmem:[#allocation102_spill] sm:$0xff] }
 0x10f   : > { %v4963_v33 = vxor.u32 %v814_v10, %v8672_v62  ;;  %v4967_v49 = vxor.u32 %v815_v57, %v8674_v59  ;;  %v8680_v37 = vmul.u32 2246822507, %v8679_v42  ;;  %v8682_v24 = vmul.u32 2246822507, %v8681_v20  ;;  %v8683_v62 = vld [vmem:[#allocation103_spill] sm:$0xff]  ;;  %v8685_v59 = vld [vmem:[#allocation104_spill] sm:$0xff] }
 0x110   : > { %v4971_v34 = vxor.u32 %v816_v14, %v8676_v60  ;;  %v4975_v1 = vxor.u32 %v817_v17, %v8678_v7  ;;  %v8684_v16 = vmul.u32 2246822507, %v8683_v62  ;;  %v8686_v27 = vmul.u32 2246822507, %v8685_v59  ;;  %v8700_v62 = vld [vmem:[#allocation61_spill] sm:$0xff]  ;;  %v8702_v59 = vld [vmem:[#allocation62_spill] sm:$0xff] }
 0x111   : > { %v4979_v22 = vxor.u32 %v818_v32, %v8680_v37  ;;  %v4983_v10 = vxor.u32 %v819_v5, %v8682_v24  ;;  %v4993_v60 = vxor.u32 %v822_v48, %v790_v44  ;;  %v4995_v17 = vxor.u32 %v823_v35, %v791_v52  ;;  %v8692_v52 = vld [vmem:[#allocation31_spill] sm:$0xff] }
 0x112   : > { %v4987_v57 = vxor.u32 %v820_v55, %v8684_v16  ;;  %v4991_v14 = vxor.u32 %v821_v38, %v8686_v27  ;;  %v4997_v63 = vxor.u32 %v824_v41, %v792_v2  ;;  %v4999_v32 = vxor.u32 %v825_v50, %v793_v12  ;;  %v8693_v12 = vld [vmem:[#allocation32_spill] sm:$0xff] }
 0x113   : > { %v5001_v7 = vxor.u32 %v826_v40, %v794_v26  ;;  %v5003_v5 = vxor.u32 %v827_v47, %v795_v13  ;;  %v5005_v42 = vxor.u32 %v828_v36, %v796_v11  ;;  %v5007_v55 = vxor.u32 %v829_v9, %v797_v29  ;;  %v8688_v36 = vld [vmem:[#allocation87_spill] sm:$0xff]  ;;  %v8694_v13 = vld [vmem:[#allocation33_spill] sm:$0xff]  ;;  %v8695_v29 = vld [vmem:[#allocation34_spill] sm:$0xff] }
 0x114   : > { %v5009_v37 = vxor.u32 %v830_v61, %v798_v31  ;;  %v5011_v38 = vxor.u32 %v831_v19, %v799_v3  ;;  %v5013_v48 = vxor.u32 %v832_v25, %v800_v53  ;;  %v5015_v35 = vxor.u32 %v833_v18, %v801_v23  ;;  %v8687_v18 = vld [vmem:[#allocation27_spill] sm:$0xff]  ;;  %v8690_v61 = vld [vmem:[#allocation29_spill] sm:$0xff] }
 0x115   : > { %v5017_v41 = vxor.u32 %v834_v43, %v802_v30  ;;  %v5019_v50 = vxor.u32 %v835_v6, %v803_v0  ;;  %v5021_v40 = vxor.u32 %v836_v39, %v804_v21  ;;  %v5023_v47 = vxor.u32 %v837_v45, %v805_v28  ;;  %v8689_v6 = vld [vmem:[#allocation28_spill] sm:$0xff]  ;;  %v8691_v45 = vld [vmem:[#allocation30_spill] sm:$0xff]  ;;  %v8697_v23 = vld [vmem:[#allocation35_spill] sm:$0xff] }
 0x116   : > { %vm870_vm10 = vcmp.ge.u32.totalorder %v4931_v54, 858993459  ;;  %vm871_vm11 = vcmp.ge.u32.totalorder %v4935_v15, 858993459  ;;  %vm872_vm12 = vcmp.ge.u32.totalorder %v4939_v4, 858993459  ;;  %v5032_v25 = vadd.s32 %v8688_v36, %v8687_v18 }
 0x117   : > { %vm873_vm13 = vcmp.ge.u32.totalorder %v4943_v58, 858993459  ;;  %vm874_vm14 = vcmp.ge.u32.totalorder %v4947_v8, 858993459  ;;  %vm875_vm15 = vcmp.ge.u32.totalorder %v4951_v56, 858993459  ;;  %v5039_v39 = vadd.s32 %v8688_v36, %v8689_v6 }
 0x118   : > { %vm876_vm6 = vcmp.ge.u32.totalorder %v4955_v51, 858993459  ;;  %vm877_vm7 = vcmp.ge.u32.totalorder %v4959_v46, 858993459  ;;  %vm878_vm8 = vcmp.ge.u32.totalorder %v4963_v33, 858993459  ;;  %v5046_v43 = vadd.s32 %v8688_v36, %v8690_v61 }
 0x119   : > { %vm879_vm9 = vcmp.ge.u32.totalorder %v4967_v49, 858993459  ;;  %v5053_v44 = vadd.s32 %v8688_v36, %v8691_v45  ;;  %v5060_v2 = vadd.s32 %v8688_v36, %v8692_v52  ;;  %v5067_v26 = vadd.s32 %v8688_v36, %v8693_v12  ;;  %v8698_v21 = vld [vmem:[#allocation36_spill] sm:$0xff]  ;;  %v8699_v9 = vld [vmem:[#allocation37_spill] sm:$0xff] }
 0x11a   : > { %vm892_vm0 = vcmp.ge.u32.totalorder %v5005_v42, 858993459  ;;  %v5074_v11 = vadd.s32 %v8688_v36, %v8694_v13  ;;  %vm893_vm1 = vcmp.ge.u32.totalorder %v5007_v55, 858993459  ;;  %v5081_v31 = vadd.s32 %v8688_v36, %v8695_v29 }
 0x11b   : > { %vm896_vm4 = vcmp.ge.u32.totalorder %v5013_v48, 858993459  ;;  %v8696_v3 = vmov 0.0   ;;  %v5090_v30 = vadd.s32 %v8688_v36, %v8697_v23  ;;  %vm898_vm2 = vcmp.ge.u32.totalorder %v5017_v41, 858993459  ;;  %v8735_v41 = vld [vmem:[#allocation71_spill] sm:$0xff] }
 0x11c   : > { %v902_v53 = vsel %vm870_vm10, 0.2777778, %v8696_v3  ;;  %vm899_vm3 = vcmp.ge.u32.totalorder %v5019_v50, 858993459  ;;  %v903_v0 = vsel %vm871_vm11, 0.2777778, %v8696_v3  ;;  %v5099_v28 = vadd.s32 %v8688_v36, %v8698_v21 }
 0x11d   : > { %vm900_vm5 = vcmp.ge.u32.totalorder %v5021_v40, 858993459  ;;  %vm901_vm10 = vcmp.ge.u32.totalorder %v5023_v47, 858993459  ;;  %v904_v54 = vsel %vm872_vm12, 0.2777778, %v8696_v3  ;;  %v5108_v19 = vadd.s32 %v8688_v36, %v8699_v9 }
 0x11e   : > { %v905_v15 = vsel %vm873_vm13, 0.2777778, %v8696_v3  ;;  %v906_v20 = vsel %vm874_vm14, 0.2777778, %v8696_v3  ;;  %v907_v24 = vsel %vm875_vm15, 0.2777778, %v8696_v3  ;;  %v5120_v16 = vadd.f32 %v902_v53, %v8700_v62 }
 0x11f   : > { %v908_v4 = vsel %vm876_vm6, 0.2777778, %v8696_v3  ;;  %v909_v58 = vsel %vm877_vm7, 0.2777778, %v8696_v3  ;;  %v910_v8 = vsel %vm878_vm8, 0.2777778, %v8696_v3  ;;  %v5132_v27 = vadd.f32 %v903_v0, %v8702_v59 }
 0x120   : > { %8701 = vst [vmem:[#allocation96_spill] sm:$0xff] %v5120_v16  ;;  %v911_v56 = vsel %vm879_vm9, 0.2777778, %v8696_v3  ;;  %vm8704_vm11 = vcmp.ge.u32.totalorder %v4971_v34, 858993459  ;;  %v8706_v53 = vld [vmem:[#allocation63_spill] sm:$0xff] }
 0x121   : > { %8703 = vst [vmem:[#allocation97_spill] sm:$0xff] %v5132_v27  ;;  %v912_v51 = vsel %vm8704_vm11, 0.2777778, %v8696_v3  ;;  %vm8705_vm12 = vcmp.ge.u32.totalorder %v4975_v1, 858993459  ;;  %v5144_v62 = vadd.f32 %v904_v54, %v8706_v53  ;;  %v8711_v0 = vld [vmem:[#allocation64_spill] sm:$0xff] }
 0x122   : > { %v913_v46 = vsel %vm8705_vm12, 0.2777778, %v8696_v3  ;;  %vm8708_vm13 = vcmp.ge.u32.totalorder %v4979_v22, 858993459  ;;  %vm8709_vm14 = vcmp.ge.u32.totalorder %v4983_v10, 858993459  ;;  %v5156_v59 = vadd.f32 %v905_v15, %v8711_v0 }
 0x123   : > { %8707 = vst [vmem:[#allocation98_spill] sm:$0xff] %v5144_v62  ;;  %v914_v33 = vsel %vm8708_vm13, 0.2777778, %v8696_v3  ;;  %v915_v49 = vsel %vm8709_vm14, 0.2777778, %v8696_v3  ;;  %v8716_v54 = vld [vmem:[#allocation65_spill] sm:$0xff] }
 0x124   : > { %vm8710_vm15 = vcmp.ge.u32.totalorder %v4987_v57, 858993459  ;;  %8712 = vst [vmem:[#allocation57_spill] sm:$0xff] %v5156_v59  ;;  %vm8713_vm6 = vcmp.ge.u32.totalorder %v4991_v14, 858993459  ;;  %v5168_v53 = vadd.f32 %v906_v20, %v8716_v54  ;;  %v8721_v15 = vld [vmem:[#allocation66_spill] sm:$0xff] }
 0x125   : > { %v916_v34 = vsel %vm8710_vm15, 0.2777778, %v8696_v3  ;;  %v917_v1 = vsel %vm8713_vm6, 0.2777778, %v8696_v3  ;;  %vm8714_vm7 = vcmp.ge.u32.totalorder %v4993_v60, 858993459  ;;  %v5180_v0 = vadd.f32 %v907_v24, %v8721_v15 }
 0x126   : > { %v918_v22 = vsel %vm8714_vm7, 0.2777778, %v8696_v3  ;;  %vm8715_vm8 = vcmp.ge.u32.totalorder %v4995_v17, 858993459  ;;  %8717 = vst [vmem:[#allocation58_spill] sm:$0xff] %v5168_v53  ;;  %v8724_v20 = vld [vmem:[#allocation67_spill] sm:$0xff] }
 0x127   : > { %v919_v10 = vsel %vm8715_vm8, 0.2777778, %v8696_v3  ;;  %vm8718_vm9 = vcmp.ge.u32.totalorder %v4997_v63, 858993459  ;;  %vm8719_vm11 = vcmp.ge.u32.totalorder %v4999_v32, 858993459  ;;  %v5192_v54 = vadd.f32 %v908_v4, %v8724_v20 }
 0x128   : > { %v920_v57 = vsel %vm8718_vm9, 0.2777778, %v8696_v3  ;;  %v921_v14 = vsel %vm8719_vm11, 0.2777778, %v8696_v3  ;;  %vm8720_vm12 = vcmp.ge.u32.totalorder %v5001_v7, 858993459 }
 0x129   : > { %v922_v60 = vsel %vm8720_vm12, 0.2777778, %v8696_v3  ;;  %8722 = vst [vmem:[#allocation59_spill] sm:$0xff] %v5180_v0  ;;  %vm8723_vm13 = vcmp.ge.u32.totalorder %v5003_v5, 858993459  ;;  %8725 = vst [vmem:[#allocation60_spill] sm:$0xff] %v5192_v54 }
 0x12a   : > { %v923_v17 = vsel %vm8723_vm13, 0.2777778, %v8696_v3  ;;  %v924_v63 = vsel %vm892_vm0, 0.2777778, %v8696_v3  ;;  %v925_v32 = vsel %vm893_vm1, 0.2777778, %v8696_v3 }
 0x12b   : > { %vm8726_vm14 = vcmp.ge.u32.totalorder %v5009_v37, 858993459  ;;  %vm8727_vm15 = vcmp.ge.u32.totalorder %v5011_v38, 858993459  ;;  %v928_v42 = vsel %vm896_vm4, 0.2777778, %v8696_v3 }
 0x12c   : > { %v926_v7 = vsel %vm8726_vm14, 0.2777778, %v8696_v3  ;;  %v927_v5 = vsel %vm8727_vm15, 0.2777778, %v8696_v3  ;;  %v8728_v24 = vld [vmem:[#allocation68_spill] sm:$0xff]  ;;  %v8731_v4 = vld [vmem:[#allocation69_spill] sm:$0xff] }
 0x12d   : > { %v5204_v15 = vadd.f32 %v909_v58, %v8728_v24  ;;  %vm8730_vm0 = vcmp.ge.u32.totalorder %v5015_v35, 858993459  ;;  %v930_v37 = vsel %vm898_vm2, 0.2777778, %v8696_v3  ;;  %v931_v38 = vsel %vm899_vm3, 0.2777778, %v8696_v3 }
 0x12e   : > { %v929_v55 = vsel %vm8730_vm0, 0.2777778, %v8696_v3  ;;  %v5216_v20 = vadd.f32 %v910_v8, %v8731_v4  ;;  %v932_v48 = vsel %vm900_vm5, 0.2777778, %v8696_v3  ;;  %v933_v35 = vsel %vm901_vm10, 0.2777778, %v8696_v3 }
 0x12f   : > { %8729 = vst [vmem:[#allocation99_spill] sm:$0xff] %v5204_v15  ;;  %v8733_v58 = vld [vmem:[#allocation70_spill] sm:$0xff]  ;;  %v5228_v15 = vadd.f32 %v912_v51, %v8735_v41  ;;  %v8737_v54 = vld [vmem:[#allocation72_spill] sm:$0xff]  ;;  %v8739_v0 = vld [vmem:[#allocation73_spill] sm:$0xff] }
 0x130   : > { %8732 = vst [vmem:[#allocation100_spill] sm:$0xff] %v5216_v20  ;;  %v5225_v24 = vadd.f32 %v911_v56, %v8733_v58  ;;  %v5231_v50 = vadd.f32 %v913_v46, %v8737_v54  ;;  %v5234_v8 = vadd.f32 %v914_v33, %v8739_v0  ;;  %v8741_v4 = vld [vmem:[#allocation24_spill] sm:$0xff]  ;;  %v8743_v40 = vld [vmem:[#allocation74_spill] sm:$0xff]  ;;  %v8745_v47 = vld [vmem:[#allocation75_spill] sm:$0xff] }
 0x131   : > { %8736 = vst [vmem:[#allocation102_spill] sm:$0xff] %v5228_v15  ;;  %v5237_v20 = vadd.f32 %v915_v49, %v8741_v4  ;;  %v5240_v53 = vadd.f32 %v916_v34, %v8743_v40  ;;  %v5243_v59 = vadd.f32 %v917_v1, %v8745_v47  ;;  %v8747_v56 = vld [vmem:[#allocation76_spill] sm:$0xff]  ;;  %v8749_v51 = vld [vmem:[#allocation77_spill] sm:$0xff]  ;;  %v8751_v46 = vld [vmem:[#allocation78_spill] sm:$0xff] }
 0x132   : > { %8734 = vst [vmem:[#allocation101_spill] sm:$0xff] %v5225_v24  ;;  %8738 = vst [vmem:[#allocation103_spill] sm:$0xff] %v5231_v50  ;;  %v5246_v58 = vadd.f32 %v918_v22, %v8747_v56  ;;  %v5249_v41 = vadd.f32 %v919_v10, %v8749_v51  ;;  %v5252_v54 = vadd.f32 %v920_v57, %v8751_v46  ;;  %v8753_v33 = vld [vmem:[#allocation79_spill] sm:$0xff]  ;;  %v8755_v49 = vld [vmem:[#allocation80_spill] sm:$0xff] }
 0x133   : > { %8740 = vst [vmem:[#allocation104_spill] sm:$0xff] %v5234_v8  ;;  %8742 = vst [vmem:[#allocation87_spill] sm:$0xff] %v5237_v20  ;;  %v5255_v0 = vadd.f32 %v921_v14, %v8753_v33  ;;  %v5258_v4 = vadd.f32 %v922_v60, %v8755_v49  ;;  %v8757_v34 = vld [vmem:[#allocation81_spill] sm:$0xff]  ;;  %v8759_v1 = vld [vmem:[#allocation82_spill] sm:$0xff]  ;;  %v1013_v20 = vshrl.u32 %v5108_v19, 16 }
 0x134   : > { %8744 = vst [vmem:[#allocation61_spill] sm:$0xff] %v5240_v53  ;;  %8746 = vst [vmem:[#allocation62_spill] sm:$0xff] %v5243_v59  ;;  %v5261_v40 = vadd.f32 %v923_v17, %v8757_v34  ;;  %v5264_v47 = vadd.f32 %v924_v63, %v8759_v1  ;;  %v8761_v22 = vld [vmem:[#allocation83_spill] sm:$0xff]  ;;  %v8763_v10 = vld [vmem:[#allocation84_spill] sm:$0xff]  ;;  %v1009_v59 = vshrl.u32 %v5074_v11, 16  ;;  %v1012_v53 = vshrl.u32 %v5099_v28, 16 }
 0x135   : > { %8748 = vst [vmem:[#allocation63_spill] sm:$0xff] %v5246_v58  ;;  %8750 = vst [vmem:[#allocation64_spill] sm:$0xff] %v5249_v41  ;;  %v5267_v56 = vadd.f32 %v925_v32, %v8761_v22  ;;  %v5270_v51 = vadd.f32 %v926_v7, %v8763_v10  ;;  %v8765_v57 = vld [vmem:[#allocation85_spill] sm:$0xff]  ;;  %v8767_v14 = vld [vmem:[#allocation86_spill] sm:$0xff]  ;;  %v1005_v41 = vshrl.u32 %v5046_v43, 16  ;;  %v1007_v58 = vshrl.u32 %v5060_v2, 16 }
 0x136   : > { %8752 = vst [vmem:[#allocation65_spill] sm:$0xff] %v5252_v54  ;;  %8754 = vst [vmem:[#allocation66_spill] sm:$0xff] %v5255_v0  ;;  %v5273_v46 = vadd.f32 %v927_v5, %v8765_v57  ;;  %v5276_v33 = vadd.f32 %v928_v42, %v8767_v14  ;;  %v8769_v60 = vld [vmem:[#allocation88_spill] sm:$0xff]  ;;  %v8771_v17 = vld [vmem:[#allocation89_spill] sm:$0xff]  ;;  %v1003_v54 = vshrl.u32 %v5032_v25, 16 }
 0x137   : > { %8756 = vst [vmem:[#allocation67_spill] sm:$0xff] %v5258_v4  ;;  %8758 = vst [vmem:[#allocation68_spill] sm:$0xff] %v5261_v40  ;;  %v5279_v49 = vadd.f32 %v929_v55, %v8769_v60  ;;  %v5282_v34 = vadd.f32 %v930_v37, %v8771_v17  ;;  %v8773_v63 = vld [vmem:[#allocation90_spill] sm:$0xff]  ;;  %v8775_v32 = vld [vmem:[#allocation91_spill] sm:$0xff] }
 0x138   : > { %8760 = vst [vmem:[#allocation69_spill] sm:$0xff] %v5264_v47  ;;  %8762 = vst [vmem:[#allocation70_spill] sm:$0xff] %v5267_v56  ;;  %v5285_v1 = vadd.f32 %v931_v38, %v8773_v63  ;;  %v5288_v22 = vadd.f32 %v932_v48, %v8775_v32  ;;  %v8777_v7 = vld [vmem:[#allocation92_spill] sm:$0xff]  ;;  %v8779_v5 = vld [vmem:[#allocation38_spill] sm:$0xff] }
 0x139   : > { %8764 = vst [vmem:[#allocation71_spill] sm:$0xff] %v5270_v51  ;;  %8766 = vst [vmem:[#allocation72_spill] sm:$0xff] %v5273_v46  ;;  %v5291_v10 = vadd.f32 %v933_v35, %v8777_v7  ;;  %v5295_v57 = vadd.s32 %v8688_v36, %v8779_v5  ;;  %v8780_v42 = vld [vmem:[#allocation39_spill] sm:$0xff]  ;;  %v8781_v14 = vld [vmem:[#allocation40_spill] sm:$0xff] }
 0x13a   : > { %8768 = vst [vmem:[#allocation73_spill] sm:$0xff] %v5276_v33  ;;  %8770 = vst [vmem:[#allocation24_spill] sm:$0xff] %v5279_v49  ;;  %v5299_v55 = vadd.s32 %v8688_v36, %v8780_v42  ;;  %v5303_v37 = vadd.s32 %v8688_v36, %v8781_v14  ;;  %v8782_v38 = vld [vmem:[#allocation41_spill] sm:$0xff]  ;;  %v8783_v48 = vld [vmem:[#allocation42_spill] sm:$0xff] }
 0x13b   : > { %8772 = vst [vmem:[#allocation74_spill] sm:$0xff] %v5282_v34  ;;  %8774 = vst [vmem:[#allocation75_spill] sm:$0xff] %v5285_v1  ;;  %v5307_v60 = vadd.s32 %v8688_v36, %v8782_v38  ;;  %v5311_v35 = vadd.s32 %v8688_v36, %v8783_v48  ;;  %v8784_v17 = vld [vmem:[#allocation43_spill] sm:$0xff]  ;;  %v8785_v32 = vld [vmem:[#allocation44_spill] sm:$0xff]  ;;  %v1014_v8 = vshrl.u32 %v5295_v57, 16 }
 0x13c   : > { %8776 = vst [vmem:[#allocation76_spill] sm:$0xff] %v5288_v22  ;;  %8778 = vst [vmem:[#allocation77_spill] sm:$0xff] %v5291_v10  ;;  %v5315_v63 = vadd.s32 %v8688_v36, %v8784_v17  ;;  %v5319_v7 = vadd.s32 %v8688_v36, %v8785_v32  ;;  %v8786_v42 = vld [vmem:[#allocation45_spill] sm:$0xff]  ;;  %v8787_v5 = vld [vmem:[#allocation46_spill] sm:$0xff]  ;;  %v1015_v50 = vshrl.u32 %v5299_v55, 16  ;;  %v1016_v15 = vshrl.u32 %v5303_v37, 16 }
 0x13d   : > { %v5323_v14 = vadd.s32 %v8688_v36, %v8786_v42  ;;  %v5327_v38 = vadd.s32 %v8688_v36, %v8787_v5  ;;  %v8788_v10 = vld [vmem:[#allocation47_spill] sm:$0xff]  ;;  %v8790_v22 = vld [vmem:[#allocation48_spill] sm:$0xff]  ;;  %v8792_v1 = vld [vmem:[#allocation49_spill] sm:$0xff]  ;;  %v1017_v24 = vshrl.u32 %v5307_v60, 16  ;;  %v1018_v62 = vshrl.u32 %v5311_v35, 16 }
 0x13e   : > { %v5331_v48 = vadd.s32 %v8688_v36, %v8788_v10  ;;  %v5335_v17 = vadd.s32 %v8688_v36, %v8790_v22  ;;  %v5339_v32 = vadd.s32 %v8688_v36, %v8792_v1  ;;  %v8793_v34 = vld [vmem:[#allocation50_spill] sm:$0xff]  ;;  %v8795_v49 = vld [vmem:[#allocation51_spill] sm:$0xff]  ;;  %v8797_v33 = vld [vmem:[#allocation52_spill] sm:$0xff]  ;;  %v1019_v27 = vshrl.u32 %v5315_v63, 16 }
 0x13f   : > { %v5343_v42 = vadd.s32 %v8688_v36, %v8793_v34  ;;  %v5347_v5 = vadd.s32 %v8688_v36, %v8795_v49  ;;  %v5351_v10 = vadd.s32 %v8688_v36, %v8797_v33  ;;  %v8798_v46 = vld [vmem:[#allocation53_spill] sm:$0xff]  ;;  %v8800_v51 = vld [vmem:[#allocation54_spill] sm:$0xff]  ;;  %v8802_v56 = vld [vmem:[#allocation55_spill] sm:$0xff]  ;;  %v1020_v16 = vshrl.u32 %v5319_v7, 16 }
 0x140   : > { %8789 = vst [vmem:[#allocation78_spill] sm:$0xff] %v5331_v48  ;;  %8791 = vst [vmem:[#allocation79_spill] sm:$0xff] %v5335_v17  ;;  %v5355_v22 = vadd.s32 %v8688_v36, %v8798_v46  ;;  %v5359_v1 = vadd.s32 %v8688_v36, %v8800_v51  ;;  %v5363_v34 = vadd.s32 %v8688_v36, %v8802_v56  ;;  %v8803_v47 = vld [vmem:[#allocation56_spill] sm:$0xff]  ;;  %v8805_v40 = vld [vmem:[#allocation94_spill] sm:$0xff]  ;;  %v1004_v46 = vshrl.u32 %v5039_v39, 16 }
 0x141   : > { %8794 = vst [vmem:[#allocation80_spill] sm:$0xff] %v5343_v42  ;;  %8796 = vst [vmem:[#allocation81_spill] sm:$0xff] %v5347_v5  ;;  %v5367_v49 = vadd.s32 %v8688_v36, %v8803_v47  ;;  %v1001_v4 = vshrl.u32 %v8805_v40, 16  ;;  %v8806_v33 = vld [vmem:[#allocation95_spill] sm:$0xff]  ;;  %v1006_v51 = vshrl.u32 %v5053_v44, 16  ;;  %v1008_v56 = vshrl.u32 %v5067_v26, 16 }
 0x142   : > { %8799 = vst [vmem:[#allocation82_spill] sm:$0xff] %v5355_v22  ;;  %8801 = vst [vmem:[#allocation83_spill] sm:$0xff] %v5359_v1  ;;  %v1002_v0 = vshrl.u32 %v8806_v33, 16  ;;  %v1010_v36 = vshrl.u32 %v5081_v31, 16  ;;  %v1011_v47 = vshrl.u32 %v5090_v30, 16  ;;  %v1021_v9 = vshrl.u32 %v5323_v14, 16 }
 0x143   : > { %8804 = vst [vmem:[#allocation84_spill] sm:$0xff] %v5367_v49  ;;  %v1022_v21 = vshrl.u32 %v5327_v38, 16  ;;  %v1023_v23 = vshrl.u32 %v5331_v48, 16  ;;  %v1024_v3 = vshrl.u32 %v5335_v17, 16  ;;  %v1025_v29 = vshrl.u32 %v5339_v32, 16 }
 0x144   : > { %v1026_v13 = vshrl.u32 %v5343_v42, 16  ;;  %v1027_v12 = vshrl.u32 %v5347_v5, 16  ;;  %v1028_v52 = vshrl.u32 %v5351_v10, 16  ;;  %v1029_v45 = vshrl.u32 %v5355_v22, 16 }
 0x145   : > { %v1030_v61 = vshrl.u32 %v5359_v1, 16  ;;  %v1031_v6 = vshrl.u32 %v5363_v34, 16  ;;  %v1032_v18 = vshrl.u32 %v5367_v49, 16  ;;  %v5402_v48 = vxor.u32 %v1001_v4, %v8805_v40 }
 0x146   : > { %v5405_v17 = vxor.u32 %v1002_v0, %v8806_v33  ;;  %v5408_v42 = vxor.u32 %v1003_v54, %v5032_v25  ;;  %v5411_v5 = vxor.u32 %v1004_v46, %v5039_v39  ;;  %v5414_v22 = vxor.u32 %v1005_v41, %v5046_v43 }
 0x147   : > { %v5417_v1 = vxor.u32 %v1006_v51, %v5053_v44  ;;  %v5420_v49 = vxor.u32 %v1007_v58, %v5060_v2  ;;  %v5423_v4 = vxor.u32 %v1008_v56, %v5067_v26  ;;  %v5426_v0 = vxor.u32 %v1009_v59, %v5074_v11 }
 0x148   : > { %v5429_v25 = vxor.u32 %v1010_v36, %v5081_v31  ;;  %v5432_v39 = vxor.u32 %v1011_v47, %v5090_v30  ;;  %v5435_v43 = vxor.u32 %v1012_v53, %v5099_v28  ;;  %v5438_v44 = vxor.u32 %v1013_v20, %v5108_v19  ;;  %v8819_v58 = vld [vmem:[#allocation80_spill] sm:$0xff]  ;;  %v8820_v40 = vld [vmem:[#allocation81_spill] sm:$0xff] }
 0x149   : > { %8807 = vst [vmem:[#allocation85_spill] sm:$0xff] %v5420_v49  ;;  %8808 = vst [vmem:[#allocation86_spill] sm:$0xff] %v5423_v4  ;;  %v5441_v2 = vxor.u32 %v1014_v8, %v5295_v57  ;;  %v5444_v26 = vxor.u32 %v1015_v50, %v5299_v55  ;;  %v5447_v11 = vxor.u32 %v1016_v15, %v5303_v37  ;;  %v8293_v15 = vmul.u32 2246822507, %v5402_v48  ;;  %v8821_v51 = vld [vmem:[#allocation82_spill] sm:$0xff]  ;;  %v8822_v46 = vld [vmem:[#allocation83_spill] sm:$0xff] }
 0x14a   : > { %8809 = vst [vmem:[#allocation88_spill] sm:$0xff] %v5426_v0  ;;  %8810 = vst [vmem:[#allocation89_spill] sm:$0xff] %v5429_v25  ;;  %v5450_v31 = vxor.u32 %v1017_v24, %v5307_v60  ;;  %v5453_v30 = vxor.u32 %v1018_v62, %v5311_v35  ;;  %v5456_v28 = vxor.u32 %v1019_v27, %v5315_v63  ;;  %v8291_v20 = vmul.u32 2246822507, %v5405_v17  ;;  %v8817_v24 = vld [vmem:[#allocation78_spill] sm:$0xff]  ;;  %v8818_v62 = vld [vmem:[#allocation79_spill] sm:$0xff] }
 0x14b   : > { %8811 = vst [vmem:[#allocation90_spill] sm:$0xff] %v5432_v39  ;;  %8812 = vst [vmem:[#allocation91_spill] sm:$0xff] %v5435_v43  ;;  %v5459_v19 = vxor.u32 %v1020_v16, %v5319_v7  ;;  %v5462_v59 = vxor.u32 %v1021_v9, %v5323_v14  ;;  %v5465_v53 = vxor.u32 %v1022_v21, %v5327_v38  ;;  %v8290_v27 = vmul.u32 2246822507, %v5408_v42  ;;  %v8823_v55 = vld [vmem:[#allocation84_spill] sm:$0xff]  ;;  %v8825_v38 = vld [vmem:[#allocation93_spill] sm:$0xff] }
 0x14c   : > { %8813 = vst [vmem:[#allocation92_spill] sm:$0xff] %v5438_v44  ;;  %8814 = vst [vmem:[#allocation94_spill] sm:$0xff] %v5441_v2  ;;  %v5470_v50 = vxor.u32 %v1023_v23, %v8817_v24  ;;  %v5473_v8 = vxor.u32 %v1024_v3, %v8818_v62  ;;  %v8281_v16 = vmul.u32 2246822507, %v5411_v5  ;;  %v5478_v9 = vxor.u32 %v1025_v29, %v5339_v32  ;;  %v8827_v35 = vld [vmem:[#allocation26_spill] sm:$0xff] }
 0x14d   : > { %8815 = vst [vmem:[#allocation95_spill] sm:$0xff] %v5444_v26  ;;  %8816 = vst [vmem:[#allocation105_spill] sm:$0xff] %v5447_v11  ;;  %v5481_v21 = vxor.u32 %v1026_v13, %v8819_v58  ;;  %v8282_v41 = vmul.u32 2246822507, %v5414_v22  ;;  %v8283_v54 = vmul.u32 2246822507, %v5417_v1  ;;  %v5486_v23 = vxor.u32 %v1027_v12, %v8820_v40 }
 0x14e   : > { %v5489_v3 = vxor.u32 %v1028_v52, %v5351_v10  ;;  %v8284_v47 = vmul.u32 2246822507, %v5420_v49  ;;  %v8285_v56 = vmul.u32 2246822507, %v5423_v4  ;;  %v5494_v29 = vxor.u32 %v1029_v45, %v8821_v51 }
 0x14f   : > { %v5497_v13 = vxor.u32 %v1030_v61, %v8822_v46  ;;  %v8286_v33 = vmul.u32 2246822507, %v5426_v0  ;;  %v8287_v57 = vmul.u32 2246822507, %v5429_v25  ;;  %v5502_v12 = vxor.u32 %v1031_v6, %v5363_v34  ;;  %v8824_v61 = vld [vmem:[#allocation25_spill] sm:$0xff] }
 0x150   : > { %v5505_v52 = vxor.u32 %v1032_v18, %v8823_v55  ;;  %v8288_v10 = vmul.u32 2246822507, %v5432_v39  ;;  %v8289_v14 = vmul.u32 2246822507, %v5435_v43  ;;  %v5513_v60 = vadd.s32 %v8825_v38, %v8824_v61 }
 0x151   : > { %v8292_v45 = vmul.u32 2246822507, %v5438_v44  ;;  %v8294_v37 = vmul.u32 2246822507, %v5441_v2  ;;  %v5517_v63 = vadd.s32 %v8825_v38, %v8827_v35  ;;  %v1097_v34 = vshrl.u32 %v8293_v15, 15 }
 0x152   : > { %8826 = vst [vmem:[#allocation78_spill] sm:$0xff] %v5513_v60  ;;  %v8298_v6 = vmul.u32 2246822507, %v5444_v26  ;;  %v8301_v18 = vmul.u32 2246822507, %v5447_v11  ;;  %v1098_v32 = vshrl.u32 %v8291_v20, 15 }
 0x153   : > { %8828 = vst [vmem:[#allocation79_spill] sm:$0xff] %v5517_v63  ;;  %v1081_v7 = vmul.u32 2246822507, %v5450_v31  ;;  %v1082_v36 = vmul.u32 2246822507, %v5453_v30  ;;  %v1099_v24 = vshrl.u32 %v8290_v27, 15 }
 0x154   : > { %v1100_v62 = vshrl.u32 %v8281_v16, 15  ;;  %v1083_v58 = vmul.u32 2246822507, %v5456_v28  ;;  %v1084_v40 = vmul.u32 2246822507, %v5459_v19  ;;  %v1101_v51 = vshrl.u32 %v8282_v41, 15 }
 0x155   : > { %v1102_v46 = vshrl.u32 %v8283_v54, 15  ;;  %v1085_v31 = vmul.u32 2246822507, %v5462_v59  ;;  %v1086_v30 = vmul.u32 2246822507, %v5465_v53  ;;  %v1103_v55 = vshrl.u32 %v8284_v47, 15 }
 0x156   : > { %v1104_v16 = vshrl.u32 %v8285_v56, 15  ;;  %v1087_v28 = vmul.u32 2246822507, %v5470_v50  ;;  %v1088_v19 = vmul.u32 2246822507, %v5473_v8  ;;  %v1105_v41 = vshrl.u32 %v8286_v33, 15 }
 0x157   : > { %v1106_v54 = vshrl.u32 %v8287_v57, 15  ;;  %v1089_v59 = vmul.u32 2246822507, %v5478_v9  ;;  %v1090_v53 = vmul.u32 2246822507, %v5481_v21  ;;  %v1107_v47 = vshrl.u32 %v8288_v10, 15 }
 0x158   : > { %v1108_v56 = vshrl.u32 %v8289_v14, 15  ;;  %v1091_v50 = vmul.u32 2246822507, %v5486_v23  ;;  %v1092_v8 = vmul.u32 2246822507, %v5489_v3  ;;  %v1109_v33 = vshrl.u32 %v8292_v45, 15 }
 0x159   : > { %v1110_v57 = vshrl.u32 %v8294_v37, 15  ;;  %v1093_v9 = vmul.u32 2246822507, %v5494_v29  ;;  %v1094_v21 = vmul.u32 2246822507, %v5497_v13  ;;  %v1111_v10 = vshrl.u32 %v8298_v6, 15 }
 0x15a   : > { %v1112_v14 = vshrl.u32 %v8301_v18, 15  ;;  %v1095_v23 = vmul.u32 2246822507, %v5502_v12  ;;  %v1096_v3 = vmul.u32 2246822507, %v5505_v52  ;;  %v1113_v27 = vshrl.u32 %v1081_v7, 15 }
 0x15b   : > { %v1114_v20 = vshrl.u32 %v1082_v36, 15  ;;  %v1115_v45 = vshrl.u32 %v1083_v58, 15  ;;  %v1116_v15 = vshrl.u32 %v1084_v40, 15  ;;  %v1117_v35 = vshrl.u32 %v1085_v31, 15 }
 0x15c   : > { %v1118_v37 = vshrl.u32 %v1086_v30, 15  ;;  %v1119_v61 = vshrl.u32 %v1087_v28, 15  ;;  %v1120_v29 = vshrl.u32 %v1088_v19, 15  ;;  %v1121_v63 = vshrl.u32 %v1089_v59, 15 }
 0x15d   : > { %v1122_v13 = vshrl.u32 %v1090_v53, 15  ;;  %v1123_v60 = vshrl.u32 %v1091_v50, 15  ;;  %v1124_v38 = vshrl.u32 %v1092_v8, 15  ;;  %v1125_v6 = vshrl.u32 %v1093_v9, 15 }
 0x15e   : > { %v1126_v26 = vshrl.u32 %v1094_v21, 15  ;;  %v1127_v11 = vshrl.u32 %v1095_v23, 15  ;;  %v1128_v18 = vshrl.u32 %v1096_v3, 15  ;;  %v8829_v12 = vmul.u32 2246822507, %v5402_v48 }
 0x15f   : > { %v8830_v52 = vmul.u32 2246822507, %v5405_v17  ;;  %v8831_v43 = vmul.u32 2246822507, %v5408_v42 }
 0x160   : > { %v5571_v2 = vxor.u32 %v1097_v34, %v8829_v12  ;;  %v8832_v25 = vmul.u32 2246822507, %v5411_v5  ;;  %v8833_v4 = vmul.u32 2246822507, %v5414_v22  ;;  %v8835_v12 = vld [vmem:[#allocation85_spill] sm:$0xff] }
 0x161   : > { %v5575_v44 = vxor.u32 %v1098_v32, %v8830_v52  ;;  %v5579_v39 = vxor.u32 %v1099_v24, %v8831_v43  ;;  %v8834_v48 = vmul.u32 2246822507, %v5417_v1  ;;  %v8836_v17 = vmul.u32 2246822507, %v8835_v12  ;;  %v8837_v52 = vld [vmem:[#allocation86_spill] sm:$0xff]  ;;  %v8839_v24 = vld [vmem:[#allocation88_spill] sm:$0xff] }
 0x162   : > { %v5583_v0 = vxor.u32 %v1100_v62, %v8832_v25  ;;  %v5587_v49 = vxor.u32 %v1101_v51, %v8833_v4  ;;  %v8838_v42 = vmul.u32 2246822507, %v8837_v52  ;;  %v8840_v5 = vmul.u32 2246822507, %v8839_v24  ;;  %v8841_v62 = vld [vmem:[#allocation89_spill] sm:$0xff]  ;;  %v8843_v51 = vld [vmem:[#allocation90_spill] sm:$0xff] }
 0x163   : > { %v5591_v34 = vxor.u32 %v1102_v46, %v8834_v48  ;;  %v5595_v32 = vxor.u32 %v1103_v55, %v8836_v17  ;;  %v8842_v22 = vmul.u32 2246822507, %v8841_v62  ;;  %v8844_v1 = vmul.u32 2246822507, %v8843_v51  ;;  %v8845_v48 = vld [vmem:[#allocation91_spill] sm:$0xff]  ;;  %v8847_v17 = vld [vmem:[#allocation92_spill] sm:$0xff] }
 0x164   : > { %v5599_v43 = vxor.u32 %v1104_v16, %v8838_v42  ;;  %v5603_v25 = vxor.u32 %v1105_v41, %v8840_v5  ;;  %v8846_v12 = vmul.u32 2246822507, %v8845_v48  ;;  %v8848_v52 = vmul.u32 2246822507, %v8847_v17  ;;  %v8849_v42 = vld [vmem:[#allocation94_spill] sm:$0xff]  ;;  %v8851_v5 = vld [vmem:[#allocation95_spill] sm:$0xff] }
 0x165   : > { %v5607_v4 = vxor.u32 %v1106_v54, %v8842_v22  ;;  %v5611_v46 = vxor.u32 %v1107_v47, %v8844_v1  ;;  %v8850_v24 = vmul.u32 2246822507, %v8849_v42  ;;  %v8852_v62 = vmul.u32 2246822507, %v8851_v5  ;;  %v8853_v22 = vld [vmem:[#allocation105_spill] sm:$0xff]  ;;  %v8868_v5 = vld [vmem:[#allocation96_spill] sm:$0xff] }
 0x166   : > { %v5615_v55 = vxor.u32 %v1108_v56, %v8846_v12  ;;  %v5619_v16 = vxor.u32 %v1109_v33, %v8848_v52  ;;  %v8854_v51 = vmul.u32 2246822507, %v8853_v22  ;;  %v5633_v1 = vxor.u32 %v1113_v27, %v1081_v7  ;;  %v8870_v22 = vld [vmem:[#allocation97_spill] sm:$0xff] }
 0x167   : > { %v5623_v41 = vxor.u32 %v1110_v57, %v8850_v24  ;;  %v5627_v54 = vxor.u32 %v1111_v10, %v8852_v62  ;;  %v5635_v56 = vxor.u32 %v1114_v20, %v1082_v36  ;;  %v5637_v48 = vxor.u32 %v1115_v45, %v1083_v58  ;;  %v8860_v36 = vld [vmem:[#allocation31_spill] sm:$0xff] }
 0x168   : > { %v5631_v47 = vxor.u32 %v1112_v14, %v8854_v51  ;;  %v5639_v33 = vxor.u32 %v1116_v15, %v1084_v40  ;;  %v5641_v12 = vxor.u32 %v1117_v35, %v1085_v31  ;;  %v5643_v57 = vxor.u32 %v1118_v37, %v1086_v30  ;;  %v8861_v40 = vld [vmem:[#allocation32_spill] sm:$0xff]  ;;  %v8862_v30 = vld [vmem:[#allocation33_spill] sm:$0xff] }
 0x169   : > { %v5645_v17 = vxor.u32 %v1119_v61, %v1087_v28  ;;  %v5647_v10 = vxor.u32 %v1120_v29, %v1088_v19  ;;  %v5649_v52 = vxor.u32 %v1121_v63, %v1089_v59  ;;  %v5651_v14 = vxor.u32 %v1122_v13, %v1090_v53  ;;  %v8855_v61 = vld [vmem:[#allocation27_spill] sm:$0xff]  ;;  %v8858_v63 = vld [vmem:[#allocation29_spill] sm:$0xff]  ;;  %v8863_v19 = vld [vmem:[#allocation34_spill] sm:$0xff] }
 0x16a   : > { %v5653_v27 = vxor.u32 %v1123_v60, %v1091_v50  ;;  %v5655_v20 = vxor.u32 %v1124_v38, %v1092_v8  ;;  %v5657_v45 = vxor.u32 %v1125_v6, %v1093_v9  ;;  %v5659_v15 = vxor.u32 %v1126_v26, %v1094_v21  ;;  %v8856_v38 = vld [vmem:[#allocation93_spill] sm:$0xff]  ;;  %v8857_v26 = vld [vmem:[#allocation28_spill] sm:$0xff]  ;;  %v8865_v8 = vld [vmem:[#allocation35_spill] sm:$0xff] }
 0x16b   : > { %v5661_v35 = vxor.u32 %v1127_v11, %v1095_v23  ;;  %v5663_v37 = vxor.u32 %v1128_v18, %v1096_v3  ;;  %vm1161_vm1 = vcmp.ge.u32.totalorder %v5571_v2, 1288490189  ;;  %vm1162_vm2 = vcmp.ge.u32.totalorder %v5575_v44, 1288490189  ;;  %v8859_v18 = vld [vmem:[#allocation30_spill] sm:$0xff]  ;;  %v8866_v23 = vld [vmem:[#allocation36_spill] sm:$0xff] }
 0x16c   : > { %vm1163_vm3 = vcmp.ge.u32.totalorder %v5579_v39, 1288490189  ;;  %vm1164_vm4 = vcmp.ge.u32.totalorder %v5583_v0, 1288490189  ;;  %vm1165_vm5 = vcmp.ge.u32.totalorder %v5587_v49, 1288490189  ;;  %v5672_v60 = vadd.s32 %v8856_v38, %v8855_v61 }
 0x16d   : > { %vm1166_vm10 = vcmp.ge.u32.totalorder %v5591_v34, 1288490189  ;;  %vm1167_vm6 = vcmp.ge.u32.totalorder %v5595_v32, 1288490189  ;;  %vm1168_vm7 = vcmp.ge.u32.totalorder %v5599_v43, 1288490189  ;;  %v5679_v11 = vadd.s32 %v8856_v38, %v8857_v26 }
 0x16e   : > { %vm1169_vm8 = vcmp.ge.u32.totalorder %v5603_v25, 1288490189  ;;  %vm1170_vm9 = vcmp.ge.u32.totalorder %v5607_v4, 1288490189  ;;  %v5686_v6 = vadd.s32 %v8856_v38, %v8858_v63  ;;  %v5693_v7 = vadd.s32 %v8856_v38, %v8859_v18  ;;  %v8867_v29 = vld [vmem:[#allocation37_spill] sm:$0xff] }
 0x16f   : > { %v5700_v58 = vadd.s32 %v8856_v38, %v8860_v36  ;;  %v5707_v31 = vadd.s32 %v8856_v38, %v8861_v40  ;;  %vm1183_vm11 = vcmp.ge.u32.totalorder %v5645_v17, 1288490189  ;;  %v5714_v28 = vadd.s32 %v8856_v38, %v8862_v30 }
 0x170   : > { %vm1184_vm12 = vcmp.ge.u32.totalorder %v5647_v10, 1288490189  ;;  %v5721_v59 = vadd.s32 %v8856_v38, %v8863_v19  ;;  %vm1187_vm15 = vcmp.ge.u32.totalorder %v5653_v27, 1288490189  ;;  %v8864_v53 = vmov 0.0  }
 0x171   : > { %v1193_v50 = vsel %vm1161_vm1, 0.31746033, %v8864_v53  ;;  %v5730_v9 = vadd.s32 %v8856_v38, %v8865_v8  ;;  %vm1189_vm13 = vcmp.ge.u32.totalorder %v5657_v45, 1288490189  ;;  %vm1190_vm14 = vcmp.ge.u32.totalorder %v5659_v15, 1288490189 }
 0x172   : > { %v1194_v21 = vsel %vm1162_vm2, 0.31746033, %v8864_v53  ;;  %v5739_v3 = vadd.s32 %v8856_v38, %v8866_v23  ;;  %vm1191_vm0 = vcmp.ge.u32.totalorder %v5661_v35, 1288490189  ;;  %vm1192_vm1 = vcmp.ge.u32.totalorder %v5663_v37, 1288490189 }
 0x173   : > { %v1195_v2 = vsel %vm1163_vm3, 0.31746033, %v8864_v53  ;;  %v5748_v13 = vadd.s32 %v8856_v38, %v8867_v29  ;;  %v1196_v44 = vsel %vm1164_vm4, 0.31746033, %v8864_v53  ;;  %v1197_v42 = vsel %vm1165_vm5, 0.31746033, %v8864_v53 }
 0x174   : > { %v1198_v24 = vsel %vm1166_vm10, 0.31746033, %v8864_v53  ;;  %v5760_v62 = vadd.f32 %v1193_v50, %v8868_v5  ;;  %v1199_v39 = vsel %vm1167_vm6, 0.31746033, %v8864_v53  ;;  %v1200_v0 = vsel %vm1168_vm7, 0.31746033, %v8864_v53 }
 0x175   : > { %v1201_v49 = vsel %vm1169_vm8, 0.31746033, %v8864_v53  ;;  %v5772_v51 = vadd.f32 %v1194_v21, %v8870_v22  ;;  %v1202_v34 = vsel %vm1170_vm9, 0.31746033, %v8864_v53  ;;  %vm8872_vm2 = vcmp.ge.u32.totalorder %v5611_v46, 1288490189 }
 0x176   : > { %8869 = vst [vmem:[#allocation80_spill] sm:$0xff] %v5760_v62  ;;  %v1203_v32 = vsel %vm8872_vm2, 0.31746033, %v8864_v53  ;;  %vm8873_vm3 = vcmp.ge.u32.totalorder %v5615_v55, 1288490189  ;;  %v8874_v50 = vld [vmem:[#allocation98_spill] sm:$0xff] }
 0x177   : > { %8871 = vst [vmem:[#allocation81_spill] sm:$0xff] %v5772_v51  ;;  %v1204_v43 = vsel %vm8873_vm3, 0.31746033, %v8864_v53  ;;  %v5784_v5 = vadd.f32 %v1195_v2, %v8874_v50  ;;  %vm8876_vm4 = vcmp.ge.u32.totalorder %v5619_v16, 1288490189  ;;  %v8879_v21 = vld [vmem:[#allocation57_spill] sm:$0xff] }
 0x178   : > { %v1205_v25 = vsel %vm8876_vm4, 0.31746033, %v8864_v53  ;;  %vm8877_vm5 = vcmp.ge.u32.totalorder %v5623_v41, 1288490189  ;;  %vm8878_vm10 = vcmp.ge.u32.totalorder %v5627_v54, 1288490189  ;;  %v5796_v22 = vadd.f32 %v1196_v44, %v8879_v21 }
 0x179   : > { %8875 = vst [vmem:[#allocation82_spill] sm:$0xff] %v5784_v5  ;;  %v1206_v4 = vsel %vm8877_vm5, 0.31746033, %v8864_v53  ;;  %v1207_v46 = vsel %vm8878_vm10, 0.31746033, %v8864_v53  ;;  %v8884_v2 = vld [vmem:[#allocation58_spill] sm:$0xff] }
 0x17a   : > { %8880 = vst [vmem:[#allocation83_spill] sm:$0xff] %v5796_v22  ;;  %vm8881_vm6 = vcmp.ge.u32.totalorder %v5631_v47, 1288490189  ;;  %vm8882_vm7 = vcmp.ge.u32.totalorder %v5633_v1, 1288490189  ;;  %v5808_v50 = vadd.f32 %v1197_v42, %v8884_v2  ;;  %v8889_v44 = vld [vmem:[#allocation59_spill] sm:$0xff] }
 0x17b   : > { %v1208_v55 = vsel %vm8881_vm6, 0.31746033, %v8864_v53  ;;  %v1209_v16 = vsel %vm8882_vm7, 0.31746033, %v8864_v53  ;;  %vm8883_vm8 = vcmp.ge.u32.totalorder %v5635_v56, 1288490189  ;;  %v5820_v21 = vadd.f32 %v1198_v24, %v8889_v44 }
 0x17c   : > { %v1210_v41 = vsel %vm8883_vm8, 0.31746033, %v8864_v53  ;;  %8885 = vst [vmem:[#allocation84_spill] sm:$0xff] %v5808_v50  ;;  %vm8886_vm9 = vcmp.ge.u32.totalorder %v5637_v48, 1288490189  ;;  %v8892_v42 = vld [vmem:[#allocation60_spill] sm:$0xff] }
 0x17d   : > { %v1211_v54 = vsel %vm8886_vm9, 0.31746033, %v8864_v53  ;;  %vm8887_vm2 = vcmp.ge.u32.totalorder %v5639_v33, 1288490189  ;;  %vm8888_vm3 = vcmp.ge.u32.totalorder %v5641_v12, 1288490189  ;;  %v5832_v2 = vadd.f32 %v1199_v39, %v8892_v42 }
 0x17e   : > { %v1212_v47 = vsel %vm8887_vm2, 0.31746033, %v8864_v53  ;;  %v1213_v1 = vsel %vm8888_vm3, 0.31746033, %v8864_v53  ;;  %8890 = vst [vmem:[#allocation85_spill] sm:$0xff] %v5820_v21  ;;  %v8896_v24 = vld [vmem:[#allocation99_spill] sm:$0xff] }
 0x17f   : > { %vm8891_vm4 = vcmp.ge.u32.totalorder %v5643_v57, 1288490189  ;;  %v1215_v48 = vsel %vm1183_vm11, 0.31746033, %v8864_v53  ;;  %v1216_v33 = vsel %vm1184_vm12, 0.31746033, %v8864_v53  ;;  %v5844_v44 = vadd.f32 %v1200_v0, %v8896_v24 }
 0x180   : > { %v1214_v56 = vsel %vm8891_vm4, 0.31746033, %v8864_v53  ;;  %8893 = vst [vmem:[#allocation86_spill] sm:$0xff] %v5832_v2  ;;  %vm8894_vm5 = vcmp.ge.u32.totalorder %v5649_v52, 1288490189  ;;  %v8899_v39 = vld [vmem:[#allocation100_spill] sm:$0xff] }
 0x181   : > { %v1217_v12 = vsel %vm8894_vm5, 0.31746033, %v8864_v53  ;;  %vm8895_vm10 = vcmp.ge.u32.totalorder %v5651_v14, 1288490189  ;;  %v1219_v17 = vsel %vm1187_vm15, 0.31746033, %v8864_v53  ;;  %v5856_v42 = vadd.f32 %v1201_v49, %v8899_v39 }
 0x182   : > { %v1218_v57 = vsel %vm8895_vm10, 0.31746033, %v8864_v53  ;;  %8897 = vst [vmem:[#allocation88_spill] sm:$0xff] %v5844_v44  ;;  %vm8898_vm11 = vcmp.ge.u32.totalorder %v5655_v20, 1288490189  ;;  %v8901_v0 = vld [vmem:[#allocation101_spill] sm:$0xff] }
 0x183   : > { %v1220_v10 = vsel %vm8898_vm11, 0.31746033, %v8864_v53  ;;  %v1221_v52 = vsel %vm1189_vm13, 0.31746033, %v8864_v53  ;;  %v1222_v14 = vsel %vm1190_vm14, 0.31746033, %v8864_v53  ;;  %v5865_v24 = vadd.f32 %v1202_v34, %v8901_v0 }
 0x184   : > { %8900 = vst [vmem:[#allocation89_spill] sm:$0xff] %v5856_v42  ;;  %v1223_v27 = vsel %vm1191_vm0, 0.31746033, %v8864_v53  ;;  %v1224_v20 = vsel %vm1192_vm1, 0.31746033, %v8864_v53  ;;  %v8903_v45 = vld [vmem:[#allocation102_spill] sm:$0xff] }
 0x185   : > { %8902 = vst [vmem:[#allocation90_spill] sm:$0xff] %v5865_v24  ;;  %v5868_v29 = vadd.f32 %v1203_v32, %v8903_v45  ;;  %v8905_v23 = vld [vmem:[#allocation103_spill] sm:$0xff]  ;;  %v8907_v44 = vld [vmem:[#allocation104_spill] sm:$0xff]  ;;  %v8911_v35 = vld [vmem:[#allocation61_spill] sm:$0xff] }
 0x186   : > { %v5871_v15 = vadd.f32 %v1204_v43, %v8905_v23  ;;  %v5874_v49 = vadd.f32 %v1205_v25, %v8907_v44  ;;  %v8909_v39 = vld [vmem:[#allocation87_spill] sm:$0xff]  ;;  %v5880_v2 = vadd.f32 %v1207_v46, %v8911_v35  ;;  %v8913_v37 = vld [vmem:[#allocation62_spill] sm:$0xff]  ;;  %v8917_v32 = vld [vmem:[#allocation64_spill] sm:$0xff] }
 0x187   : > { %8904 = vst [vmem:[#allocation91_spill] sm:$0xff] %v5868_v29  ;;  %v5877_v42 = vadd.f32 %v1206_v4, %v8909_v39  ;;  %v5883_v21 = vadd.f32 %v1208_v55, %v8913_v37  ;;  %v8915_v34 = vld [vmem:[#allocation63_spill] sm:$0xff]  ;;  %v5889_v45 = vadd.f32 %v1210_v41, %v8917_v32  ;;  %v8919_v23 = vld [vmem:[#allocation65_spill] sm:$0xff]  ;;  %v8921_v25 = vld [vmem:[#allocation66_spill] sm:$0xff] }
 0x188   : > { %8906 = vst [vmem:[#allocation92_spill] sm:$0xff] %v5871_v15  ;;  %8908 = vst [vmem:[#allocation94_spill] sm:$0xff] %v5874_v49  ;;  %v5886_v0 = vadd.f32 %v1209_v16, %v8915_v34  ;;  %v5892_v43 = vadd.f32 %v1211_v54, %v8919_v23  ;;  %v5895_v44 = vadd.f32 %v1212_v47, %v8921_v25  ;;  %v8923_v4 = vld [vmem:[#allocation67_spill] sm:$0xff]  ;;  %v8925_v46 = vld [vmem:[#allocation68_spill] sm:$0xff] }
 0x189   : > { %8910 = vst [vmem:[#allocation95_spill] sm:$0xff] %v5877_v42  ;;  %8912 = vst [vmem:[#allocation105_spill] sm:$0xff] %v5880_v2  ;;  %v5898_v39 = vadd.f32 %v1213_v1, %v8923_v4  ;;  %v5901_v35 = vadd.f32 %v1214_v56, %v8925_v46  ;;  %v8927_v55 = vld [vmem:[#allocation69_spill] sm:$0xff]  ;;  %v8929_v16 = vld [vmem:[#allocation70_spill] sm:$0xff]  ;;  %v1303_v2 = vshrl.u32 %v5739_v3, 16  ;;  %v1304_v42 = vshrl.u32 %v5748_v13, 16 }
 0x18a   : > { %8914 = vst [vmem:[#allocation93_spill] sm:$0xff] %v5883_v21  ;;  %8916 = vst [vmem:[#allocation96_spill] sm:$0xff] %v5886_v0  ;;  %v5904_v37 = vadd.f32 %v1215_v48, %v8927_v55  ;;  %v5907_v34 = vadd.f32 %v1216_v33, %v8929_v16  ;;  %v8931_v41 = vld [vmem:[#allocation71_spill] sm:$0xff]  ;;  %v8933_v54 = vld [vmem:[#allocation72_spill] sm:$0xff]  ;;  %v1298_v0 = vshrl.u32 %v5700_v58, 16  ;;  %v1300_v21 = vshrl.u32 %v5714_v28, 16 }
 0x18b   : > { %8918 = vst [vmem:[#allocation97_spill] sm:$0xff] %v5889_v45  ;;  %8920 = vst [vmem:[#allocation98_spill] sm:$0xff] %v5892_v43  ;;  %v5910_v32 = vadd.f32 %v1217_v12, %v8931_v41  ;;  %v5913_v23 = vadd.f32 %v1218_v57, %v8933_v54  ;;  %v8935_v47 = vld [vmem:[#allocation73_spill] sm:$0xff]  ;;  %v8937_v1 = vld [vmem:[#allocation24_spill] sm:$0xff]  ;;  %v1294_v43 = vshrl.u32 %v5672_v60, 16  ;;  %v1296_v45 = vshrl.u32 %v5686_v6, 16 }
 0x18c   : > { %8922 = vst [vmem:[#allocation57_spill] sm:$0xff] %v5895_v44  ;;  %8924 = vst [vmem:[#allocation58_spill] sm:$0xff] %v5898_v39  ;;  %v5916_v25 = vadd.f32 %v1219_v17, %v8935_v47  ;;  %v5919_v4 = vadd.f32 %v1220_v10, %v8937_v1  ;;  %v8939_v56 = vld [vmem:[#allocation74_spill] sm:$0xff]  ;;  %v8941_v48 = vld [vmem:[#allocation75_spill] sm:$0xff] }
 0x18d   : > { %8926 = vst [vmem:[#allocation59_spill] sm:$0xff] %v5901_v35  ;;  %8928 = vst [vmem:[#allocation60_spill] sm:$0xff] %v5904_v37  ;;  %v5922_v46 = vadd.f32 %v1221_v52, %v8939_v56  ;;  %v5925_v55 = vadd.f32 %v1222_v14, %v8941_v48  ;;  %v8943_v33 = vld [vmem:[#allocation76_spill] sm:$0xff]  ;;  %v8945_v12 = vld [vmem:[#allocation77_spill] sm:$0xff] }
 0x18e   : > { %8930 = vst [vmem:[#allocation99_spill] sm:$0xff] %v5907_v34  ;;  %8932 = vst [vmem:[#allocation100_spill] sm:$0xff] %v5910_v32  ;;  %v5928_v16 = vadd.f32 %v1223_v27, %v8943_v33  ;;  %v5931_v41 = vadd.f32 %v1224_v20, %v8945_v12  ;;  %v8947_v57 = vld [vmem:[#allocation38_spill] sm:$0xff]  ;;  %v8948_v17 = vld [vmem:[#allocation39_spill] sm:$0xff] }
 0x18f   : > { %8934 = vst [vmem:[#allocation101_spill] sm:$0xff] %v5913_v23  ;;  %8936 = vst [vmem:[#allocation102_spill] sm:$0xff] %v5916_v25  ;;  %v5935_v54 = vadd.s32 %v8856_v38, %v8947_v57  ;;  %v5939_v10 = vadd.s32 %v8856_v38, %v8948_v17  ;;  %v8949_v47 = vld [vmem:[#allocation40_spill] sm:$0xff]  ;;  %v8950_v14 = vld [vmem:[#allocation41_spill] sm:$0xff] }
 0x190   : > { %8938 = vst [vmem:[#allocation103_spill] sm:$0xff] %v5919_v4  ;;  %8940 = vst [vmem:[#allocation104_spill] sm:$0xff] %v5922_v46  ;;  %v5943_v52 = vadd.s32 %v8856_v38, %v8949_v47  ;;  %v5947_v1 = vadd.s32 %v8856_v38, %v8950_v14  ;;  %v8951_v27 = vld [vmem:[#allocation42_spill] sm:$0xff]  ;;  %v8952_v56 = vld [vmem:[#allocation43_spill] sm:$0xff] }
 0x191   : > { %8942 = vst [vmem:[#allocation87_spill] sm:$0xff] %v5925_v55  ;;  %8944 = vst [vmem:[#allocation61_spill] sm:$0xff] %v5928_v16  ;;  %v5951_v20 = vadd.s32 %v8856_v38, %v8951_v27  ;;  %v5955_v48 = vadd.s32 %v8856_v38, %v8952_v56  ;;  %v8953_v33 = vld [vmem:[#allocation44_spill] sm:$0xff]  ;;  %v8954_v17 = vld [vmem:[#allocation45_spill] sm:$0xff]  ;;  %v1305_v49 = vshrl.u32 %v5935_v54, 16  ;;  %v1306_v15 = vshrl.u32 %v5939_v10, 16 }
 0x192   : > { %8946 = vst [vmem:[#allocation62_spill] sm:$0xff] %v5931_v41  ;;  %v5959_v12 = vadd.s32 %v8856_v38, %v8953_v33  ;;  %v5963_v47 = vadd.s32 %v8856_v38, %v8954_v17  ;;  %v8955_v57 = vld [vmem:[#allocation46_spill] sm:$0xff]  ;;  %v8956_v41 = vld [vmem:[#allocation47_spill] sm:$0xff]  ;;  %v8958_v16 = vld [vmem:[#allocation48_spill] sm:$0xff]  ;;  %v1307_v29 = vshrl.u32 %v5943_v52, 16  ;;  %v1308_v24 = vshrl.u32 %v5947_v1, 16 }
 0x193   : > { %v5967_v14 = vadd.s32 %v8856_v38, %v8955_v57  ;;  %v5971_v27 = vadd.s32 %v8856_v38, %v8956_v41  ;;  %v5975_v56 = vadd.s32 %v8856_v38, %v8958_v16  ;;  %v8959_v55 = vld [vmem:[#allocation49_spill] sm:$0xff]  ;;  %v8961_v46 = vld [vmem:[#allocation50_spill] sm:$0xff]  ;;  %v8963_v4 = vld [vmem:[#allocation51_spill] sm:$0xff]  ;;  %v1309_v50 = vshrl.u32 %v5951_v20, 16 }
 0x194   : > { %v5979_v33 = vadd.s32 %v8856_v38, %v8959_v55  ;;  %v5983_v17 = vadd.s32 %v8856_v38, %v8961_v46  ;;  %v5987_v57 = vadd.s32 %v8856_v38, %v8963_v4  ;;  %v8964_v25 = vld [vmem:[#allocation52_spill] sm:$0xff]  ;;  %v8966_v23 = vld [vmem:[#allocation53_spill] sm:$0xff]  ;;  %v8968_v32 = vld [vmem:[#allocation54_spill] sm:$0xff]  ;;  %v1310_v22 = vshrl.u32 %v5955_v48, 16 }
 0x195   : > { %8957 = vst [vmem:[#allocation63_spill] sm:$0xff] %v5971_v27  ;;  %v5991_v41 = vadd.s32 %v8856_v38, %v8964_v25  ;;  %v5995_v16 = vadd.s32 %v8856_v38, %v8966_v23  ;;  %v5999_v55 = vadd.s32 %v8856_v38, %v8968_v32  ;;  %v8969_v34 = vld [vmem:[#allocation55_spill] sm:$0xff]  ;;  %v8971_v37 = vld [vmem:[#allocation56_spill] sm:$0xff]  ;;  %v8973_v35 = vld [vmem:[#allocation78_spill] sm:$0xff]  ;;  %v1295_v23 = vshrl.u32 %v5679_v11, 16 }
 0x196   : > { %8960 = vst [vmem:[#allocation64_spill] sm:$0xff] %v5979_v33  ;;  %8962 = vst [vmem:[#allocation65_spill] sm:$0xff] %v5983_v17  ;;  %v6003_v46 = vadd.s32 %v8856_v38, %v8969_v34  ;;  %v6007_v4 = vadd.s32 %v8856_v38, %v8971_v37  ;;  %v1292_v39 = vshrl.u32 %v8973_v35, 16  ;;  %v8974_v25 = vld [vmem:[#allocation79_spill] sm:$0xff]  ;;  %v1297_v32 = vshrl.u32 %v5693_v7, 16 }
 0x197   : > { %8965 = vst [vmem:[#allocation66_spill] sm:$0xff] %v5991_v41  ;;  %8967 = vst [vmem:[#allocation67_spill] sm:$0xff] %v5995_v16  ;;  %v1293_v44 = vshrl.u32 %v8974_v25, 16  ;;  %v1299_v34 = vshrl.u32 %v5707_v31, 16  ;;  %v1301_v38 = vshrl.u32 %v5721_v59, 16  ;;  %v1302_v37 = vshrl.u32 %v5730_v9, 16 }
 0x198   : > { %8970 = vst [vmem:[#allocation68_spill] sm:$0xff] %v6003_v46  ;;  %8972 = vst [vmem:[#allocation69_spill] sm:$0xff] %v6007_v4  ;;  %v1311_v5 = vshrl.u32 %v5959_v12, 16  ;;  %v1312_v51 = vshrl.u32 %v5963_v47, 16  ;;  %v1313_v62 = vshrl.u32 %v5967_v14, 16  ;;  %v1314_v8 = vshrl.u32 %v5971_v27, 16 }
 0x199   : > { %v1315_v19 = vshrl.u32 %v5975_v56, 16  ;;  %v1316_v30 = vshrl.u32 %v5979_v33, 16  ;;  %v1317_v53 = vshrl.u32 %v5983_v17, 16  ;;  %v1318_v40 = vshrl.u32 %v5987_v57, 16 }
 0x19a   : > { %v1319_v36 = vshrl.u32 %v5991_v41, 16  ;;  %v1320_v18 = vshrl.u32 %v5995_v16, 16  ;;  %v1321_v63 = vshrl.u32 %v5999_v55, 16  ;;  %v1322_v26 = vshrl.u32 %v6003_v46, 16 }
 0x19b   : > { %v1323_v61 = vshrl.u32 %v6007_v4, 16  ;;  %v6042_v27 = vxor.u32 %v1292_v39, %v8973_v35  ;;  %v6045_v33 = vxor.u32 %v1293_v44, %v8974_v25  ;;  %v6048_v17 = vxor.u32 %v1294_v43, %v5672_v60 }
 0x19c   : > { %v6051_v41 = vxor.u32 %v1295_v23, %v5679_v11  ;;  %v6054_v16 = vxor.u32 %v1296_v45, %v5686_v6  ;;  %v6057_v46 = vxor.u32 %v1297_v32, %v5693_v7  ;;  %v6060_v4 = vxor.u32 %v1298_v0, %v5700_v58 }
 0x19d   : > { %v6063_v39 = vxor.u32 %v1299_v34, %v5707_v31  ;;  %v6066_v44 = vxor.u32 %v1300_v21, %v5714_v28  ;;  %v6069_v60 = vxor.u32 %v1301_v38, %v5721_v59  ;;  %v6072_v11 = vxor.u32 %v1302_v37, %v5730_v9 }
 0x19e   : > { %8975 = vst [vmem:[#allocation70_spill] sm:$0xff] %v6060_v4  ;;  %v6075_v6 = vxor.u32 %v1303_v2, %v5739_v3  ;;  %v6078_v7 = vxor.u32 %v1304_v42, %v5748_v13  ;;  %v6081_v58 = vxor.u32 %v1305_v49, %v5935_v54  ;;  %v6084_v31 = vxor.u32 %v1306_v15, %v5939_v10 }
 0x19f   : > { %8976 = vst [vmem:[#allocation71_spill] sm:$0xff] %v6063_v39  ;;  %8977 = vst [vmem:[#allocation72_spill] sm:$0xff] %v6066_v44  ;;  %v6087_v28 = vxor.u32 %v1307_v29, %v5943_v52  ;;  %v6091_v59 = vxor.u32 %v1308_v24, %v5947_v1  ;;  %v6094_v9 = vxor.u32 %v1309_v50, %v5951_v20  ;;  %v8331_v2 = vmul.u32 2246822507, %v6042_v27  ;;  %v8985_v24 = vld [vmem:[#allocation63_spill] sm:$0xff]  ;;  %v8990_v54 = vld [vmem:[#allocation68_spill] sm:$0xff] }
 0x1a0   : > { %8978 = vst [vmem:[#allocation73_spill] sm:$0xff] %v6069_v60  ;;  %8979 = vst [vmem:[#allocation24_spill] sm:$0xff] %v6072_v11  ;;  %v6097_v3 = vxor.u32 %v1310_v22, %v5955_v48  ;;  %v6100_v13 = vxor.u32 %v1311_v5, %v5959_v12  ;;  %v6103_v21 = vxor.u32 %v1312_v51, %v5963_v47  ;;  %v8330_v42 = vmul.u32 2246822507, %v6045_v33  ;;  %v8986_v51 = vld [vmem:[#allocation64_spill] sm:$0xff] }
 0x1a1   : > { %8980 = vst [vmem:[#allocation74_spill] sm:$0xff] %v6075_v6  ;;  %8981 = vst [vmem:[#allocation75_spill] sm:$0xff] %v6078_v7  ;;  %v6106_v29 = vxor.u32 %v1313_v62, %v5967_v14  ;;  %v6111_v50 = vxor.u32 %v1314_v8, %v8985_v24  ;;  %v6114_v15 = vxor.u32 %v1315_v19, %v5975_v56  ;;  %v8328_v22 = vmul.u32 2246822507, %v6048_v17  ;;  %v8987_v62 = vld [vmem:[#allocation65_spill] sm:$0xff]  ;;  %v8988_v19 = vld [vmem:[#allocation66_spill] sm:$0xff] }
 0x1a2   : > { %8982 = vst [vmem:[#allocation76_spill] sm:$0xff] %v6081_v58  ;;  %8983 = vst [vmem:[#allocation77_spill] sm:$0xff] %v6084_v31  ;;  %v8327_v5 = vmul.u32 2246822507, %v6051_v41  ;;  %v6119_v49 = vxor.u32 %v1316_v30, %v8986_v51  ;;  %v6122_v0 = vxor.u32 %v1317_v53, %v8987_v62  ;;  %v8325_v45 = vmul.u32 2246822507, %v6054_v16 }
 0x1a3   : > { %8984 = vst [vmem:[#allocation78_spill] sm:$0xff] %v6087_v28  ;;  %v8324_v43 = vmul.u32 2246822507, %v6057_v46  ;;  %v6128_v8 = vxor.u32 %v1318_v40, %v5987_v57  ;;  %v6131_v35 = vxor.u32 %v1319_v36, %v8988_v19  ;;  %v8318_v37 = vmul.u32 2246822507, %v6060_v4  ;;  %v8989_v30 = vld [vmem:[#allocation67_spill] sm:$0xff] }
 0x1a4   : > { %v8319_v34 = vmul.u32 2246822507, %v6063_v39  ;;  %v6136_v32 = vxor.u32 %v1320_v18, %v8989_v30  ;;  %v6139_v53 = vxor.u32 %v1321_v63, %v5999_v55  ;;  %v8320_v23 = vmul.u32 2246822507, %v6066_v44  ;;  %v8991_v57 = vld [vmem:[#allocation69_spill] sm:$0xff] }
 0x1a5   : > { %v8321_v25 = vmul.u32 2246822507, %v6069_v60  ;;  %v6144_v40 = vxor.u32 %v1322_v26, %v8990_v54  ;;  %v6147_v36 = vxor.u32 %v1323_v61, %v8991_v57  ;;  %v8322_v10 = vmul.u32 2246822507, %v6072_v11 }
 0x1a6   : > { %v8323_v47 = vmul.u32 2246822507, %v6075_v6  ;;  %v8326_v18 = vmul.u32 2246822507, %v6078_v7  ;;  %v6153_v63 = vstv %s1549_s30  ;;  %v6155_v55 = vstv %s1839_s10 }
 0x1a7   : > { %v8329_v52 = vmul.u32 2246822507, %v6081_v58  ;;  %8992 = vst [vmem:[#allocation79_spill] sm:$0xff] %v6153_v63  ;;  %8993 = vst [vmem:[#allocation63_spill] sm:$0xff] %v6155_v55  ;;  %v8334_v14 = vmul.u32 2246822507, %v6084_v31 }
 0x1a8   : > { %v8337_v26 = vmul.u32 2246822507, %v6087_v28  ;;  %v1388_v61 = vshrl.u32 %v8331_v2, 15  ;;  %v1389_v1 = vshrl.u32 %v8330_v42, 15  ;;  %v1372_v20 = vmul.u32 2246822507, %v6091_v59 }
 0x1a9   : > { %v1373_v56 = vmul.u32 2246822507, %v6094_v9  ;;  %v1390_v48 = vshrl.u32 %v8328_v22, 15  ;;  %v1391_v12 = vshrl.u32 %v8327_v5, 15  ;;  %v1374_v38 = vmul.u32 2246822507, %v6097_v3 }
 0x1aa   : > { %v1375_v24 = vmul.u32 2246822507, %v6100_v13  ;;  %v1392_v51 = vshrl.u32 %v8325_v45, 15  ;;  %v1393_v62 = vshrl.u32 %v8324_v43, 15  ;;  %v1376_v59 = vmul.u32 2246822507, %v6103_v21 }
 0x1ab   : > { %v1377_v9 = vmul.u32 2246822507, %v6106_v29  ;;  %v1394_v19 = vshrl.u32 %v8318_v37, 15  ;;  %v1395_v30 = vshrl.u32 %v8319_v34, 15  ;;  %v1378_v3 = vmul.u32 2246822507, %v6111_v50 }
 0x1ac   : > { %v1379_v13 = vmul.u32 2246822507, %v6114_v15  ;;  %v1396_v54 = vshrl.u32 %v8320_v23, 15  ;;  %v1397_v57 = vshrl.u32 %v8321_v25, 15  ;;  %v1380_v21 = vmul.u32 2246822507, %v6119_v49 }
 0x1ad   : > { %v1381_v29 = vmul.u32 2246822507, %v6122_v0  ;;  %v1398_v37 = vshrl.u32 %v8322_v10, 15  ;;  %v1399_v34 = vshrl.u32 %v8323_v47, 15  ;;  %v1382_v50 = vmul.u32 2246822507, %v6128_v8 }
 0x1ae   : > { %v1383_v15 = vmul.u32 2246822507, %v6131_v35  ;;  %v1400_v23 = vshrl.u32 %v8326_v18, 15  ;;  %v1401_v25 = vshrl.u32 %v8329_v52, 15  ;;  %v1384_v49 = vmul.u32 2246822507, %v6136_v32 }
 0x1af   : > { %v1385_v0 = vmul.u32 2246822507, %v6139_v53  ;;  %v1402_v10 = vshrl.u32 %v8334_v14, 15  ;;  %v1403_v47 = vshrl.u32 %v8337_v26, 15  ;;  %v1386_v8 = vmul.u32 2246822507, %v6144_v40 }
 0x1b0   : > { %v1387_v35 = vmul.u32 2246822507, %v6147_v36  ;;  %v1404_v43 = vshrl.u32 %v1372_v20, 15  ;;  %v1405_v45 = vshrl.u32 %v1373_v56, 15  ;;  %v1406_v18 = vshrl.u32 %v1374_v38, 15 }
 0x1b1   : > { %v1407_v5 = vshrl.u32 %v1375_v24, 15  ;;  %v1408_v22 = vshrl.u32 %v1376_v59, 15  ;;  %v1409_v52 = vshrl.u32 %v1377_v9, 15  ;;  %v1410_v42 = vshrl.u32 %v1378_v3, 15 }
 0x1b2   : > { %v1411_v32 = vshrl.u32 %v1379_v13, 15  ;;  %v1412_v2 = vshrl.u32 %v1380_v21, 15  ;;  %v1413_v53 = vshrl.u32 %v1381_v29, 15  ;;  %v1414_v55 = vshrl.u32 %v1382_v50, 15 }
 0x1b3   : > { %v1415_v63 = vshrl.u32 %v1383_v15, 15  ;;  %v1416_v14 = vshrl.u32 %v1384_v49, 15  ;;  %v1417_v31 = vshrl.u32 %v1385_v0, 15  ;;  %v1418_v28 = vshrl.u32 %v1386_v8, 15 }
 0x1b4   : > { %v1419_v26 = vshrl.u32 %v1387_v35, 15  ;;  %v8994_v40 = vmul.u32 2246822507, %v6042_v27  ;;  %v8995_v36 = vmul.u32 2246822507, %v6045_v33 }
 0x1b5   : > { %v8996_v6 = vmul.u32 2246822507, %v6048_v17  ;;  %v8997_v60 = vmul.u32 2246822507, %v6051_v41 }
 0x1b6   : > { %v6209_v58 = vxor.u32 %v1388_v61, %v8994_v40  ;;  %v6213_v7 = vxor.u32 %v1389_v1, %v8995_v36  ;;  %v8998_v39 = vmul.u32 2246822507, %v6054_v16  ;;  %v8999_v27 = vmul.u32 2246822507, %v6057_v46  ;;  %v9000_v40 = vld [vmem:[#allocation70_spill] sm:$0xff]  ;;  %v9002_v36 = vld [vmem:[#allocation71_spill] sm:$0xff] }
 0x1b7   : > { %v6217_v11 = vxor.u32 %v1390_v48, %v8996_v6  ;;  %v6221_v44 = vxor.u32 %v1391_v12, %v8997_v60  ;;  %v9001_v33 = vmul.u32 2246822507, %v9000_v40  ;;  %v9003_v17 = vmul.u32 2246822507, %v9002_v36  ;;  %v9004_v48 = vld [vmem:[#allocation72_spill] sm:$0xff]  ;;  %v9006_v12 = vld [vmem:[#allocation73_spill] sm:$0xff] }
 0x1b8   : > { %v6225_v4 = vxor.u32 %v1392_v51, %v8998_v39  ;;  %v6229_v61 = vxor.u32 %v1393_v62, %v8999_v27  ;;  %v9005_v41 = vmul.u32 2246822507, %v9004_v48  ;;  %v9007_v16 = vmul.u32 2246822507, %v9006_v12  ;;  %v9008_v51 = vld [vmem:[#allocation24_spill] sm:$0xff]  ;;  %v9010_v27 = vld [vmem:[#allocation74_spill] sm:$0xff] }
 0x1b9   : > { %v6233_v1 = vxor.u32 %v1394_v19, %v9001_v33  ;;  %v6237_v6 = vxor.u32 %v1395_v30, %v9003_v17  ;;  %v9009_v46 = vmul.u32 2246822507, %v9008_v51  ;;  %v9011_v40 = vmul.u32 2246822507, %v9010_v27  ;;  %v9012_v33 = vld [vmem:[#allocation75_spill] sm:$0xff]  ;;  %v9014_v17 = vld [vmem:[#allocation76_spill] sm:$0xff] }
 0x1ba   : > { %v6241_v60 = vxor.u32 %v1396_v54, %v9005_v41  ;;  %v6245_v39 = vxor.u32 %v1397_v57, %v9007_v16  ;;  %v9013_v36 = vmul.u32 2246822507, %v9012_v33  ;;  %v9015_v48 = vmul.u32 2246822507, %v9014_v17  ;;  %v9016_v41 = vld [vmem:[#allocation77_spill] sm:$0xff]  ;;  %v9018_v16 = vld [vmem:[#allocation78_spill] sm:$0xff] }
 0x1bb   : > { %v6249_v62 = vxor.u32 %v1398_v37, %v9009_v46  ;;  %v6253_v19 = vxor.u32 %v1399_v34, %v9011_v40  ;;  %v9017_v12 = vmul.u32 2246822507, %v9016_v41  ;;  %v9019_v51 = vmul.u32 2246822507, %v9018_v16  ;;  %v9033_v41 = vld [vmem:[#allocation80_spill] sm:$0xff]  ;;  %v9035_v16 = vld [vmem:[#allocation81_spill] sm:$0xff] }
 0x1bc   : > { %v6257_v30 = vxor.u32 %v1400_v23, %v9013_v36  ;;  %v6261_v54 = vxor.u32 %v1401_v25, %v9015_v48  ;;  %v6271_v46 = vxor.u32 %v1404_v43, %v1372_v20  ;;  %v6273_v34 = vxor.u32 %v1405_v45, %v1373_v56  ;;  %v9025_v56 = vld [vmem:[#allocation29_spill] sm:$0xff] }
 0x1bd   : > { %v6265_v57 = vxor.u32 %v1402_v10, %v9017_v12  ;;  %v6269_v37 = vxor.u32 %v1403_v47, %v9019_v51  ;;  %v6275_v27 = vxor.u32 %v1406_v18, %v1374_v38  ;;  %v6277_v23 = vxor.u32 %v1407_v5, %v1375_v24  ;;  %v9026_v24 = vld [vmem:[#allocation30_spill] sm:$0xff] }
 0x1be   : > { %v6279_v40 = vxor.u32 %v1408_v22, %v1376_v59  ;;  %v6281_v25 = vxor.u32 %v1409_v52, %v1377_v9  ;;  %v6283_v33 = vxor.u32 %v1410_v42, %v1378_v3  ;;  %v6285_v10 = vxor.u32 %v1411_v32, %v1379_v13  ;;  %v9021_v42 = vld [vmem:[#allocation79_spill] sm:$0xff]  ;;  %v9028_v13 = vld [vmem:[#allocation32_spill] sm:$0xff] }
 0x1bf   : > { %v6287_v36 = vxor.u32 %v1412_v2, %v1380_v21  ;;  %v6289_v47 = vxor.u32 %v1413_v53, %v1381_v29  ;;  %v6291_v43 = vxor.u32 %v1414_v55, %v1382_v50  ;;  %v6293_v45 = vxor.u32 %v1415_v63, %v1383_v15  ;;  %v9020_v2 = vld [vmem:[#allocation25_spill] sm:$0xff]  ;;  %v9023_v55 = vld [vmem:[#allocation27_spill] sm:$0xff] }
 0x1c0   : > { %v6295_v18 = vxor.u32 %v1416_v14, %v1384_v49  ;;  %v6297_v5 = vxor.u32 %v1417_v31, %v1385_v0  ;;  %v6299_v22 = vxor.u32 %v1418_v28, %v1386_v8  ;;  %v6301_v52 = vxor.u32 %v1419_v26, %v1387_v35  ;;  %v9022_v31 = vld [vmem:[#allocation26_spill] sm:$0xff]  ;;  %v9024_v26 = vld [vmem:[#allocation28_spill] sm:$0xff]  ;;  %v9027_v9 = vld [vmem:[#allocation31_spill] sm:$0xff] }
 0x1c1   : > { %vm1452_vm12 = vcmp.ge.u32.totalorder %v6209_v58, 1717986918  ;;  %vm1453_vm13 = vcmp.ge.u32.totalorder %v6213_v7, 1717986918  ;;  %vm1454_vm14 = vcmp.ge.u32.totalorder %v6217_v11, 1717986918  ;;  %v6310_v63 = vadd.s32 %v9021_v42, %v9020_v2 }
 0x1c2   : > { %vm1455_vm15 = vcmp.ge.u32.totalorder %v6221_v44, 1717986918  ;;  %vm1456_vm0 = vcmp.ge.u32.totalorder %v6225_v4, 1717986918  ;;  %vm1457_vm1 = vcmp.ge.u32.totalorder %v6229_v61, 1717986918  ;;  %v6317_v28 = vadd.s32 %v9021_v42, %v9022_v31 }
 0x1c3   : > { %vm1458_vm6 = vcmp.ge.u32.totalorder %v6233_v1, 1717986918  ;;  %vm1459_vm7 = vcmp.ge.u32.totalorder %v6237_v6, 1717986918  ;;  %vm1460_vm8 = vcmp.ge.u32.totalorder %v6241_v60, 1717986918  ;;  %v6324_v14 = vadd.s32 %v9021_v42, %v9023_v55 }
 0x1c4   : > { %vm1461_vm9 = vcmp.ge.u32.totalorder %v6245_v39, 1717986918  ;;  %v6331_v20 = vadd.s32 %v9021_v42, %v9024_v26  ;;  %v6338_v38 = vadd.s32 %v9021_v42, %v9025_v56  ;;  %v6345_v59 = vadd.s32 %v9021_v42, %v9026_v24  ;;  %v9030_v15 = vld [vmem:[#allocation33_spill] sm:$0xff]  ;;  %v9031_v8 = vld [vmem:[#allocation34_spill] sm:$0xff]  ;;  %v9032_v32 = vld [vmem:[#allocation35_spill] sm:$0xff] }
 0x1c5   : > { %vm1474_vm2 = vcmp.ge.u32.totalorder %v6283_v33, 1717986918  ;;  %v6352_v3 = vadd.s32 %v9021_v42, %v9027_v9  ;;  %vm1475_vm3 = vcmp.ge.u32.totalorder %v6285_v10, 1717986918  ;;  %v6359_v21 = vadd.s32 %v9021_v42, %v9028_v13 }
 0x1c6   : > { %vm1478_vm10 = vcmp.ge.u32.totalorder %v6291_v43, 1717986918  ;;  %v9029_v29 = vmov 0.0   ;;  %v6368_v49 = vadd.s32 %v9021_v42, %v9030_v15  ;;  %vm1480_vm4 = vcmp.ge.u32.totalorder %v6295_v18, 1717986918  ;;  %v9068_v18 = vld [vmem:[#allocation91_spill] sm:$0xff] }
 0x1c7   : > { %v1484_v50 = vsel %vm1452_vm12, 0.37037036, %v9029_v29  ;;  %vm1481_vm5 = vcmp.ge.u32.totalorder %v6297_v5, 1717986918  ;;  %v1485_v0 = vsel %vm1453_vm13, 0.37037036, %v9029_v29  ;;  %v6377_v35 = vadd.s32 %v9021_v42, %v9031_v8 }
 0x1c8   : > { %vm1482_vm11 = vcmp.ge.u32.totalorder %v6299_v22, 1717986918  ;;  %vm1483_vm12 = vcmp.ge.u32.totalorder %v6301_v52, 1717986918  ;;  %v1486_v58 = vsel %vm1454_vm14, 0.37037036, %v9029_v29  ;;  %v6386_v53 = vadd.s32 %v9021_v42, %v9032_v32 }
 0x1c9   : > { %v1487_v7 = vsel %vm1455_vm15, 0.37037036, %v9029_v29  ;;  %v1488_v17 = vsel %vm1456_vm0, 0.37037036, %v9029_v29  ;;  %v1489_v48 = vsel %vm1457_vm1, 0.37037036, %v9029_v29  ;;  %v6398_v12 = vadd.f32 %v1484_v50, %v9033_v41 }
 0x1ca   : > { %v1490_v11 = vsel %vm1458_vm6, 0.37037036, %v9029_v29  ;;  %v1491_v44 = vsel %vm1459_vm7, 0.37037036, %v9029_v29  ;;  %v1492_v4 = vsel %vm1460_vm8, 0.37037036, %v9029_v29  ;;  %v6410_v51 = vadd.f32 %v1485_v0, %v9035_v16 }
 0x1cb   : > { %9034 = vst [vmem:[#allocation64_spill] sm:$0xff] %v6398_v12  ;;  %v1493_v61 = vsel %vm1461_vm9, 0.37037036, %v9029_v29  ;;  %vm9037_vm13 = vcmp.ge.u32.totalorder %v6249_v62, 1717986918  ;;  %v9039_v50 = vld [vmem:[#allocation82_spill] sm:$0xff] }
 0x1cc   : > { %9036 = vst [vmem:[#allocation65_spill] sm:$0xff] %v6410_v51  ;;  %v1494_v1 = vsel %vm9037_vm13, 0.37037036, %v9029_v29  ;;  %vm9038_vm14 = vcmp.ge.u32.totalorder %v6253_v19, 1717986918  ;;  %v6422_v41 = vadd.f32 %v1486_v58, %v9039_v50  ;;  %v9044_v0 = vld [vmem:[#allocation83_spill] sm:$0xff] }
 0x1cd   : > { %v1495_v6 = vsel %vm9038_vm14, 0.37037036, %v9029_v29  ;;  %vm9041_vm15 = vcmp.ge.u32.totalorder %v6257_v30, 1717986918  ;;  %vm9042_vm0 = vcmp.ge.u32.totalorder %v6261_v54, 1717986918  ;;  %v6434_v16 = vadd.f32 %v1487_v7, %v9044_v0 }
 0x1ce   : > { %9040 = vst [vmem:[#allocation66_spill] sm:$0xff] %v6422_v41  ;;  %v1496_v60 = vsel %vm9041_vm15, 0.37037036, %v9029_v29  ;;  %v1497_v39 = vsel %vm9042_vm0, 0.37037036, %v9029_v29  ;;  %v9049_v58 = vld [vmem:[#allocation84_spill] sm:$0xff]  ;;  %v6506_v32 = vadd.f32 %v1494_v1, %v9068_v18 }
 0x1cf   : > { %vm9043_vm1 = vcmp.ge.u32.totalorder %v6265_v57, 1717986918  ;;  %9045 = vst [vmem:[#allocation67_spill] sm:$0xff] %v6434_v16  ;;  %vm9046_vm6 = vcmp.ge.u32.totalorder %v6269_v37, 1717986918  ;;  %v6446_v50 = vadd.f32 %v1488_v17, %v9049_v58  ;;  %v9054_v7 = vld [vmem:[#allocation85_spill] sm:$0xff] }
 0x1d0   : > { %v1498_v62 = vsel %vm9043_vm1, 0.37037036, %v9029_v29  ;;  %v1499_v19 = vsel %vm9046_vm6, 0.37037036, %v9029_v29  ;;  %vm9047_vm7 = vcmp.ge.u32.totalorder %v6271_v46, 1717986918  ;;  %v6458_v0 = vadd.f32 %v1489_v48, %v9054_v7 }
 0x1d1   : > { %v1500_v30 = vsel %vm9047_vm7, 0.37037036, %v9029_v29  ;;  %vm9048_vm8 = vcmp.ge.u32.totalorder %v6273_v34, 1717986918  ;;  %9050 = vst [vmem:[#allocation68_spill] sm:$0xff] %v6446_v50  ;;  %v9057_v17 = vld [vmem:[#allocation86_spill] sm:$0xff] }
 0x1d2   : > { %v1501_v54 = vsel %vm9048_vm8, 0.37037036, %v9029_v29  ;;  %vm9051_vm9 = vcmp.ge.u32.totalorder %v6275_v27, 1717986918  ;;  %vm9052_vm13 = vcmp.ge.u32.totalorder %v6277_v23, 1717986918  ;;  %v6470_v58 = vadd.f32 %v1490_v11, %v9057_v17 }
 0x1d3   : > { %v1502_v57 = vsel %vm9051_vm9, 0.37037036, %v9029_v29  ;;  %v1503_v37 = vsel %vm9052_vm13, 0.37037036, %v9029_v29  ;;  %vm9053_vm14 = vcmp.ge.u32.totalorder %v6279_v40, 1717986918 }
 0x1d4   : > { %v1504_v46 = vsel %vm9053_vm14, 0.37037036, %v9029_v29  ;;  %9055 = vst [vmem:[#allocation69_spill] sm:$0xff] %v6458_v0  ;;  %vm9056_vm15 = vcmp.ge.u32.totalorder %v6281_v25, 1717986918  ;;  %9058 = vst [vmem:[#allocation70_spill] sm:$0xff] %v6470_v58 }
 0x1d5   : > { %v1505_v34 = vsel %vm9056_vm15, 0.37037036, %v9029_v29  ;;  %v1506_v27 = vsel %vm1474_vm2, 0.37037036, %v9029_v29  ;;  %v1507_v23 = vsel %vm1475_vm3, 0.37037036, %v9029_v29 }
 0x1d6   : > { %vm9059_vm0 = vcmp.ge.u32.totalorder %v6287_v36, 1717986918  ;;  %vm9060_vm1 = vcmp.ge.u32.totalorder %v6289_v47, 1717986918  ;;  %v1510_v33 = vsel %vm1478_vm10, 0.37037036, %v9029_v29 }
 0x1d7   : > { %v1508_v40 = vsel %vm9059_vm0, 0.37037036, %v9029_v29  ;;  %v1509_v25 = vsel %vm9060_vm1, 0.37037036, %v9029_v29  ;;  %v9061_v48 = vld [vmem:[#allocation88_spill] sm:$0xff]  ;;  %v9064_v11 = vld [vmem:[#allocation89_spill] sm:$0xff] }
 0x1d8   : > { %v6482_v7 = vadd.f32 %v1491_v44, %v9061_v48  ;;  %vm9063_vm2 = vcmp.ge.u32.totalorder %v6293_v45, 1717986918  ;;  %v1512_v36 = vsel %vm1480_vm4, 0.37037036, %v9029_v29  ;;  %v1513_v47 = vsel %vm1481_vm5, 0.37037036, %v9029_v29 }
 0x1d9   : > { %v1511_v10 = vsel %vm9063_vm2, 0.37037036, %v9029_v29  ;;  %v6494_v17 = vadd.f32 %v1492_v4, %v9064_v11  ;;  %v1514_v43 = vsel %vm1482_vm11, 0.37037036, %v9029_v29  ;;  %v1515_v45 = vsel %vm1483_vm12, 0.37037036, %v9029_v29 }
 0x1da   : > { %9062 = vst [vmem:[#allocation71_spill] sm:$0xff] %v6482_v7  ;;  %v9066_v44 = vld [vmem:[#allocation90_spill] sm:$0xff]  ;;  %9069 = vst [vmem:[#allocation24_spill] sm:$0xff] %v6506_v32  ;;  %v9070_v8 = vld [vmem:[#allocation92_spill] sm:$0xff] }
 0x1db   : > { %9065 = vst [vmem:[#allocation72_spill] sm:$0xff] %v6494_v17  ;;  %v6503_v48 = vadd.f32 %v1493_v61, %v9066_v44  ;;  %v6509_v5 = vadd.f32 %v1495_v6, %v9070_v8  ;;  %v9072_v15 = vld [vmem:[#allocation94_spill] sm:$0xff]  ;;  %v9074_v11 = vld [vmem:[#allocation95_spill] sm:$0xff]  ;;  %v9076_v22 = vld [vmem:[#allocation105_spill] sm:$0xff] }
 0x1dc   : > { %v6512_v4 = vadd.f32 %v1496_v60, %v9072_v15  ;;  %v6515_v13 = vadd.f32 %v1497_v39, %v9074_v11  ;;  %v6518_v9 = vadd.f32 %v1498_v62, %v9076_v22  ;;  %v9078_v52 = vld [vmem:[#allocation93_spill] sm:$0xff]  ;;  %v9080_v61 = vld [vmem:[#allocation96_spill] sm:$0xff]  ;;  %v9084_v8 = vld [vmem:[#allocation98_spill] sm:$0xff] }
 0x1dd   : > { %9067 = vst [vmem:[#allocation73_spill] sm:$0xff] %v6503_v48  ;;  %9071 = vst [vmem:[#allocation74_spill] sm:$0xff] %v6509_v5  ;;  %v6521_v24 = vadd.f32 %v1499_v19, %v9078_v52  ;;  %v6524_v44 = vadd.f32 %v1500_v30, %v9080_v61  ;;  %v9082_v1 = vld [vmem:[#allocation97_spill] sm:$0xff]  ;;  %v6530_v6 = vadd.f32 %v1502_v57, %v9084_v8  ;;  %v9088_v39 = vld [vmem:[#allocation58_spill] sm:$0xff] }
 0x1de   : > { %9073 = vst [vmem:[#allocation75_spill] sm:$0xff] %v6512_v4  ;;  %9075 = vst [vmem:[#allocation76_spill] sm:$0xff] %v6515_v13  ;;  %v6527_v18 = vadd.f32 %v1501_v54, %v9082_v1  ;;  %v9086_v15 = vld [vmem:[#allocation57_spill] sm:$0xff]  ;;  %v6536_v11 = vadd.f32 %v1504_v46, %v9088_v39  ;;  %v9090_v62 = vld [vmem:[#allocation59_spill] sm:$0xff] }
 0x1df   : > { %9077 = vst [vmem:[#allocation77_spill] sm:$0xff] %v6518_v9  ;;  %9079 = vst [vmem:[#allocation78_spill] sm:$0xff] %v6521_v24  ;;  %v6533_v60 = vadd.f32 %v1503_v37, %v9086_v15  ;;  %v6539_v22 = vadd.f32 %v1505_v34, %v9090_v62  ;;  %v9092_v19 = vld [vmem:[#allocation60_spill] sm:$0xff]  ;;  %v9094_v30 = vld [vmem:[#allocation99_spill] sm:$0xff]  ;;  %v1591_v24 = vshrl.u32 %v6368_v49, 16 }
 0x1e0   : > { %9081 = vst [vmem:[#allocation79_spill] sm:$0xff] %v6524_v44  ;;  %9083 = vst [vmem:[#allocation80_spill] sm:$0xff] %v6527_v18  ;;  %v6542_v52 = vadd.f32 %v1506_v27, %v9092_v19  ;;  %v6545_v61 = vadd.f32 %v1507_v23, %v9094_v30  ;;  %v9096_v54 = vld [vmem:[#allocation100_spill] sm:$0xff]  ;;  %v9098_v57 = vld [vmem:[#allocation101_spill] sm:$0xff]  ;;  %v1587_v18 = vshrl.u32 %v6338_v38, 16  ;;  %v1589_v44 = vshrl.u32 %v6352_v3, 16 }
 0x1e1   : > { %9085 = vst [vmem:[#allocation81_spill] sm:$0xff] %v6530_v6  ;;  %9087 = vst [vmem:[#allocation82_spill] sm:$0xff] %v6533_v60  ;;  %v6548_v1 = vadd.f32 %v1508_v40, %v9096_v54  ;;  %v6551_v8 = vadd.f32 %v1509_v25, %v9098_v57  ;;  %v9100_v37 = vld [vmem:[#allocation102_spill] sm:$0xff]  ;;  %v9102_v46 = vld [vmem:[#allocation103_spill] sm:$0xff]  ;;  %v1583_v60 = vshrl.u32 %v6310_v63, 16  ;;  %v1585_v6 = vshrl.u32 %v6324_v14, 16 }
 0x1e2   : > { %9089 = vst [vmem:[#allocation83_spill] sm:$0xff] %v6536_v11  ;;  %9091 = vst [vmem:[#allocation84_spill] sm:$0xff] %v6539_v22  ;;  %v6554_v15 = vadd.f32 %v1510_v33, %v9100_v37  ;;  %v6557_v39 = vadd.f32 %v1511_v10, %v9102_v46  ;;  %v9104_v34 = vld [vmem:[#allocation104_spill] sm:$0xff]  ;;  %v9106_v27 = vld [vmem:[#allocation87_spill] sm:$0xff] }
 0x1e3   : > { %9093 = vst [vmem:[#allocation85_spill] sm:$0xff] %v6542_v52  ;;  %9095 = vst [vmem:[#allocation86_spill] sm:$0xff] %v6545_v61  ;;  %v6560_v62 = vadd.f32 %v1512_v36, %v9104_v34  ;;  %v6563_v19 = vadd.f32 %v1513_v47, %v9106_v27  ;;  %v9108_v23 = vld [vmem:[#allocation61_spill] sm:$0xff]  ;;  %v9110_v40 = vld [vmem:[#allocation62_spill] sm:$0xff] }
 0x1e4   : > { %9097 = vst [vmem:[#allocation88_spill] sm:$0xff] %v6548_v1  ;;  %9099 = vst [vmem:[#allocation89_spill] sm:$0xff] %v6551_v8  ;;  %v6566_v30 = vadd.f32 %v1514_v43, %v9108_v23  ;;  %v6569_v54 = vadd.f32 %v1515_v45, %v9110_v40  ;;  %v9112_v25 = vld [vmem:[#allocation36_spill] sm:$0xff]  ;;  %v9113_v33 = vld [vmem:[#allocation37_spill] sm:$0xff] }
 0x1e5   : > { %9101 = vst [vmem:[#allocation90_spill] sm:$0xff] %v6554_v15  ;;  %9103 = vst [vmem:[#allocation91_spill] sm:$0xff] %v6557_v39  ;;  %v6573_v57 = vadd.s32 %v9021_v42, %v9112_v25  ;;  %v6577_v10 = vadd.s32 %v9021_v42, %v9113_v33  ;;  %v9114_v37 = vld [vmem:[#allocation38_spill] sm:$0xff]  ;;  %v9115_v47 = vld [vmem:[#allocation39_spill] sm:$0xff] }
 0x1e6   : > { %9105 = vst [vmem:[#allocation92_spill] sm:$0xff] %v6560_v62  ;;  %9107 = vst [vmem:[#allocation94_spill] sm:$0xff] %v6563_v19  ;;  %v6581_v36 = vadd.s32 %v9021_v42, %v9114_v37  ;;  %v6585_v46 = vadd.s32 %v9021_v42, %v9115_v47  ;;  %v9116_v43 = vld [vmem:[#allocation40_spill] sm:$0xff]  ;;  %v9117_v34 = vld [vmem:[#allocation41_spill] sm:$0xff] }
 0x1e7   : > { %9109 = vst [vmem:[#allocation95_spill] sm:$0xff] %v6566_v30  ;;  %9111 = vst [vmem:[#allocation105_spill] sm:$0xff] %v6569_v54  ;;  %v6589_v45 = vadd.s32 %v9021_v42, %v9116_v43  ;;  %v6593_v27 = vadd.s32 %v9021_v42, %v9117_v34  ;;  %v9118_v23 = vld [vmem:[#allocation42_spill] sm:$0xff]  ;;  %v9119_v54 = vld [vmem:[#allocation43_spill] sm:$0xff]  ;;  %v1594_v9 = vshrl.u32 %v6573_v57, 16  ;;  %v1595_v13 = vshrl.u32 %v6577_v10, 16 }
 0x1e8   : > { %v6597_v40 = vadd.s32 %v9021_v42, %v9118_v23  ;;  %v6601_v30 = vadd.s32 %v9021_v42, %v9119_v54  ;;  %v9120_v19 = vld [vmem:[#allocation44_spill] sm:$0xff]  ;;  %v9121_v37 = vld [vmem:[#allocation45_spill] sm:$0xff]  ;;  %v9122_v33 = vld [vmem:[#allocation46_spill] sm:$0xff]  ;;  %v1596_v4 = vshrl.u32 %v6581_v36, 16  ;;  %v1597_v5 = vshrl.u32 %v6585_v46, 16 }
 0x1e9   : > { %v6605_v47 = vadd.s32 %v9021_v42, %v9120_v19  ;;  %v6609_v43 = vadd.s32 %v9021_v42, %v9121_v37  ;;  %v6613_v34 = vadd.s32 %v9021_v42, %v9122_v33  ;;  %v9123_v25 = vld [vmem:[#allocation47_spill] sm:$0xff]  ;;  %v9125_v62 = vld [vmem:[#allocation48_spill] sm:$0xff]  ;;  %v9127_v39 = vld [vmem:[#allocation49_spill] sm:$0xff]  ;;  %v1598_v32 = vshrl.u32 %v6589_v45, 16 }
 0x1ea   : > { %v6617_v23 = vadd.s32 %v9021_v42, %v9123_v25  ;;  %v6621_v54 = vadd.s32 %v9021_v42, %v9125_v62  ;;  %v6625_v19 = vadd.s32 %v9021_v42, %v9127_v39  ;;  %v9128_v15 = vld [vmem:[#allocation50_spill] sm:$0xff]  ;;  %v9130_v8 = vld [vmem:[#allocation51_spill] sm:$0xff]  ;;  %v9132_v1 = vld [vmem:[#allocation52_spill] sm:$0xff]  ;;  %v1599_v48 = vshrl.u32 %v6593_v27, 16 }
 0x1eb   : > { %v6629_v37 = vadd.s32 %v9021_v42, %v9128_v15  ;;  %v6633_v33 = vadd.s32 %v9021_v42, %v9130_v8  ;;  %v6637_v25 = vadd.s32 %v9021_v42, %v9132_v1  ;;  %v9133_v61 = vld [vmem:[#allocation53_spill] sm:$0xff]  ;;  %v9135_v52 = vld [vmem:[#allocation54_spill] sm:$0xff]  ;;  %v9137_v22 = vld [vmem:[#allocation55_spill] sm:$0xff]  ;;  %v1584_v1 = vshrl.u32 %v6317_v28, 16 }
 0x1ec   : > { %9124 = vst [vmem:[#allocation93_spill] sm:$0xff] %v6617_v23  ;;  %9126 = vst [vmem:[#allocation96_spill] sm:$0xff] %v6621_v54  ;;  %v6641_v62 = vadd.s32 %v9021_v42, %v9133_v61  ;;  %v6645_v39 = vadd.s32 %v9021_v42, %v9135_v52  ;;  %v6649_v15 = vadd.s32 %v9021_v42, %v9137_v22  ;;  %v9138_v11 = vld [vmem:[#allocation56_spill] sm:$0xff]  ;;  %v1586_v61 = vshrl.u32 %v6331_v20, 16 }
 0x1ed   : > { %9129 = vst [vmem:[#allocation97_spill] sm:$0xff] %v6629_v37  ;;  %9131 = vst [vmem:[#allocation98_spill] sm:$0xff] %v6633_v33  ;;  %v6653_v8 = vadd.s32 %v9021_v42, %v9138_v11  ;;  %v1588_v52 = vshrl.u32 %v6345_v59, 16  ;;  %v1590_v22 = vshrl.u32 %v6359_v21, 16  ;;  %v1592_v42 = vshrl.u32 %v6377_v35, 16 }
 0x1ee   : > { %9134 = vst [vmem:[#allocation57_spill] sm:$0xff] %v6641_v62  ;;  %9136 = vst [vmem:[#allocation58_spill] sm:$0xff] %v6645_v39  ;;  %v1593_v11 = vshrl.u32 %v6386_v53, 16  ;;  %v1600_v17 = vshrl.u32 %v6597_v40, 16  ;;  %v1601_v7 = vshrl.u32 %v6601_v30, 16  ;;  %v1602_v58 = vshrl.u32 %v6605_v47, 16 }
 0x1ef   : > { %9139 = vst [vmem:[#allocation59_spill] sm:$0xff] %v6653_v8  ;;  %v1603_v0 = vshrl.u32 %v6609_v43, 16  ;;  %v1604_v50 = vshrl.u32 %v6613_v34, 16  ;;  %v1605_v16 = vshrl.u32 %v6617_v23, 16  ;;  %v1606_v41 = vshrl.u32 %v6621_v54, 16 }
 0x1f0   : > { %v1607_v51 = vshrl.u32 %v6625_v19, 16  ;;  %v1608_v12 = vshrl.u32 %v6629_v37, 16  ;;  %v1609_v56 = vshrl.u32 %v6633_v33, 16  ;;  %v1610_v29 = vshrl.u32 %v6637_v25, 16 }
 0x1f1   : > { %v1611_v26 = vshrl.u32 %v6641_v62, 16  ;;  %v1612_v55 = vshrl.u32 %v6645_v39, 16  ;;  %v1613_v31 = vshrl.u32 %v6649_v15, 16  ;;  %v1614_v2 = vshrl.u32 %v6653_v8, 16 }
 0x1f2   : > { %v6688_v23 = vxor.u32 %v1583_v60, %v6310_v63  ;;  %v6691_v54 = vxor.u32 %v1584_v1, %v6317_v28  ;;  %v6694_v37 = vxor.u32 %v1585_v6, %v6324_v14  ;;  %v6697_v33 = vxor.u32 %v1586_v61, %v6331_v20 }
 0x1f3   : > { %v6700_v62 = vxor.u32 %v1587_v18, %v6338_v38  ;;  %v6703_v39 = vxor.u32 %v1588_v52, %v6345_v59  ;;  %v6706_v8 = vxor.u32 %v1589_v44, %v6352_v3  ;;  %v6709_v63 = vxor.u32 %v1590_v22, %v6359_v21 }
 0x1f4   : > { %v6712_v28 = vxor.u32 %v1591_v24, %v6368_v49  ;;  %v6715_v14 = vxor.u32 %v1592_v42, %v6377_v35  ;;  %v6718_v20 = vxor.u32 %v1593_v11, %v6386_v53  ;;  %v6721_v38 = vxor.u32 %v1594_v9, %v6573_v57  ;;  %v9153_v60 = vld [vmem:[#allocation98_spill] sm:$0xff] }
 0x1f5   : > { %9140 = vst [vmem:[#allocation60_spill] sm:$0xff] %v6706_v8  ;;  %9141 = vst [vmem:[#allocation99_spill] sm:$0xff] %v6709_v63  ;;  %v6724_v59 = vxor.u32 %v1595_v13, %v6577_v10  ;;  %v6727_v3 = vxor.u32 %v1596_v4, %v6581_v36  ;;  %v6730_v21 = vxor.u32 %v1597_v5, %v6585_v46  ;;  %v8355_v11 = vmul.u32 2246822507, %v6700_v62  ;;  %v9154_v52 = vld [vmem:[#allocation57_spill] sm:$0xff]  ;;  %v9155_v61 = vld [vmem:[#allocation58_spill] sm:$0xff] }
 0x1f6   : > { %9142 = vst [vmem:[#allocation100_spill] sm:$0xff] %v6712_v28  ;;  %9143 = vst [vmem:[#allocation101_spill] sm:$0xff] %v6715_v14  ;;  %v6733_v24 = vxor.u32 %v1598_v32, %v6589_v45  ;;  %v6736_v49 = vxor.u32 %v1599_v48, %v6593_v27  ;;  %v6739_v35 = vxor.u32 %v1600_v17, %v6597_v40  ;;  %v9150_v32 = vld [vmem:[#allocation93_spill] sm:$0xff]  ;;  %v9151_v48 = vld [vmem:[#allocation96_spill] sm:$0xff]  ;;  %v8366_v17 = vmul.u32 2246822507, %v6688_v23 }
 0x1f7   : > { %9144 = vst [vmem:[#allocation102_spill] sm:$0xff] %v6718_v20  ;;  %9145 = vst [vmem:[#allocation103_spill] sm:$0xff] %v6721_v38  ;;  %v6742_v9 = vxor.u32 %v1601_v7, %v6601_v30  ;;  %v6745_v13 = vxor.u32 %v1602_v58, %v6605_v47  ;;  %v6748_v53 = vxor.u32 %v1603_v0, %v6609_v43  ;;  %v8364_v7 = vmul.u32 2246822507, %v6691_v54  ;;  %v9152_v58 = vld [vmem:[#allocation97_spill] sm:$0xff]  ;;  %v9156_v30 = vld [vmem:[#allocation59_spill] sm:$0xff] }
 0x1f8   : > { %9146 = vst [vmem:[#allocation104_spill] sm:$0xff] %v6724_v59  ;;  %9147 = vst [vmem:[#allocation87_spill] sm:$0xff] %v6727_v3  ;;  %v6751_v5 = vxor.u32 %v1604_v50, %v6613_v34  ;;  %v6754_v4 = vxor.u32 %v1605_v16, %v9150_v32  ;;  %v6757_v44 = vxor.u32 %v1606_v41, %v9151_v48  ;;  %v8363_v0 = vmul.u32 2246822507, %v6694_v37  ;;  %v9158_v36 = vld [vmem:[#allocation63_spill] sm:$0xff]  ;;  %v9160_v46 = vld [vmem:[#allocation26_spill] sm:$0xff] }
 0x1f9   : > { %9148 = vst [vmem:[#allocation61_spill] sm:$0xff] %v6730_v21  ;;  %9149 = vst [vmem:[#allocation62_spill] sm:$0xff] %v6733_v24  ;;  %v6762_v18 = vxor.u32 %v1607_v51, %v6625_v19  ;;  %v6765_v6 = vxor.u32 %v1608_v12, %v9152_v58  ;;  %v8354_v50 = vmul.u32 2246822507, %v6697_v33  ;;  %v6770_v16 = vxor.u32 %v1609_v56, %v9153_v60  ;;  %v9164_v34 = vld [vmem:[#allocation28_spill] sm:$0xff] }
 0x1fa   : > { %v6773_v41 = vxor.u32 %v1610_v29, %v6637_v25  ;;  %v8356_v22 = vmul.u32 2246822507, %v6703_v39  ;;  %v6778_v51 = vxor.u32 %v1611_v26, %v9154_v52  ;;  %v6781_v12 = vxor.u32 %v1612_v55, %v9155_v61  ;;  %v9157_v55 = vld [vmem:[#allocation25_spill] sm:$0xff] }
 0x1fb   : > { %v8357_v1 = vmul.u32 2246822507, %v6706_v8  ;;  %v8358_v19 = vmul.u32 2246822507, %v6709_v63  ;;  %v6786_v56 = vxor.u32 %v1613_v31, %v6649_v15  ;;  %v6789_v29 = vxor.u32 %v1614_v2, %v9156_v30  ;;  %v9162_v15 = vld [vmem:[#allocation27_spill] sm:$0xff] }
 0x1fc   : > { %v8359_v25 = vmul.u32 2246822507, %v6712_v28  ;;  %v8360_v57 = vmul.u32 2246822507, %v6715_v14  ;;  %v6797_v47 = vadd.s32 %v9158_v36, %v9157_v55  ;;  %v6801_v43 = vadd.s32 %v9158_v36, %v9160_v46 }
 0x1fd   : > { %v8361_v26 = vmul.u32 2246822507, %v6718_v20  ;;  %v8362_v10 = vmul.u32 2246822507, %v6721_v38  ;;  %v6807_v45 = vadd.s32 %v9158_v36, %v9162_v15  ;;  %v6811_v27 = vadd.s32 %v9158_v36, %v9164_v34 }
 0x1fe   : > { %9159 = vst [vmem:[#allocation93_spill] sm:$0xff] %v6797_v47  ;;  %9161 = vst [vmem:[#allocation96_spill] sm:$0xff] %v6801_v43  ;;  %v8365_v31 = vmul.u32 2246822507, %v6724_v59  ;;  %v8368_v2 = vmul.u32 2246822507, %v6727_v3 }
 0x1ff   : > { %9163 = vst [vmem:[#allocation97_spill] sm:$0xff] %v6807_v45  ;;  %9165 = vst [vmem:[#allocation98_spill] sm:$0xff] %v6811_v27  ;;  %v8373_v40 = vmul.u32 2246822507, %v6730_v21  ;;  %v8376_v42 = vmul.u32 2246822507, %v6733_v24 }
 0x200   : > { %v1679_v32 = vshrl.u32 %v8366_v17, 15  ;;  %v1680_v48 = vshrl.u32 %v8364_v7, 15  ;;  %v1663_v58 = vmul.u32 2246822507, %v6736_v49  ;;  %v1664_v60 = vmul.u32 2246822507, %v6739_v35 }
 0x201   : > { %v1681_v52 = vshrl.u32 %v8363_v0, 15  ;;  %v1682_v61 = vshrl.u32 %v8354_v50, 15  ;;  %v1665_v30 = vmul.u32 2246822507, %v6742_v9  ;;  %v1666_v55 = vmul.u32 2246822507, %v6745_v13 }
 0x202   : > { %v1683_v46 = vshrl.u32 %v8355_v11, 15  ;;  %v1684_v15 = vshrl.u32 %v8356_v22, 15  ;;  %v1667_v49 = vmul.u32 2246822507, %v6748_v53  ;;  %v1668_v35 = vmul.u32 2246822507, %v6751_v5 }
 0x203   : > { %v1685_v34 = vshrl.u32 %v8357_v1, 15  ;;  %v1686_v50 = vshrl.u32 %v8358_v19, 15  ;;  %v1669_v9 = vmul.u32 2246822507, %v6754_v4  ;;  %v1670_v13 = vmul.u32 2246822507, %v6757_v44 }
 0x204   : > { %v1687_v11 = vshrl.u32 %v8359_v25, 15  ;;  %v1688_v22 = vshrl.u32 %v8360_v57, 15  ;;  %v1671_v53 = vmul.u32 2246822507, %v6762_v18  ;;  %v1672_v5 = vmul.u32 2246822507, %v6765_v6 }
 0x205   : > { %v1689_v1 = vshrl.u32 %v8361_v26, 15  ;;  %v1690_v19 = vshrl.u32 %v8362_v10, 15  ;;  %v1673_v4 = vmul.u32 2246822507, %v6770_v16  ;;  %v1674_v44 = vmul.u32 2246822507, %v6773_v41 }
 0x206   : > { %v1691_v25 = vshrl.u32 %v8365_v31, 15  ;;  %v1692_v57 = vshrl.u32 %v8368_v2, 15  ;;  %v1675_v18 = vmul.u32 2246822507, %v6778_v51  ;;  %v1676_v6 = vmul.u32 2246822507, %v6781_v12 }
 0x207   : > { %v1693_v26 = vshrl.u32 %v8373_v40, 15  ;;  %v1694_v10 = vshrl.u32 %v8376_v42, 15  ;;  %v1677_v16 = vmul.u32 2246822507, %v6786_v56  ;;  %v1678_v41 = vmul.u32 2246822507, %v6789_v29 }
 0x208   : > { %v1695_v0 = vshrl.u32 %v1663_v58, 15  ;;  %v1696_v7 = vshrl.u32 %v1664_v60, 15  ;;  %v1697_v31 = vshrl.u32 %v1665_v30, 15  ;;  %v1698_v17 = vshrl.u32 %v1666_v55, 15 }
 0x209   : > { %v1699_v27 = vshrl.u32 %v1667_v49, 15  ;;  %v1700_v2 = vshrl.u32 %v1668_v35, 15  ;;  %v1701_v45 = vshrl.u32 %v1669_v9, 15  ;;  %v1702_v51 = vshrl.u32 %v1670_v13, 15 }
 0x20a   : > { %v1703_v43 = vshrl.u32 %v1671_v53, 15  ;;  %v1704_v12 = vshrl.u32 %v1672_v5, 15  ;;  %v1705_v47 = vshrl.u32 %v1673_v4, 15  ;;  %v1706_v36 = vshrl.u32 %v1674_v44, 15 }
 0x20b   : > { %v1707_v40 = vshrl.u32 %v1675_v18, 15  ;;  %v1708_v21 = vshrl.u32 %v1676_v6, 15  ;;  %v1709_v24 = vshrl.u32 %v1677_v16, 15  ;;  %v1710_v42 = vshrl.u32 %v1678_v41, 15 }
 0x20c   : > { %v9166_v56 = vmul.u32 2246822507, %v6688_v23  ;;  %v9167_v29 = vmul.u32 2246822507, %v6691_v54 }
 0x20d   : > { %v9168_v38 = vmul.u32 2246822507, %v6694_v37  ;;  %v9169_v14 = vmul.u32 2246822507, %v6697_v33 }
 0x20e   : > { %v1711_v3 = vxor.u32 %v1679_v32, %v9166_v56  ;;  %v6867_v59 = vxor.u32 %v1680_v48, %v9167_v29  ;;  %v9170_v63 = vmul.u32 2246822507, %v6700_v62  ;;  %v9171_v23 = vmul.u32 2246822507, %v6703_v39  ;;  %v9172_v56 = vld [vmem:[#allocation60_spill] sm:$0xff]  ;;  %v9174_v29 = vld [vmem:[#allocation99_spill] sm:$0xff] }
 0x20f   : > { %v6871_v20 = vxor.u32 %v1681_v52, %v9168_v38  ;;  %v6875_v28 = vxor.u32 %v1682_v61, %v9169_v14  ;;  %v9173_v54 = vmul.u32 2246822507, %v9172_v56  ;;  %v9175_v37 = vmul.u32 2246822507, %v9174_v29  ;;  %v9176_v52 = vld [vmem:[#allocation100_spill] sm:$0xff]  ;;  %v9178_v61 = vld [vmem:[#allocation101_spill] sm:$0xff] }
 0x210   : > { %v6879_v8 = vxor.u32 %v1683_v46, %v9170_v63  ;;  %v6883_v32 = vxor.u32 %v1684_v15, %v9171_v23  ;;  %v9177_v33 = vmul.u32 2246822507, %v9176_v52  ;;  %v9179_v62 = vmul.u32 2246822507, %v9178_v61  ;;  %v9180_v46 = vld [vmem:[#allocation102_spill] sm:$0xff]  ;;  %v9182_v23 = vld [vmem:[#allocation103_spill] sm:$0xff] }
 0x211   : > { %v6887_v48 = vxor.u32 %v1685_v34, %v9173_v54  ;;  %v6891_v38 = vxor.u32 %v1686_v50, %v9175_v37  ;;  %v9181_v39 = vmul.u32 2246822507, %v9180_v46  ;;  %v9183_v56 = vmul.u32 2246822507, %v9182_v23  ;;  %v9184_v54 = vld [vmem:[#allocation104_spill] sm:$0xff]  ;;  %v9186_v37 = vld [vmem:[#allocation87_spill] sm:$0xff] }
 0x212   : > { %v6895_v14 = vxor.u32 %v1687_v11, %v9177_v33  ;;  %v6899_v63 = vxor.u32 %v1688_v22, %v9179_v62  ;;  %v9185_v29 = vmul.u32 2246822507, %v9184_v54  ;;  %v9187_v52 = vmul.u32 2246822507, %v9186_v37  ;;  %v9188_v33 = vld [vmem:[#allocation61_spill] sm:$0xff]  ;;  %v9190_v62 = vld [vmem:[#allocation62_spill] sm:$0xff] }
 0x213   : > { %v6903_v15 = vxor.u32 %v1689_v1, %v9181_v39  ;;  %v6907_v34 = vxor.u32 %v1690_v19, %v9183_v56  ;;  %v9189_v61 = vmul.u32 2246822507, %v9188_v33  ;;  %v9191_v46 = vmul.u32 2246822507, %v9190_v62  ;;  %v9223_v33 = vld [vmem:[#allocation70_spill] sm:$0xff] }
 0x214   : > { %v6911_v50 = vxor.u32 %v1691_v25, %v9185_v29  ;;  %v6915_v11 = vxor.u32 %v1692_v57, %v9187_v52  ;;  %v6925_v39 = vxor.u32 %v1695_v0, %v1663_v58  ;;  %v6927_v19 = vxor.u32 %v1696_v7, %v1664_v60  ;;  %v9197_v58 = vld [vmem:[#allocation64_spill] sm:$0xff] }
 0x215   : > { %v6919_v22 = vxor.u32 %v1693_v26, %v9189_v61  ;;  %v6923_v1 = vxor.u32 %v1694_v10, %v9191_v46  ;;  %v6929_v23 = vxor.u32 %v1697_v31, %v1665_v30  ;;  %v6931_v25 = vxor.u32 %v1698_v17, %v1666_v55 }
 0x216   : > { %v6933_v56 = vxor.u32 %v1699_v27, %v1667_v49  ;;  %v6935_v57 = vxor.u32 %v1700_v2, %v1668_v35  ;;  %v6937_v54 = vxor.u32 %v1701_v45, %v1669_v9  ;;  %v6939_v26 = vxor.u32 %v1702_v51, %v1670_v13  ;;  %v9193_v45 = vld [vmem:[#allocation29_spill] sm:$0xff] }
 0x217   : > { %v6941_v29 = vxor.u32 %v1703_v43, %v1671_v53  ;;  %v6943_v10 = vxor.u32 %v1704_v12, %v1672_v5  ;;  %v6945_v0 = vxor.u32 %v1705_v47, %v1673_v4  ;;  %v6947_v7 = vxor.u32 %v1706_v36, %v1674_v44  ;;  %v9202_v49 = vld [vmem:[#allocation65_spill] sm:$0xff]  ;;  %v9207_v5 = vld [vmem:[#allocation66_spill] sm:$0xff] }
 0x218   : > { %v6949_v31 = vxor.u32 %v1707_v40, %v1675_v18  ;;  %v6951_v17 = vxor.u32 %v1708_v21, %v1676_v6  ;;  %v6953_v27 = vxor.u32 %v1709_v24, %v1677_v16  ;;  %v6955_v2 = vxor.u32 %v1710_v42, %v1678_v41  ;;  %v9194_v40 = vld [vmem:[#allocation63_spill] sm:$0xff] }
 0x219   : > { %vm1743_vm3 = vcmp.ge.u32.totalorder %v1711_v3, 2147483648  ;;  %vm1744_vm4 = vcmp.ge.u32.totalorder %v6867_v59, 2147483648  ;;  %vm1745_vm5 = vcmp.ge.u32.totalorder %v6871_v20, 2147483648  ;;  %vm1746_vm10 = vcmp.ge.u32.totalorder %v6875_v28, 2147483648  ;;  %v9212_v16 = vld [vmem:[#allocation67_spill] sm:$0xff] }
 0x21a   : > { %vm1747_vm11 = vcmp.ge.u32.totalorder %v6879_v8, 2147483648  ;;  %vm1748_vm12 = vcmp.ge.u32.totalorder %v6883_v32, 2147483648  ;;  %vm1762_vm9 = vcmp.ge.u32.totalorder %v6931_v25, 2147483648  ;;  %vm1766_vm0 = vcmp.ge.u32.totalorder %v6939_v26, 2147483648 }
 0x21b   : > { %vm1767_vm1 = vcmp.ge.u32.totalorder %v6941_v29, 2147483648  ;;  %vm1768_vm2 = vcmp.ge.u32.totalorder %v6943_v10, 2147483648  ;;  %vm1769_vm6 = vcmp.ge.u32.totalorder %v6945_v0, 2147483648  ;;  %vm1770_vm7 = vcmp.ge.u32.totalorder %v6947_v7, 2147483648  ;;  %v9234_v29 = vld [vmem:[#allocation24_spill] sm:$0xff]  ;;  %v9236_v0 = vld [vmem:[#allocation74_spill] sm:$0xff] }
 0x21c   : > { %vm1771_vm8 = vcmp.ge.u32.totalorder %v6949_v31, 2147483648  ;;  %v9192_v21 = vmov 0.0   ;;  %vm1772_vm13 = vcmp.ge.u32.totalorder %v6951_v17, 2147483648  ;;  %vm1773_vm14 = vcmp.ge.u32.totalorder %v6953_v27, 2147483648  ;;  %v9238_v31 = vld [vmem:[#allocation75_spill] sm:$0xff]  ;;  %v9240_v27 = vld [vmem:[#allocation76_spill] sm:$0xff] }
 0x21d   : > { %v1775_v24 = vsel %vm1743_vm3, 0.44444445, %v9192_v21  ;;  %vm1774_vm15 = vcmp.ge.u32.totalorder %v6955_v2, 2147483648  ;;  %v1776_v36 = vsel %vm1744_vm4, 0.44444445, %v9192_v21  ;;  %v7004_v42 = vadd.s32 %v9194_v40, %v9193_v45  ;;  %v9242_v2 = vld [vmem:[#allocation77_spill] sm:$0xff] }
 0x21e   : > { %v1777_v47 = vsel %vm1745_vm5, 0.44444445, %v9192_v21  ;;  %v1778_v43 = vsel %vm1746_vm10, 0.44444445, %v9192_v21  ;;  %v1779_v3 = vsel %vm1747_vm11, 0.44444445, %v9192_v21  ;;  %v7016_v60 = vadd.f32 %v1775_v24, %v9197_v58 }
 0x21f   : > { %v1780_v59 = vsel %vm1748_vm12, 0.44444445, %v9192_v21  ;;  %vm9195_vm3 = vcmp.ge.u32.totalorder %v6887_v48, 2147483648  ;;  %vm9196_vm4 = vcmp.ge.u32.totalorder %v6891_v38, 2147483648  ;;  %vm9199_vm5 = vcmp.ge.u32.totalorder %v6895_v14, 2147483648  ;;  %v9216_v48 = vld [vmem:[#allocation68_spill] sm:$0xff] }
 0x220   : > { %v1781_v20 = vsel %vm9195_vm3, 0.44444445, %v9192_v21  ;;  %v1782_v28 = vsel %vm9196_vm4, 0.44444445, %v9192_v21  ;;  %9198 = vst [vmem:[#allocation57_spill] sm:$0xff] %v7016_v60  ;;  %vm9200_vm10 = vcmp.ge.u32.totalorder %v6899_v63, 2147483648  ;;  %v7028_v35 = vadd.f32 %v1776_v36, %v9202_v49 }
 0x221   : > { %v1783_v8 = vsel %vm9199_vm5, 0.44444445, %v9192_v21  ;;  %v1784_v30 = vsel %vm9200_vm10, 0.44444445, %v9192_v21  ;;  %vm9201_vm11 = vcmp.ge.u32.totalorder %v6903_v15, 2147483648  ;;  %vm9204_vm12 = vcmp.ge.u32.totalorder %v6907_v34, 2147483648 }
 0x222   : > { %v1785_v55 = vsel %vm9201_vm11, 0.44444445, %v9192_v21  ;;  %9203 = vst [vmem:[#allocation58_spill] sm:$0xff] %v7028_v35  ;;  %v1786_v9 = vsel %vm9204_vm12, 0.44444445, %v9192_v21  ;;  %vm9205_vm3 = vcmp.ge.u32.totalorder %v6911_v50, 2147483648  ;;  %v7040_v4 = vadd.f32 %v1777_v47, %v9207_v5 }
 0x223   : > { %v1787_v13 = vsel %vm9205_vm3, 0.44444445, %v9192_v21  ;;  %vm9206_vm4 = vcmp.ge.u32.totalorder %v6915_v11, 2147483648  ;;  %vm9209_vm5 = vcmp.ge.u32.totalorder %v6919_v22, 2147483648  ;;  %vm9210_vm10 = vcmp.ge.u32.totalorder %v6923_v1, 2147483648  ;;  %v9221_v34 = vld [vmem:[#allocation69_spill] sm:$0xff] }
 0x224   : > { %v1788_v53 = vsel %vm9206_vm4, 0.44444445, %v9192_v21  ;;  %9208 = vst [vmem:[#allocation59_spill] sm:$0xff] %v7040_v4  ;;  %v1789_v44 = vsel %vm9209_vm5, 0.44444445, %v9192_v21  ;;  %vm9211_vm11 = vcmp.ge.u32.totalorder %v6925_v39, 2147483648  ;;  %v7052_v41 = vadd.f32 %v1778_v43, %v9212_v16 }
 0x225   : > { %v1790_v18 = vsel %vm9210_vm10, 0.44444445, %v9192_v21  ;;  %v1791_v6 = vsel %vm9211_vm11, 0.44444445, %v9192_v21  ;;  %vm9214_vm12 = vcmp.ge.u32.totalorder %v6927_v19, 2147483648  ;;  %vm9215_vm3 = vcmp.ge.u32.totalorder %v6929_v23, 2147483648 }
 0x226   : > { %9213 = vst [vmem:[#allocation25_spill] sm:$0xff] %v7052_v41  ;;  %v1792_v51 = vsel %vm9214_vm12, 0.44444445, %v9192_v21  ;;  %v1793_v12 = vsel %vm9215_vm3, 0.44444445, %v9192_v21  ;;  %v7064_v38 = vadd.f32 %v1779_v3, %v9216_v48  ;;  %vm9218_vm4 = vcmp.ge.u32.totalorder %v6933_v56, 2147483648 }
 0x227   : > { %v1794_v32 = vsel %vm1762_vm9, 0.44444445, %v9192_v21  ;;  %v1795_v14 = vsel %vm9218_vm4, 0.44444445, %v9192_v21  ;;  %vm9219_vm5 = vcmp.ge.u32.totalorder %v6935_v57, 2147483648  ;;  %vm9220_vm10 = vcmp.ge.u32.totalorder %v6937_v54, 2147483648 }
 0x228   : > { %9217 = vst [vmem:[#allocation26_spill] sm:$0xff] %v7064_v38  ;;  %v1796_v63 = vsel %vm9219_vm5, 0.44444445, %v9192_v21  ;;  %v1797_v15 = vsel %vm9220_vm10, 0.44444445, %v9192_v21  ;;  %v7076_v50 = vadd.f32 %v1780_v59, %v9221_v34  ;;  %v7088_v61 = vadd.f32 %v1781_v20, %v9223_v33  ;;  %v9225_v1 = vld [vmem:[#allocation71_spill] sm:$0xff] }
 0x229   : > { %v1798_v37 = vsel %vm1766_vm0, 0.44444445, %v9192_v21  ;;  %v1799_v52 = vsel %vm1767_vm1, 0.44444445, %v9192_v21  ;;  %v1800_v11 = vsel %vm1768_vm2, 0.44444445, %v9192_v21  ;;  %v7100_v39 = vadd.f32 %v1782_v28, %v9225_v1 }
 0x22a   : > { %9222 = vst [vmem:[#allocation27_spill] sm:$0xff] %v7076_v50  ;;  %9224 = vst [vmem:[#allocation28_spill] sm:$0xff] %v7088_v61  ;;  %v1801_v22 = vsel %vm1769_vm6, 0.44444445, %v9192_v21  ;;  %v1802_v62 = vsel %vm1770_vm7, 0.44444445, %v9192_v21  ;;  %v7124_v10 = vadd.f32 %v1785_v55, %v9234_v29  ;;  %v7127_v7 = vadd.f32 %v1786_v9, %v9236_v0 }
 0x22b   : > { %v1803_v46 = vsel %vm1771_vm8, 0.44444445, %v9192_v21  ;;  %9226 = vst [vmem:[#allocation60_spill] sm:$0xff] %v7100_v39  ;;  %v7105_v19 = vsel %vm1772_vm13, 0.44444445, %v9192_v21  ;;  %v9230_v56 = vld [vmem:[#allocation72_spill] sm:$0xff]  ;;  %v7130_v17 = vadd.f32 %v1787_v13, %v9238_v31  ;;  %v7133_v24 = vadd.f32 %v1788_v53, %v9240_v27 }
 0x22c   : > { %9227 = vst [vmem:[#allocation99_spill] sm:$0xff] %v7105_v19  ;;  %v7110_v23 = vsel %vm1773_vm14, 0.44444445, %v9192_v21  ;;  %v7115_v25 = vsel %vm1774_vm15, 0.44444445, %v9192_v21  ;;  %v7118_v57 = vadd.f32 %v1783_v8, %v9230_v56  ;;  %v9232_v54 = vld [vmem:[#allocation73_spill] sm:$0xff]  ;;  %v7136_v21 = vadd.f32 %v1789_v44, %v9242_v2 }
 0x22d   : > { %9228 = vst [vmem:[#allocation100_spill] sm:$0xff] %v7110_v23  ;;  %9229 = vst [vmem:[#allocation101_spill] sm:$0xff] %v7115_v25  ;;  %v7121_v26 = vadd.f32 %v1784_v30, %v9232_v54  ;;  %v9244_v36 = vld [vmem:[#allocation78_spill] sm:$0xff]  ;;  %v9246_v43 = vld [vmem:[#allocation79_spill] sm:$0xff] }
 0x22e   : > { %9231 = vst [vmem:[#allocation102_spill] sm:$0xff] %v7118_v57  ;;  %9235 = vst [vmem:[#allocation104_spill] sm:$0xff] %v7124_v10  ;;  %v7139_v47 = vadd.f32 %v1790_v18, %v9244_v36  ;;  %v7142_v3 = vadd.f32 %v1791_v6, %v9246_v43  ;;  %v9248_v45 = vld [vmem:[#allocation80_spill] sm:$0xff]  ;;  %v9250_v20 = vld [vmem:[#allocation81_spill] sm:$0xff] }
 0x22f   : > { %9233 = vst [vmem:[#allocation103_spill] sm:$0xff] %v7121_v26  ;;  %9237 = vst [vmem:[#allocation87_spill] sm:$0xff] %v7127_v7  ;;  %v7145_v59 = vadd.f32 %v1792_v51, %v9248_v45  ;;  %v7148_v28 = vadd.f32 %v1793_v12, %v9250_v20  ;;  %v9252_v58 = vld [vmem:[#allocation82_spill] sm:$0xff]  ;;  %v9254_v30 = vld [vmem:[#allocation83_spill] sm:$0xff] }
 0x230   : > { %9239 = vst [vmem:[#allocation61_spill] sm:$0xff] %v7130_v17  ;;  %9241 = vst [vmem:[#allocation62_spill] sm:$0xff] %v7133_v24  ;;  %v7151_v8 = vadd.f32 %v1794_v32, %v9252_v58  ;;  %v7154_v55 = vadd.f32 %v1795_v14, %v9254_v30  ;;  %v9256_v49 = vld [vmem:[#allocation84_spill] sm:$0xff]  ;;  %v9258_v13 = vld [vmem:[#allocation85_spill] sm:$0xff] }
 0x231   : > { %9243 = vst [vmem:[#allocation29_spill] sm:$0xff] %v7136_v21  ;;  %9245 = vst [vmem:[#allocation63_spill] sm:$0xff] %v7139_v47  ;;  %v7157_v9 = vadd.f32 %v1796_v63, %v9256_v49  ;;  %v7160_v53 = vadd.f32 %v1797_v15, %v9258_v13  ;;  %v9260_v5 = vld [vmem:[#allocation86_spill] sm:$0xff]  ;;  %v9262_v18 = vld [vmem:[#allocation88_spill] sm:$0xff] }
 0x232   : > { %9247 = vst [vmem:[#allocation64_spill] sm:$0xff] %v7142_v3  ;;  %9249 = vst [vmem:[#allocation65_spill] sm:$0xff] %v7145_v59  ;;  %v7163_v44 = vadd.f32 %v1798_v37, %v9260_v5  ;;  %v7166_v6 = vadd.f32 %v1799_v52, %v9262_v18  ;;  %v9264_v16 = vld [vmem:[#allocation89_spill] sm:$0xff]  ;;  %v9266_v12 = vld [vmem:[#allocation90_spill] sm:$0xff] }
 0x233   : > { %9251 = vst [vmem:[#allocation66_spill] sm:$0xff] %v7148_v28  ;;  %9253 = vst [vmem:[#allocation67_spill] sm:$0xff] %v7151_v8  ;;  %v7169_v51 = vadd.f32 %v1800_v11, %v9264_v16  ;;  %v7172_v32 = vadd.f32 %v1801_v22, %v9266_v12  ;;  %v9268_v48 = vld [vmem:[#allocation91_spill] sm:$0xff]  ;;  %v9270_v63 = vld [vmem:[#allocation92_spill] sm:$0xff] }
 0x234   : > { %9255 = vst [vmem:[#allocation68_spill] sm:$0xff] %v7154_v55  ;;  %9257 = vst [vmem:[#allocation69_spill] sm:$0xff] %v7157_v9  ;;  %v7175_v14 = vadd.f32 %v1802_v62, %v9268_v48  ;;  %v7178_v34 = vadd.f32 %v1803_v46, %v9270_v63  ;;  %v9272_v15 = vld [vmem:[#allocation30_spill] sm:$0xff]  ;;  %v9273_v37 = vld [vmem:[#allocation31_spill] sm:$0xff]  ;;  %v1877_v55 = vshrl.u32 %v7004_v42, 16 }
 0x235   : > { %9259 = vst [vmem:[#allocation70_spill] sm:$0xff] %v7160_v53  ;;  %9261 = vst [vmem:[#allocation71_spill] sm:$0xff] %v7163_v44  ;;  %v7182_v33 = vadd.s32 %v9194_v40, %v9272_v15  ;;  %v7186_v52 = vadd.s32 %v9194_v40, %v9273_v37  ;;  %v9274_v1 = vld [vmem:[#allocation32_spill] sm:$0xff]  ;;  %v9275_v22 = vld [vmem:[#allocation33_spill] sm:$0xff] }
 0x236   : > { %9263 = vst [vmem:[#allocation72_spill] sm:$0xff] %v7166_v6  ;;  %9265 = vst [vmem:[#allocation73_spill] sm:$0xff] %v7169_v51  ;;  %v7190_v11 = vadd.s32 %v9194_v40, %v9274_v1  ;;  %v7194_v56 = vadd.s32 %v9194_v40, %v9275_v22  ;;  %v9276_v62 = vld [vmem:[#allocation34_spill] sm:$0xff]  ;;  %v9277_v54 = vld [vmem:[#allocation35_spill] sm:$0xff] }
 0x237   : > { %9267 = vst [vmem:[#allocation24_spill] sm:$0xff] %v7172_v32  ;;  %9269 = vst [vmem:[#allocation74_spill] sm:$0xff] %v7175_v14  ;;  %v7198_v46 = vadd.s32 %v9194_v40, %v9276_v62  ;;  %v7202_v29 = vadd.s32 %v9194_v40, %v9277_v54  ;;  %v9278_v0 = vld [vmem:[#allocation36_spill] sm:$0xff]  ;;  %v9279_v27 = vld [vmem:[#allocation37_spill] sm:$0xff]  ;;  %v1879_v8 = vshrl.u32 %v7186_v52, 16 }
 0x238   : > { %9271 = vst [vmem:[#allocation75_spill] sm:$0xff] %v7178_v34  ;;  %v7206_v31 = vadd.s32 %v9194_v40, %v9278_v0  ;;  %v7210_v2 = vadd.s32 %v9194_v40, %v9279_v27  ;;  %v9280_v36 = vld [vmem:[#allocation38_spill] sm:$0xff]  ;;  %v9281_v45 = vld [vmem:[#allocation39_spill] sm:$0xff]  ;;  %v9282_v58 = vld [vmem:[#allocation40_spill] sm:$0xff]  ;;  %v1881_v28 = vshrl.u32 %v7194_v56, 16 }
 0x239   : > { %v7214_v43 = vadd.s32 %v9194_v40, %v9280_v36  ;;  %v7218_v20 = vadd.s32 %v9194_v40, %v9281_v45  ;;  %v7222_v30 = vadd.s32 %v9194_v40, %v9282_v58  ;;  %v9283_v49 = vld [vmem:[#allocation41_spill] sm:$0xff]  ;;  %v9284_v5 = vld [vmem:[#allocation42_spill] sm:$0xff]  ;;  %v9285_v16 = vld [vmem:[#allocation43_spill] sm:$0xff] }
 0x23a   : > { %v7226_v13 = vadd.s32 %v9194_v40, %v9283_v49  ;;  %v7230_v18 = vadd.s32 %v9194_v40, %v9284_v5  ;;  %v7234_v12 = vadd.s32 %v9194_v40, %v9285_v16  ;;  %v9286_v48 = vld [vmem:[#allocation44_spill] sm:$0xff]  ;;  %v9287_v15 = vld [vmem:[#allocation45_spill] sm:$0xff]  ;;  %v9288_v1 = vld [vmem:[#allocation46_spill] sm:$0xff]  ;;  %v1884_v59 = vshrl.u32 %v7206_v31, 16 }
 0x23b   : > { %v7238_v63 = vadd.s32 %v9194_v40, %v9286_v48  ;;  %v7242_v37 = vadd.s32 %v9194_v40, %v9287_v15  ;;  %v7246_v22 = vadd.s32 %v9194_v40, %v9288_v1  ;;  %v9289_v62 = vld [vmem:[#allocation47_spill] sm:$0xff]  ;;  %v9291_v0 = vld [vmem:[#allocation48_spill] sm:$0xff]  ;;  %v9293_v36 = vld [vmem:[#allocation49_spill] sm:$0xff]  ;;  %v1885_v3 = vshrl.u32 %v7210_v2, 16 }
 0x23c   : > { %v7250_v54 = vadd.s32 %v9194_v40, %v9289_v62  ;;  %v7254_v27 = vadd.s32 %v9194_v40, %v9291_v0  ;;  %v7258_v45 = vadd.s32 %v9194_v40, %v9293_v36  ;;  %v9294_v58 = vld [vmem:[#allocation50_spill] sm:$0xff]  ;;  %v9296_v5 = vld [vmem:[#allocation51_spill] sm:$0xff]  ;;  %v9298_v48 = vld [vmem:[#allocation52_spill] sm:$0xff]  ;;  %v1886_v47 = vshrl.u32 %v7214_v43, 16 }
 0x23d   : > { %v7262_v49 = vadd.s32 %v9194_v40, %v9294_v58  ;;  %v7266_v16 = vadd.s32 %v9194_v40, %v9296_v5  ;;  %v7270_v15 = vadd.s32 %v9194_v40, %v9298_v48  ;;  %v9299_v1 = vld [vmem:[#allocation53_spill] sm:$0xff]  ;;  %v9301_v0 = vld [vmem:[#allocation54_spill] sm:$0xff]  ;;  %v9303_v34 = vld [vmem:[#allocation55_spill] sm:$0xff]  ;;  %v1887_v21 = vshrl.u32 %v7218_v20, 16 }
 0x23e   : > { %9290 = vst [vmem:[#allocation76_spill] sm:$0xff] %v7250_v54  ;;  %9292 = vst [vmem:[#allocation77_spill] sm:$0xff] %v7254_v27  ;;  %v7274_v62 = vadd.s32 %v9194_v40, %v9299_v1  ;;  %v7278_v36 = vadd.s32 %v9194_v40, %v9301_v0  ;;  %v7282_v58 = vadd.s32 %v9194_v40, %v9303_v34  ;;  %v9304_v14 = vld [vmem:[#allocation56_spill] sm:$0xff]  ;;  %v9306_v32 = vld [vmem:[#allocation93_spill] sm:$0xff]  ;;  %v1878_v0 = vshrl.u32 %v7182_v33, 16 }
 0x23f   : > { %9295 = vst [vmem:[#allocation78_spill] sm:$0xff] %v7262_v49  ;;  %9297 = vst [vmem:[#allocation79_spill] sm:$0xff] %v7266_v16  ;;  %v7286_v5 = vadd.s32 %v9194_v40, %v9304_v14  ;;  %v1873_v51 = vshrl.u32 %v9306_v32, 16  ;;  %v9307_v48 = vld [vmem:[#allocation96_spill] sm:$0xff]  ;;  %v9308_v44 = vld [vmem:[#allocation97_spill] sm:$0xff]  ;;  %v1880_v34 = vshrl.u32 %v7190_v11, 16 }
 0x240   : > { %9300 = vst [vmem:[#allocation80_spill] sm:$0xff] %v7274_v62  ;;  %9302 = vst [vmem:[#allocation81_spill] sm:$0xff] %v7278_v36  ;;  %v1874_v6 = vshrl.u32 %v9307_v48, 16  ;;  %v1875_v53 = vshrl.u32 %v9308_v44, 16  ;;  %v9309_v1 = vld [vmem:[#allocation98_spill] sm:$0xff]  ;;  %v1882_v40 = vshrl.u32 %v7198_v46, 16 }
 0x241   : > { %9305 = vst [vmem:[#allocation82_spill] sm:$0xff] %v7286_v5  ;;  %v1876_v9 = vshrl.u32 %v9309_v1, 16  ;;  %v1883_v14 = vshrl.u32 %v7202_v29, 16  ;;  %v1888_v24 = vshrl.u32 %v7222_v30, 16  ;;  %v1889_v17 = vshrl.u32 %v7226_v13, 16 }
 0x242   : > { %v1890_v7 = vshrl.u32 %v7230_v18, 16  ;;  %v1891_v10 = vshrl.u32 %v7234_v12, 16  ;;  %v1892_v26 = vshrl.u32 %v7238_v63, 16  ;;  %v1893_v57 = vshrl.u32 %v7242_v37, 16 }
 0x243   : > { %v1894_v39 = vshrl.u32 %v7246_v22, 16  ;;  %v1895_v61 = vshrl.u32 %v7250_v54, 16  ;;  %v1896_v50 = vshrl.u32 %v7254_v27, 16  ;;  %v1897_v38 = vshrl.u32 %v7258_v45, 16 }
 0x244   : > { %v1898_v41 = vshrl.u32 %v7262_v49, 16  ;;  %v1899_v4 = vshrl.u32 %v7266_v16, 16  ;;  %v1900_v35 = vshrl.u32 %v7270_v15, 16  ;;  %v1901_v60 = vshrl.u32 %v7274_v62, 16 }
 0x245   : > { %v1902_v25 = vshrl.u32 %v7278_v36, 16  ;;  %v1903_v23 = vshrl.u32 %v7282_v58, 16  ;;  %v1904_v19 = vshrl.u32 %v7286_v5, 16  ;;  %v7321_v54 = vxor.u32 %v1873_v51, %v9306_v32 }
 0x246   : > { %v7324_v27 = vxor.u32 %v1874_v6, %v9307_v48  ;;  %v7327_v49 = vxor.u32 %v1875_v53, %v9308_v44  ;;  %v7330_v16 = vxor.u32 %v1876_v9, %v9309_v1  ;;  %v7333_v62 = vxor.u32 %v1877_v55, %v7004_v42 }
 0x247   : > { %v7336_v36 = vxor.u32 %v1878_v0, %v7182_v33  ;;  %v7339_v5 = vxor.u32 %v1879_v8, %v7186_v52  ;;  %v7342_v51 = vxor.u32 %v1880_v34, %v7190_v11  ;;  %v7345_v6 = vxor.u32 %v1881_v28, %v7194_v56  ;;  %v9320_v11 = vld [vmem:[#allocation77_spill] sm:$0xff] }
 0x248   : > { %v7348_v53 = vxor.u32 %v1882_v40, %v7198_v46  ;;  %v7351_v9 = vxor.u32 %v1883_v14, %v7202_v29  ;;  %v7354_v42 = vxor.u32 %v1884_v59, %v7206_v31  ;;  %v7357_v55 = vxor.u32 %v1885_v3, %v7210_v2  ;;  %v9321_v46 = vld [vmem:[#allocation78_spill] sm:$0xff]  ;;  %v9322_v29 = vld [vmem:[#allocation79_spill] sm:$0xff] }
 0x249   : > { %9310 = vst [vmem:[#allocation83_spill] sm:$0xff] %v7336_v36  ;;  %9311 = vst [vmem:[#allocation84_spill] sm:$0xff] %v7339_v5  ;;  %v7360_v8 = vxor.u32 %v1886_v47, %v7214_v43  ;;  %v7363_v44 = vxor.u32 %v1887_v21, %v7218_v20  ;;  %v7366_v28 = vxor.u32 %v1888_v24, %v7222_v30  ;;  %v9319_v24 = vld [vmem:[#allocation76_spill] sm:$0xff]  ;;  %v8400_v31 = vmul.u32 2246822507, %v7333_v62 }
 0x24a   : > { %9312 = vst [vmem:[#allocation85_spill] sm:$0xff] %v7342_v51  ;;  %9313 = vst [vmem:[#allocation86_spill] sm:$0xff] %v7345_v6  ;;  %v7369_v32 = vxor.u32 %v1889_v17, %v7226_v13  ;;  %v7372_v33 = vxor.u32 %v1890_v7, %v7230_v18  ;;  %v7375_v59 = vxor.u32 %v1891_v10, %v7234_v12  ;;  %v8405_v17 = vmul.u32 2246822507, %v7321_v54  ;;  %v9323_v43 = vld [vmem:[#allocation80_spill] sm:$0xff]  ;;  %v9324_v13 = vld [vmem:[#allocation81_spill] sm:$0xff] }
 0x24b   : > { %9314 = vst [vmem:[#allocation88_spill] sm:$0xff] %v7348_v53  ;;  %9315 = vst [vmem:[#allocation89_spill] sm:$0xff] %v7351_v9  ;;  %v7378_v3 = vxor.u32 %v1892_v26, %v7238_v63  ;;  %v7381_v47 = vxor.u32 %v1893_v57, %v7242_v37  ;;  %v7384_v21 = vxor.u32 %v1894_v39, %v7246_v22  ;;  %v8404_v7 = vmul.u32 2246822507, %v7324_v27  ;;  %v9325_v63 = vld [vmem:[#allocation82_spill] sm:$0xff] }
 0x24c   : > { %9316 = vst [vmem:[#allocation90_spill] sm:$0xff] %v7354_v42  ;;  %9317 = vst [vmem:[#allocation91_spill] sm:$0xff] %v7357_v55  ;;  %v7387_v52 = vxor.u32 %v1895_v61, %v9319_v24  ;;  %v7392_v56 = vxor.u32 %v1896_v50, %v9320_v11  ;;  %v7395_v10 = vxor.u32 %v1897_v38, %v7258_v45  ;;  %v8403_v26 = vmul.u32 2246822507, %v7327_v49 }
 0x24d   : > { %9318 = vst [vmem:[#allocation92_spill] sm:$0xff] %v7360_v8  ;;  %v8402_v57 = vmul.u32 2246822507, %v7330_v16  ;;  %v7400_v39 = vxor.u32 %v1898_v41, %v9321_v46  ;;  %v7403_v61 = vxor.u32 %v1899_v4, %v9322_v29  ;;  %v8399_v2 = vmul.u32 2246822507, %v7336_v36 }
 0x24e   : > { %v7408_v50 = vxor.u32 %v1900_v35, %v7270_v15  ;;  %v7411_v38 = vxor.u32 %v1901_v60, %v9323_v43  ;;  %v8397_v20 = vmul.u32 2246822507, %v7339_v5  ;;  %v8395_v30 = vmul.u32 2246822507, %v7342_v51 }
 0x24f   : > { %v7416_v41 = vxor.u32 %v1902_v25, %v9324_v13  ;;  %v7419_v4 = vxor.u32 %v1903_v23, %v7282_v58  ;;  %v8394_v18 = vmul.u32 2246822507, %v7345_v6  ;;  %v8392_v12 = vmul.u32 2246822507, %v7348_v53 }
 0x250   : > { %v7424_v35 = vxor.u32 %v1904_v19, %v9325_v63  ;;  %v8393_v60 = vmul.u32 2246822507, %v7351_v9  ;;  %v8396_v37 = vmul.u32 2246822507, %v7354_v42  ;;  %v1969_v22 = vshrl.u32 %v8405_v17, 15 }
 0x251   : > { %v8398_v25 = vmul.u32 2246822507, %v7357_v55  ;;  %v8401_v45 = vmul.u32 2246822507, %v7360_v8  ;;  %v1970_v23 = vshrl.u32 %v8404_v7, 15  ;;  %v1971_v15 = vshrl.u32 %v8403_v26, 15 }
 0x252   : > { %9326 = vst [vmem:[#allocation30_spill] sm:$0xff] %v7424_v35  ;;  %v1951_v19 = vmul.u32 2246822507, %v7363_v44  ;;  %v1952_v58 = vmul.u32 2246822507, %v7366_v28  ;;  %v1972_v48 = vshrl.u32 %v8402_v57, 15 }
 0x253   : > { %v1973_v1 = vshrl.u32 %v8400_v31, 15  ;;  %v1953_v0 = vmul.u32 2246822507, %v7369_v32  ;;  %v1954_v34 = vmul.u32 2246822507, %v7372_v33  ;;  %v1974_v40 = vshrl.u32 %v8399_v2, 15 }
 0x254   : > { %v1975_v14 = vshrl.u32 %v8397_v20, 15  ;;  %v1955_v44 = vmul.u32 2246822507, %v7375_v59  ;;  %v1956_v28 = vmul.u32 2246822507, %v7378_v3  ;;  %v1976_v24 = vshrl.u32 %v8395_v30, 15 }
 0x255   : > { %v1977_v11 = vshrl.u32 %v8394_v18, 15  ;;  %v1957_v32 = vmul.u32 2246822507, %v7381_v47  ;;  %v1958_v33 = vmul.u32 2246822507, %v7384_v21  ;;  %v1978_v46 = vshrl.u32 %v8392_v12, 15 }
 0x256   : > { %v1979_v29 = vshrl.u32 %v8393_v60, 15  ;;  %v1959_v59 = vmul.u32 2246822507, %v7387_v52  ;;  %v1960_v3 = vmul.u32 2246822507, %v7392_v56  ;;  %v1980_v43 = vshrl.u32 %v8396_v37, 15 }
 0x257   : > { %v1981_v13 = vshrl.u32 %v8398_v25, 15  ;;  %v1961_v47 = vmul.u32 2246822507, %v7395_v10  ;;  %v1962_v21 = vmul.u32 2246822507, %v7400_v39  ;;  %v1982_v63 = vshrl.u32 %v8401_v45, 15 }
 0x258   : > { %v1983_v12 = vshrl.u32 %v1951_v19, 15  ;;  %v1963_v60 = vmul.u32 2246822507, %v7403_v61  ;;  %v1964_v52 = vmul.u32 2246822507, %v7408_v50  ;;  %v1984_v18 = vshrl.u32 %v1952_v58, 15 }
 0x259   : > { %v1985_v56 = vshrl.u32 %v1953_v0, 15  ;;  %v1965_v30 = vmul.u32 2246822507, %v7411_v38  ;;  %v1966_v37 = vmul.u32 2246822507, %v7416_v41  ;;  %v1986_v20 = vshrl.u32 %v1954_v34, 15 }
 0x25a   : > { %v1987_v25 = vshrl.u32 %v1955_v44, 15  ;;  %v1967_v10 = vmul.u32 2246822507, %v7419_v4  ;;  %v8417_v39 = vmul.u32 2246822507, %v7424_v35  ;;  %v1988_v2 = vshrl.u32 %v1956_v28, 15 }
 0x25b   : > { %v1989_v31 = vshrl.u32 %v1957_v32, 15  ;;  %v1990_v45 = vshrl.u32 %v1958_v33, 15  ;;  %v1991_v57 = vshrl.u32 %v1959_v59, 15  ;;  %v1992_v26 = vshrl.u32 %v1960_v3, 15 }
 0x25c   : > { %v1993_v61 = vshrl.u32 %v1961_v47, 15  ;;  %v1994_v7 = vshrl.u32 %v1962_v21, 15  ;;  %v1995_v50 = vshrl.u32 %v1963_v60, 15  ;;  %v1996_v17 = vshrl.u32 %v1964_v52, 15 }
 0x25d   : > { %v1997_v8 = vshrl.u32 %v1965_v30, 15  ;;  %v1998_v55 = vshrl.u32 %v1966_v37, 15  ;;  %v1999_v38 = vshrl.u32 %v1967_v10, 15  ;;  %v9327_v41 = vmul.u32 2246822507, %v7321_v54 }
 0x25e   : > { %v9329_v4 = vmul.u32 2246822507, %v7324_v27  ;;  %v2000_v53 = vshrl.u32 %v8417_v39, 15  ;;  %v9330_v6 = vmul.u32 2246822507, %v7327_v49  ;;  %v9337_v39 = vld [vmem:[#allocation85_spill] sm:$0xff] }
 0x25f   : > { %v7478_v42 = vxor.u32 %v1969_v22, %v9327_v41  ;;  %v9331_v5 = vmul.u32 2246822507, %v7330_v16  ;;  %v9332_v54 = vmul.u32 2246822507, %v7333_v62  ;;  %v9333_v41 = vld [vmem:[#allocation83_spill] sm:$0xff] }
 0x260   : > { %v7482_v9 = vxor.u32 %v1970_v23, %v9329_v4  ;;  %v7488_v51 = vxor.u32 %v1971_v15, %v9330_v6  ;;  %v9335_v23 = vld [vmem:[#allocation84_spill] sm:$0xff]  ;;  %v9338_v49 = vmul.u32 2246822507, %v9337_v39  ;;  %v9339_v15 = vld [vmem:[#allocation86_spill] sm:$0xff] }
 0x261   : > { %9328 = vst [vmem:[#allocation31_spill] sm:$0xff] %v7478_v42  ;;  %v7492_v36 = vxor.u32 %v1972_v48, %v9331_v5  ;;  %v7496_v22 = vxor.u32 %v1973_v1, %v9332_v54  ;;  %v9334_v42 = vmul.u32 2246822507, %v9333_v41  ;;  %v9336_v4 = vmul.u32 2246822507, %v9335_v23  ;;  %v9341_v48 = vld [vmem:[#allocation88_spill] sm:$0xff] }
 0x262   : > { %v7508_v6 = vxor.u32 %v1976_v24, %v9338_v49  ;;  %v9340_v16 = vmul.u32 2246822507, %v9339_v15  ;;  %v9342_v62 = vmul.u32 2246822507, %v9341_v48  ;;  %v9343_v54 = vld [vmem:[#allocation89_spill] sm:$0xff]  ;;  %v9349_v49 = vld [vmem:[#allocation92_spill] sm:$0xff]  ;;  %v7538_v48 = vxor.u32 %v1985_v56, %v1953_v0 }
 0x263   : > { %v7500_v27 = vxor.u32 %v1974_v40, %v9334_v42  ;;  %v7504_v35 = vxor.u32 %v1975_v14, %v9336_v4  ;;  %v9344_v41 = vmul.u32 2246822507, %v9343_v54  ;;  %v9345_v40 = vld [vmem:[#allocation90_spill] sm:$0xff]  ;;  %v9347_v4 = vld [vmem:[#allocation91_spill] sm:$0xff]  ;;  %v9350_v15 = vmul.u32 2246822507, %v9349_v49 }
 0x264   : > { %v7512_v5 = vxor.u32 %v1977_v11, %v9340_v16  ;;  %v7516_v1 = vxor.u32 %v1978_v46, %v9342_v62  ;;  %v9346_v23 = vmul.u32 2246822507, %v9345_v40  ;;  %v9348_v39 = vmul.u32 2246822507, %v9347_v4  ;;  %v9365_v56 = vld [vmem:[#allocation27_spill] sm:$0xff]  ;;  %v9372_v40 = vld [vmem:[#allocation104_spill] sm:$0xff] }
 0x265   : > { %v7520_v42 = vxor.u32 %v1979_v29, %v9344_v41  ;;  %v7532_v11 = vxor.u32 %v1982_v63, %v9350_v15  ;;  %v7534_v16 = vxor.u32 %v1983_v12, %v1951_v19  ;;  %v7536_v46 = vxor.u32 %v1984_v18, %v1952_v58  ;;  %v9359_v58 = vld [vmem:[#allocation101_spill] sm:$0xff]  ;;  %v9378_v49 = vld [vmem:[#allocation62_spill] sm:$0xff] }
 0x266   : > { %v7524_v14 = vxor.u32 %v1980_v43, %v9346_v23  ;;  %v7528_v24 = vxor.u32 %v1981_v13, %v9348_v39  ;;  %v7540_v29 = vxor.u32 %v1986_v20, %v1954_v34  ;;  %v7542_v62 = vxor.u32 %v1987_v25, %v1955_v44  ;;  %v9357_v25 = vld [vmem:[#allocation100_spill] sm:$0xff]  ;;  %v9360_v34 = vld [vmem:[#allocation57_spill] sm:$0xff]  ;;  %v9374_v23 = vld [vmem:[#allocation87_spill] sm:$0xff] }
 0x267   : > { %v7544_v43 = vxor.u32 %v1988_v2, %v1956_v28  ;;  %v7546_v54 = vxor.u32 %v1989_v31, %v1957_v32  ;;  %v7548_v13 = vxor.u32 %v1990_v45, %v1958_v33  ;;  %v7550_v41 = vxor.u32 %v1991_v57, %v1959_v59  ;;  %v9361_v28 = vld [vmem:[#allocation58_spill] sm:$0xff]  ;;  %v9362_v33 = vld [vmem:[#allocation59_spill] sm:$0xff]  ;;  %v2098_v15 = vld [vmem:[%s3883_s2 + $0x8] sm:$0xff] }
 0x268   : > { %v7552_v63 = vxor.u32 %v1992_v26, %v1960_v3  ;;  %v7554_v12 = vxor.u32 %v1993_v61, %v1961_v47  ;;  %v7556_v18 = vxor.u32 %v1994_v7, %v1962_v21  ;;  %v9351_v19 = vld [vmem:[#allocation31_spill] sm:$0xff]  ;;  %vm2034_vm7 = vcmp.ge.u32.totalorder %v7482_v9, 429496730  ;;  %v9363_v3 = vld [vmem:[#allocation25_spill] sm:$0xff]  ;;  %v9364_v21 = vld [vmem:[#allocation26_spill] sm:$0xff] }
 0x269   : > { %vm2033_vm6 = vcmp.ge.u32.totalorder %v9351_v19, 429496730  ;;  %vm2035_vm8 = vcmp.ge.u32.totalorder %v7488_v51, 429496730  ;;  %v7561_v2 = vxor.u32 %v1995_v50, %v1963_v60  ;;  %vm2036_vm9 = vcmp.ge.u32.totalorder %v7492_v36, 429496730 }
 0x26a   : > { %vm2037_vm13 = vcmp.ge.u32.totalorder %v7496_v22, 429496730  ;;  %vm2038_vm14 = vcmp.ge.u32.totalorder %v7500_v27, 429496730  ;;  %v7566_v26 = vxor.u32 %v1996_v17, %v1964_v52  ;;  %vm2039_vm15 = vcmp.ge.u32.totalorder %v7504_v35, 429496730 }
 0x26b   : > { %vm2040_vm0 = vcmp.ge.u32.totalorder %v7508_v6, 429496730  ;;  %v7571_v7 = vxor.u32 %v1997_v8, %v1965_v30  ;;  %v7576_v57 = vxor.u32 %v1998_v55, %v1966_v37  ;;  %v7581_v17 = vxor.u32 %v1999_v38, %v1967_v10  ;;  %v9352_v8 = vld [vmem:[#allocation30_spill] sm:$0xff]  ;;  %v9355_v30 = vld [vmem:[#allocation99_spill] sm:$0xff]  ;;  %v9366_v61 = vld [vmem:[#allocation28_spill] sm:$0xff] }
 0x26c   : > { %v9353_v31 = vmul.u32 2246822507, %v9352_v8  ;;  %v9354_v55 = vld [vmem:[#allocation94_spill] sm:$0xff]  ;;  %v9356_v37 = vld [vmem:[#allocation95_spill] sm:$0xff]  ;;  %vm2057_vm2 = vcmp.ge.u32.totalorder %v7554_v12, 429496730 }
 0x26d   : > { %v1836_v60 = vadd.f32 %v9355_v30, %v9354_v55  ;;  %v1837_v45 = vadd.f32 %v9357_v25, %v9356_v37  ;;  %vm2058_vm12 = vcmp.ge.u32.totalorder %v7556_v18, 429496730  ;;  %vm2059_vm3 = vcmp.ge.u32.totalorder %v7561_v2, 429496730  ;;  %v9367_v51 = vld [vmem:[#allocation60_spill] sm:$0xff]  ;;  %v9368_v50 = vld [vmem:[#allocation102_spill] sm:$0xff] }
 0x26e   : > { %v7588_v20 = vxor.u32 %v2000_v53, %v9353_v31  ;;  %v9358_v53 = vld [vmem:[#allocation105_spill] sm:$0xff]  ;;  %vm2060_vm4 = vcmp.ge.u32.totalorder %v7566_v26, 429496730  ;;  %vm2061_vm5 = vcmp.ge.u32.totalorder %v7571_v7, 429496730  ;;  %v2065_v44 = vsel %vm2033_vm6, %v9360_v34, 0.0 }
 0x26f   : > { %v1838_v0 = vadd.f32 %v9359_v58, %v9358_v53  ;;  %vm2062_vm10 = vcmp.ge.u32.totalorder %v7576_v57, 429496730  ;;  %vm2063_vm1 = vcmp.ge.u32.totalorder %v7581_v17, 429496730  ;;  %v2066_v32 = vsel %vm2034_vm7, %v9361_v28, 0.0  ;;  %v9370_v22 = vld [vmem:[#allocation103_spill] sm:$0xff] }
 0x270   : > { %vm2064_vm11 = vcmp.ge.u32.totalorder %v7588_v20, 429496730  ;;  %v2067_v59 = vsel %vm2035_vm8, %v9362_v33, 0.0  ;;  %v2068_v47 = vsel %vm2036_vm9, %v9363_v3, 0.0  ;;  %v2069_v52 = vsel %vm2037_vm13, %v9364_v21, 0.0  ;;  %v9376_v6 = vld [vmem:[#allocation61_spill] sm:$0xff] }
 0x271   : > { %v2070_v10 = vsel %vm2038_vm14, %v9365_v56, 0.0  ;;  %v2071_v9 = vsel %vm2039_vm15, %v9366_v61, 0.0  ;;  %v2072_v36 = vsel %vm2040_vm0, %v9367_v51, 0.0  ;;  %vm9369_vm6 = vcmp.ge.u32.totalorder %v7512_v5, 429496730  ;;  %v9380_v19 = vld [vmem:[#allocation29_spill] sm:$0xff] }
 0x272   : > { %v2073_v38 = vsel %vm9369_vm6, %v9368_v50, 0.0  ;;  %vm9371_vm7 = vcmp.ge.u32.totalorder %v7516_v1, 429496730  ;;  %vm9373_vm8 = vcmp.ge.u32.totalorder %v7520_v42, 429496730  ;;  %v2097_v1 = vld [vmem:[%s3883_s2] sm:$0xff]  ;;  %v2130_v7 = vmul.f32 %v2098_v15, %v2066_v32 }
 0x273   : > { %v2074_v27 = vsel %vm9371_vm7, %v9370_v22, 0.0  ;;  %v2075_v35 = vsel %vm9373_vm8, %v9372_v40, 0.0  ;;  %vm9375_vm9 = vcmp.ge.u32.totalorder %v7524_v14, 429496730  ;;  %vm9377_vm13 = vcmp.ge.u32.totalorder %v7528_v24, 429496730 }
 0x274   : > { %v2076_v4 = vsel %vm9375_vm9, %v9374_v23, 0.0  ;;  %v2077_v39 = vsel %vm9377_vm13, %v9376_v6, 0.0  ;;  %vm9379_vm14 = vcmp.ge.u32.totalorder %v7532_v11, 429496730  ;;  %vm9381_vm15 = vcmp.ge.u32.totalorder %v7534_v16, 429496730 }
 0x275   : > { %v2078_v5 = vsel %vm9379_vm14, %v9378_v49, 0.0  ;;  %v2079_v42 = vsel %vm9381_vm15, %v9380_v19, 0.0  ;;  %v9382_v14 = vld [vmem:[#allocation63_spill] sm:$0xff]  ;;  %vm9383_vm0 = vcmp.ge.u32.totalorder %v7536_v46, 429496730  ;;  %v9384_v24 = vld [vmem:[#allocation64_spill] sm:$0xff] }
 0x276   : > { %v2080_v8 = vsel %vm9383_vm0, %v9382_v14, 0.0  ;;  %vm9385_vm6 = vcmp.ge.u32.totalorder %v7538_v48, 429496730  ;;  %v9386_v11 = vld [vmem:[#allocation65_spill] sm:$0xff]  ;;  %vm9387_vm7 = vcmp.ge.u32.totalorder %v7540_v29, 429496730 }
 0x277   : > { %v2081_v31 = vsel %vm9385_vm6, %v9384_v24, 0.0  ;;  %v2082_v55 = vsel %vm9387_vm7, %v9386_v11, 0.0  ;;  %v2099_v30 = vld [vmem:[%s3883_s2 + $0x10] sm:$0xff]  ;;  %v2100_v37 = vld [vmem:[%s3883_s2 + $0x18] sm:$0xff]  ;;  %v2101_v25 = vld [vmem:[%s3883_s2 + $0x20] sm:$0xff]  ;;  %v2094_v18 = vsel %vm2062_vm10, %v1836_v60, 0.0 }
 0x278   : > { %v2102_v16 = vld [vmem:[%s3883_s2 + $0x28] sm:$0xff]  ;;  %v9388_v53 = vld [vmem:[#allocation66_spill] sm:$0xff]  ;;  %vm9389_vm8 = vcmp.ge.u32.totalorder %v7542_v62, 429496730  ;;  %v9390_v58 = vld [vmem:[#allocation67_spill] sm:$0xff]  ;;  %v2095_v2 = vsel %vm2063_vm1, %v1837_v45, 0.0  ;;  %v2133_v17 = vmul.f32 %v2101_v25, %v2069_v52 }
 0x279   : > { %v2083_v46 = vsel %vm9389_vm8, %v9388_v53, 0.0  ;;  %vm9391_vm9 = vcmp.ge.u32.totalorder %v7544_v43, 429496730  ;;  %v9392_v34 = vld [vmem:[#allocation68_spill] sm:$0xff]  ;;  %vm9393_vm13 = vcmp.ge.u32.totalorder %v7546_v54, 429496730  ;;  %v2134_v45 = vmul.f32 %v2102_v16, %v2070_v10 }
 0x27a   : > { %v2084_v48 = vsel %vm9391_vm9, %v9390_v58, 0.0  ;;  %v2085_v29 = vsel %vm9393_vm13, %v9392_v34, 0.0  ;;  %v9394_v28 = vld [vmem:[#allocation69_spill] sm:$0xff]  ;;  %vm9395_vm14 = vcmp.ge.u32.totalorder %v7548_v13, 429496730  ;;  %v2103_v3 = vld [vmem:[%s3883_s2 + $0x30] sm:$0xff] }
 0x27b   : > { %v2086_v33 = vsel %vm9395_vm14, %v9394_v28, 0.0  ;;  %v2104_v21 = vld [vmem:[%s3883_s2 + $0x38] sm:$0xff]  ;;  %v2105_v56 = vld [vmem:[%s3883_s2 + $0x40] sm:$0xff]  ;;  %v2106_v61 = vld [vmem:[%s3883_s2 + $0x48] sm:$0xff]  ;;  %vm9397_vm15 = vcmp.ge.u32.totalorder %v7550_v41, 429496730 }
 0x27c   : > { %v9396_v62 = vld [vmem:[#allocation70_spill] sm:$0xff]  ;;  %v9398_v51 = vld [vmem:[#allocation71_spill] sm:$0xff]  ;;  %vm9399_vm0 = vcmp.ge.u32.totalorder %v7552_v63, 429496730  ;;  %v9400_v50 = vld [vmem:[#allocation72_spill] sm:$0xff]  ;;  %v2096_v58 = vsel %vm2064_vm11, %v1838_v0, 0.0  ;;  %v2138_v32 = vmul.f32 %v2106_v61, %v2074_v27 }
 0x27d   : > { %v2087_v43 = vsel %vm9397_vm15, %v9396_v62, 0.0  ;;  %v2088_v54 = vsel %vm9399_vm0, %v9398_v51, 0.0  ;;  %v2089_v13 = vsel %vm2057_vm2, %v9400_v50, 0.0  ;;  %v9401_v22 = vld [vmem:[#allocation73_spill] sm:$0xff]  ;;  %v2107_v23 = vld [vmem:[%s3883_s2 + $0x50] sm:$0xff]  ;;  %v2108_v6 = vld [vmem:[%s3883_s2 + $0x58] sm:$0xff]  ;;  %v2129_v62 = vmul.f32 %v2097_v1, %v2065_v44 }
 0x27e   : > { %v2090_v40 = vsel %vm2058_vm12, %v9401_v22, 0.0  ;;  %v2109_v41 = vld [vmem:[%s3883_s2 + $0x60] sm:$0xff]  ;;  %v9403_v19 = vld [vmem:[#allocation74_spill] sm:$0xff]  ;;  %v9404_v14 = vld [vmem:[#allocation75_spill] sm:$0xff]  ;;  %v2131_v50 = vmul.f32 %v2099_v30, %v2067_v59  ;;  %v2132_v22 = vmul.f32 %v2100_v37, %v2068_v47  ;;  %v2137_v44 = vmul.f32 %v2105_v56, %v2073_v38 }
 0x27f   : > { %v9402_v49 = vld [vmem:[#allocation24_spill] sm:$0xff]  ;;  %v2092_v12 = vsel %vm2060_vm4, %v9403_v19, 0.0  ;;  %v2093_v24 = vsel %vm2061_vm5, %v9404_v14, 0.0  ;;  %v2110_v11 = vld [vmem:[%s3883_s2 + $0x68] sm:$0xff]  ;;  %v2111_v53 = vld [vmem:[%s3883_s2 + $0x70] sm:$0xff]  ;;  %v2135_v19 = vmul.f32 %v2103_v3, %v2071_v9  ;;  %v2136_v14 = vmul.f32 %v2104_v21, %v2072_v36 }
 0x280   : > { %v2091_v63 = vsel %vm2059_vm3, %v9402_v49, 0.0  ;;  %v2112_v26 = vld [vmem:[%s3883_s2 + $0x78] sm:$0xff]  ;;  %v2113_v34 = vld [vmem:[%s3883_s2 + $0x80] sm:$0xff]  ;;  %v2114_v28 = vld [vmem:[%s3883_s2 + $0x88] sm:$0xff]  ;;  %v2139_v59 = vmul.f32 %v2107_v23, %v2075_v35  ;;  %v2140_v47 = vmul.f32 %v2108_v6, %v2076_v4  ;;  %v2141_v52 = vmul.f32 %v2109_v41, %v2077_v39 }
 0x281   : > { %v2115_v57 = vld [vmem:[%s3883_s2 + $0x90] sm:$0xff]  ;;  %v2116_v60 = vld [vmem:[%s3883_s2 + $0x98] sm:$0xff]  ;;  %v2117_v51 = vld [vmem:[%s3883_s2 + $0xa0] sm:$0xff]  ;;  %v2142_v37 = vmul.f32 %v2110_v11, %v2078_v5  ;;  %v2143_v3 = vmul.f32 %v2111_v53, %v2079_v42  ;;  %v2144_v9 = vmul.f32 %v2112_v26, %v2080_v8  ;;  %v2145_v21 = vmul.f32 %v2113_v34, %v2081_v31 }
 0x282   : > { %v2118_v20 = vld [vmem:[%s3883_s2 + $0xa8] sm:$0xff]  ;;  %v2119_v0 = vld [vmem:[%s3883_s2 + $0xb0] sm:$0xff]  ;;  %v2120_v49 = vld [vmem:[%s3883_s2 + $0xb8] sm:$0xff]  ;;  %v2146_v36 = vmul.f32 %v2114_v28, %v2082_v55  ;;  %v2147_v27 = vmul.f32 %v2115_v57, %v2083_v46  ;;  %v2148_v61 = vmul.f32 %v2116_v60, %v2084_v48  ;;  %v2149_v23 = vmul.f32 %v2117_v51, %v2085_v29 }
 0x283   : > { %v2121_v1 = vld [vmem:[%s3883_s2 + $0xc0] sm:$0xff]  ;;  %v2122_v15 = vld [vmem:[%s3883_s2 + $0xc8] sm:$0xff]  ;;  %v2123_v30 = vld [vmem:[%s3883_s2 + $0xd0] sm:$0xff]  ;;  %v2150_v35 = vmul.f32 %v2118_v20, %v2086_v33  ;;  %v2151_v4 = vmul.f32 %v2119_v0, %v2087_v43  ;;  %v2152_v6 = vmul.f32 %v2120_v49, %v2088_v54  ;;  %v3113_v31 = vpack.c.bf16 %v2130_v7, %v2129_v62 }
 0x284   : > { %v2124_v10 = vld [vmem:[%s3883_s2 + $0xd8] sm:$0xff]  ;;  %v2125_v25 = vld [vmem:[%s3883_s2 + $0xe0] sm:$0xff]  ;;  %v2126_v16 = vld [vmem:[%s3883_s2 + $0xe8] sm:$0xff]  ;;  %v2153_v39 = vmul.f32 %v2121_v1, %v2089_v13  ;;  %v2154_v41 = vmul.f32 %v2122_v15, %v2090_v40  ;;  %v2155_v5 = vmul.f32 %v2123_v30, %v2091_v63  ;;  %v3114_v34 = vpack.c.bf16 %v2132_v22, %v2131_v50 }
 0x285   : > { %v2127_v38 = vld [vmem:[%s3883_s2 + $0xf0] sm:$0xff]  ;;  %v2128_v56 = vld [vmem:[%s3883_s2 + $0xf8] sm:$0xff]  ;;  %v2156_v11 = vmul.f32 %v2124_v10, %v2092_v12  ;;  %v2157_v42 = vmul.f32 %v2125_v25, %v2093_v24  ;;  %v2158_v53 = vmul.f32 %v2126_v16, %v2094_v18  ;;  %v3115_v55 = vpack.c.bf16 %v2134_v45, %v2133_v17  ;;  %s2259_s2 = scalar_lea.vmem [#allocation2], %s3129_s29 }
 0x286   : > { %v2159_v8 = vmul.f32 %v2127_v38, %v2095_v2  ;;  %v2160_v26 = vmul.f32 %v2128_v56, %v2096_v58  ;;  %v3116_v28 = vpack.c.bf16 %v2136_v14, %v2135_v19  ;;  %v3117_v46 = vpack.c.bf16 %v2138_v32, %v2137_v44  ;;  %2260 = vst [vmem:[%s2259_s2] sm:$0xff] %v3113_v31 }
 0x287   : > { %v3118_v57 = vpack.c.bf16 %v2140_v47, %v2139_v59  ;;  %v3119_v48 = vpack.c.bf16 %v2142_v37, %v2141_v52  ;;  %v3120_v60 = vpack.c.bf16 %v2144_v9, %v2143_v3  ;;  %v3121_v29 = vpack.c.bf16 %v2146_v36, %v2145_v21  ;;  %2261 = vst [vmem:[%s2259_s2 + $0x8] sm:$0xff] %v3114_v34 }
 0x288   : > { %v3122_v33 = vpack.c.bf16 %v2148_v61, %v2147_v27  ;;  %v3123_v43 = vpack.c.bf16 %v2150_v35, %v2149_v23  ;;  %v3124_v54 = vpack.c.bf16 %v2152_v6, %v2151_v4  ;;  %v3125_v13 = vpack.c.bf16 %v2154_v41, %v2153_v39  ;;  %2262 = vst [vmem:[%s2259_s2 + $0x10] sm:$0xff] %v3115_v55 }
 0x289   : > { %v3126_v40 = vpack.c.bf16 %v2156_v11, %v2155_v5  ;;  %2263 = vst [vmem:[%s2259_s2 + $0x18] sm:$0xff] %v3116_v28  ;;  %2264 = vst [vmem:[%s2259_s2 + $0x20] sm:$0xff] %v3117_v46  ;;  %v3127_v63 = vpack.c.bf16 %v2158_v53, %v2157_v42  ;;  %v3128_v12 = vpack.c.bf16 %v2160_v26, %v2159_v8 }
 0x28a   : > { %2265 = vst [vmem:[%s2259_s2 + $0x28] sm:$0xff] %v3118_v57  ;;  %2266 = vst [vmem:[%s2259_s2 + $0x30] sm:$0xff] %v3119_v48 }
 0x28b   : > { %2267 = vst [vmem:[%s2259_s2 + $0x38] sm:$0xff] %v3120_v60  ;;  %2268 = vst [vmem:[%s2259_s2 + $0x40] sm:$0xff] %v3121_v29 }
 0x28c   : > { %2269 = vst [vmem:[%s2259_s2 + $0x48] sm:$0xff] %v3122_v33  ;;  %2270 = vst [vmem:[%s2259_s2 + $0x50] sm:$0xff] %v3123_v43 }
 0x28d   : > { %2271 = vst [vmem:[%s2259_s2 + $0x58] sm:$0xff] %v3124_v54  ;;  %2272 = vst [vmem:[%s2259_s2 + $0x60] sm:$0xff] %v3125_v13 }
 0x28e   : > { %2273 = vst [vmem:[%s2259_s2 + $0x68] sm:$0xff] %v3126_v40  ;;  %2274 = vst [vmem:[%s2259_s2 + $0x70] sm:$0xff] %v3127_v63 }
 0x28f   : > { %2275 = vst [vmem:[%s2259_s2 + $0x78] sm:$0xff] %v3128_v12 }
 0x290 PF: > { %v3320_v24 = vld [vmem:[%s3890_s16 + $0x74] ss:$8 sps:$4 sm:$0xff]   ;;  %v3322_v18 = vld [vmem:[%s3890_s16 + $0x70] ss:$8 sps:$4 sm:$0xff]   ;;  %v3323_v2 = vld [vmem:[%s3890_s16 + $0x64] ss:$8 sps:$4 sm:$0xff]  }
 0x291   : > { %2567 = vmatprep.subr.bf16.mxu0 %v3320_v24  ;;  %3132 = vmatprep.subr.bf16.mxu1 %v3320_v24  ;;  %v3325_v58 = vld [vmem:[%s3890_s16 + $0x60] ss:$8 sps:$4 sm:$0xff]   ;;  %v3326_v62 = vld [vmem:[%s3890_s16 + $0x54] ss:$8 sps:$4 sm:$0xff]   ;;  %v3328_v7 = vld [vmem:[%s3890_s16 + $0x50] ss:$8 sps:$4 sm:$0xff]  }
 0x292   : > { %2568 = vmatpush1.bf16.msra.mxu0 %v3322_v18  ;;  %3148 = vmatpush1.bf16.msra.mxu1 %v3322_v18  ;;  %s9405_s27 = sld [smem:[#allocation15_spill]]  ;;  %v3329_v51 = vld [vmem:[%s3890_s16 + $0x44] ss:$8 sps:$4 sm:$0xff]   ;;  %v3331_v50 = vld [vmem:[%s3890_s16 + $0x40] ss:$8 sps:$4 sm:$0xff]  }
 0x293   : > { %2569 = vmatprep.subr.bf16.mxu0 %v3323_v2  ;;  %3133 = vmatprep.subr.bf16.mxu1 %v3323_v2  ;;  %v3332_v22 = vld [vmem:[%s3890_s16 + $0x34] ss:$8 sps:$4 sm:$0xff]   ;;  %v3334_v17 = vld [vmem:[%s3890_s16 + $0x30] ss:$8 sps:$4 sm:$0xff]   ;;  %v3335_v45 = vld [vmem:[%s3890_s16 + $0x24] ss:$8 sps:$4 sm:$0xff]  }
 0x294   : > { %v3337_v20 = vld [vmem:[%s3890_s16 + $0x20] ss:$8 sps:$4 sm:$0xff]   ;;  %v3338_v0 = vld [vmem:[%s3890_s16 + $0x14] ss:$8 sps:$4 sm:$0xff]   ;;  %v3340_v19 = vld [vmem:[%s3890_s16 + $0x10] ss:$8 sps:$4 sm:$0xff]  }
 0x295   : > { %v3341_v44 = vld [vmem:[%s3890_s16 + $0x4] ss:$8 sps:$4 sm:$0xff]   ;;  %v3343_v32 = vld [vmem:[%s3890_s16] ss:$8 sps:$4 sm:$0xff]   ;;  %v3344_v1 = vld [vmem:[%s3890_s16 + $0xf4] ss:$8 sps:$4 sm:$0xff]  }
 0x296   : > { %2570 = vmatpush1.bf16.msra.mxu0 %v3325_v58  ;;  %3149 = vmatpush1.bf16.msra.mxu1 %v3325_v58  ;;  %v3346_v15 = vld [vmem:[%s3890_s16 + $0xf0] ss:$8 sps:$4 sm:$0xff]   ;;  %v3347_v30 = vld [vmem:[%s3890_s16 + $0xe4] ss:$8 sps:$4 sm:$0xff]   ;;  %v3349_v59 = vld [vmem:[%s3890_s16 + $0xe0] ss:$8 sps:$4 sm:$0xff]  }
 0x297   : > { %2571 = vmatprep.subr.bf16.mxu0 %v3326_v62  ;;  %3134 = vmatprep.subr.bf16.mxu1 %v3326_v62  ;;  %v3350_v47 = vld [vmem:[%s3890_s16 + $0xd4] ss:$8 sps:$4 sm:$0xff]   ;;  %v3352_v52 = vld [vmem:[%s3890_s16 + $0xd0] ss:$8 sps:$4 sm:$0xff]   ;;  %v3353_v37 = vld [vmem:[%s3890_s16 + $0xc4] ss:$8 sps:$4 sm:$0xff]  }
 0x298   : > { %s3130_s4 = sshll.u32 %s9405_s27, 7  ;;  %v3355_v10 = vld [vmem:[%s3890_s16 + $0xc0] ss:$8 sps:$4 sm:$0xff]   ;;  %v3356_v25 = vld [vmem:[%s3890_s16 + $0xb4] ss:$8 sps:$4 sm:$0xff]   ;;  %p3102_p0 = scmp.ne.s32.totalorder %s9405_s27, 0 }
 0x299   : > { %s7750_s8 = scalar_lea.vmem [#allocation2], %s3130_s4  ;;  %v3358_v16 = vld [vmem:[%s3890_s16 + $0xb0] ss:$8 sps:$4 sm:$0xff]   ;;  %v3359_v3 = vld [vmem:[%s3890_s16 + $0xa4] ss:$8 sps:$4 sm:$0xff]  }
 0x29a   : > { %2572 = vmatpush1.bf16.msra.mxu0 %v3328_v7  ;;  %3150 = vmatpush1.bf16.msra.mxu1 %v3328_v7  ;;  %v3370_v49 = vld [vmem:[%s7750_s8 + $0x4] ss:$8 sps:$4 sm:$0xff]   ;;  %v3361_v9 = vld [vmem:[%s3890_s16 + $0xa0] ss:$8 sps:$4 sm:$0xff]   ;;  %v3362_v21 = vld [vmem:[%s3890_s16 + $0x94] ss:$8 sps:$4 sm:$0xff]  }
 0x29b   : > { %2573 = vmatprep.subr.bf16.mxu0 %v3329_v51  ;;  %3135 = vmatprep.subr.bf16.mxu1 %v3329_v51  ;;  %v3373_v14 = vld [vmem:[%s7750_s8 + $0x44] ss:$8 sps:$4 sm:$0xff]   ;;  %v3364_v36 = vld [vmem:[%s3890_s16 + $0x90] ss:$8 sps:$4 sm:$0xff]   ;;  %v3367_v56 = vld [vmem:[%s3890_s16 + $0x80] ss:$8 sps:$4 sm:$0xff]  }
 0x29c   : > { %2599 = vmatprep.mubr.bf16.mxu0 %v3370_v49  ;;  %2639 = vmatprep.mubr.bf16.mxu1 %v3373_v14  ;;  %v3365_v38 = vld [vmem:[%s3890_s16 + $0x84] ss:$8 sps:$4 sm:$0xff]   ;;  %v3368_v27 = vld [vmem:[%s7750_s8] ss:$8 sps:$4 sm:$0xff]   ;;  %v3374_v23 = vld [vmem:[%s7750_s8 + $0x14] ss:$8 sps:$4 sm:$0xff]  }
 0x29d   : > { %v3371_v61 = vld [vmem:[%s7750_s8 + $0x40] ss:$8 sps:$4 sm:$0xff]   ;;  %v3376_v35 = vld [vmem:[%s7750_s8 + $0x54] ss:$8 sps:$4 sm:$0xff]   ;;  %v3378_v4 = vld [vmem:[%s7750_s8 + $0x10] ss:$8 sps:$4 sm:$0xff]  }
 0x29e   : > { %2574 = vmatpush1.bf16.msra.mxu0 %v3331_v50  ;;  %3151 = vmatpush1.bf16.msra.mxu1 %v3331_v50  ;;  %v3379_v6 = vld [vmem:[%s7750_s8 + $0x50] ss:$8 sps:$4 sm:$0xff]   ;;  %v3380_v39 = vld [vmem:[%s7750_s8 + $0x24] ss:$8 sps:$4 sm:$0xff]   ;;  %v3384_v5 = vld [vmem:[%s7750_s8 + $0x20] ss:$8 sps:$4 sm:$0xff]  }
 0x29f   : > { %2575 = vmatprep.subr.bf16.mxu0 %v3332_v22  ;;  %3136 = vmatprep.subr.bf16.mxu1 %v3332_v22  ;;  %v3382_v41 = vld [vmem:[%s7750_s8 + $0x64] ss:$8 sps:$4 sm:$0xff]   ;;  %v3385_v11 = vld [vmem:[%s7750_s8 + $0x60] ss:$8 sps:$4 sm:$0xff]   ;;  %v3386_v42 = vld [vmem:[%s7750_s8 + $0x34] ss:$8 sps:$4 sm:$0xff]  }
 0x2a0   : > { %v3388_v53 = vld [vmem:[%s7750_s8 + $0x74] ss:$8 sps:$4 sm:$0xff]   ;;  %v3390_v8 = vld [vmem:[%s7750_s8 + $0x30] ss:$8 sps:$4 sm:$0xff]  }
 0x2a1   : > { %v3391_v26 = vld [vmem:[%s7750_s8 + $0x70] ss:$8 sps:$4 sm:$0xff]  }
 0x2a2   : > { %2576 = vmatpush1.bf16.msra.mxu0 %v3334_v17  ;;  %3152 = vmatpush1.bf16.msra.mxu1 %v3334_v17 }
 0x2a3   : > { %2577 = vmatprep.subr.bf16.mxu0 %v3335_v45  ;;  %3137 = vmatprep.subr.bf16.mxu1 %v3335_v45 }
 0x2a6   : > { %2578 = vmatpush1.bf16.msra.mxu0 %v3337_v20  ;;  %3153 = vmatpush1.bf16.msra.mxu1 %v3337_v20 }
 0x2a7   : > { %2579 = vmatprep.subr.bf16.mxu0 %v3338_v0  ;;  %3138 = vmatprep.subr.bf16.mxu1 %v3338_v0 }
 0x2aa   : > { %2580 = vmatpush1.bf16.msra.mxu0 %v3340_v19  ;;  %3154 = vmatpush1.bf16.msra.mxu1 %v3340_v19 }
 0x2ab   : > { %2581 = vmatprep.subr.bf16.mxu0 %v3341_v44  ;;  %3139 = vmatprep.subr.bf16.mxu1 %v3341_v44 }
 0x2ae   : > { %2582 = vmatpush1.bf16.msra.mxu0 %v3343_v32  ;;  %3155 = vmatpush1.bf16.msra.mxu1 %v3343_v32 }
 0x2af   : > { %2583 = vmatprep.subr.bf16.mxu0 %v3344_v1  ;;  %3140 = vmatprep.subr.bf16.mxu1 %v3344_v1 }
 0x2b2   : > { %2584 = vmatpush2.bf16.msra.mxu0 %v3346_v15  ;;  %3156 = vmatpush2.bf16.msra.mxu1 %v3346_v15 }
 0x2b3   : > { %2585 = vmatprep.subr.bf16.mxu0 %v3347_v30  ;;  %3141 = vmatprep.subr.bf16.mxu1 %v3347_v30 }
 0x2b6   : > { %2586 = vmatpush2.bf16.msra.mxu0 %v3349_v59  ;;  %3157 = vmatpush2.bf16.msra.mxu1 %v3349_v59 }
 0x2b7   : > { %2587 = vmatprep.subr.bf16.mxu0 %v3350_v47  ;;  %3142 = vmatprep.subr.bf16.mxu1 %v3350_v47 }
 0x2ba   : > { %2588 = vmatpush2.bf16.msra.mxu0 %v3352_v52  ;;  %3158 = vmatpush2.bf16.msra.mxu1 %v3352_v52 }
 0x2bb   : > { %2589 = vmatprep.subr.bf16.mxu0 %v3353_v37  ;;  %3143 = vmatprep.subr.bf16.mxu1 %v3353_v37 }
 0x2be   : > { %2590 = vmatpush2.bf16.msra.mxu0 %v3355_v10  ;;  %3159 = vmatpush2.bf16.msra.mxu1 %v3355_v10 }
 0x2bf   : > { %2591 = vmatprep.subr.bf16.mxu0 %v3356_v25  ;;  %3144 = vmatprep.subr.bf16.mxu1 %v3356_v25 }
 0x2c2   : > { %2592 = vmatpush2.bf16.msra.mxu0 %v3358_v16  ;;  %3160 = vmatpush2.bf16.msra.mxu1 %v3358_v16 }
 0x2c3   : > { %2593 = vmatprep.subr.bf16.mxu0 %v3359_v3  ;;  %3145 = vmatprep.subr.bf16.mxu1 %v3359_v3 }
 0x2c6   : > { %2594 = vmatpush2.bf16.msra.mxu0 %v3361_v9  ;;  %3161 = vmatpush2.bf16.msra.mxu1 %v3361_v9 }
 0x2c7   : > { %2595 = vmatprep.subr.bf16.mxu0 %v3362_v21  ;;  %3146 = vmatprep.subr.bf16.mxu1 %v3362_v21 }
 0x2ca   : > { %2596 = vmatpush2.bf16.msra.mxu0 %v3364_v36  ;;  %3162 = vmatpush2.bf16.msra.mxu1 %v3364_v36 }
 0x2cb   : > { %2597 = vmatprep.subr.bf16.mxu0 %v3365_v38  ;;  %3147 = vmatprep.subr.bf16.mxu1 %v3365_v38 }
 0x2ce   : > { %2598 = vmatpush2.bf16.msra.mxu0 %v3367_v56  ;;  %3163 = vmatpush2.bf16.msra.mxu1 %v3367_v56 }
 0x2d1   : > { %2600 = vmatmul.mubr.bf16.vlgmr.msra.gmra.mxu0 %v3368_v27  ;;  %2640 = vmatmul.mubr.bf16.vlgmr.msra.gmra.mxu1 %v3371_v61 }
 0x2d2   : > { %2609 = vmatprep.mubr.bf16.mxu0 %v3374_v23  ;;  %2649 = vmatprep.mubr.bf16.mxu1 %v3376_v35 }
 0x2d9   : > { %2610 = vmatmul.mubr.bf16.gmra.mxu0 %v3378_v4  ;;  %2650 = vmatmul.mubr.bf16.gmra.mxu1 %v3379_v6 }
 0x2da   : > { %2619 = vmatprep.mubr.bf16.mxu0 %v3380_v39  ;;  %2659 = vmatprep.mubr.bf16.mxu1 %v3382_v41 }
 0x2e1   : > { %2620 = vmatmul.mubr.bf16.gmra.mxu0 %v3384_v5  ;;  %2660 = vmatmul.mubr.bf16.gmra.mxu1 %v3385_v11 }
 0x2e2   : > { %2629 = vmatprep.mubr.bf16.mxu0 %v3386_v42  ;;  %2669 = vmatprep.mubr.bf16.mxu1 %v3388_v53 }
 0x2e9   : > { %2630 = vmatmul.mubr.bf16.gmra.mxu0 %v3390_v8  ;;  %2670 = vmatmul.mubr.bf16.gmra.mxu1 %v3391_v26 }
 0x391   : > { %v7787_v31 = vpop.f32.mrf.mxu0  ;;  %v7789_v34 = vpop.f32.mrf.mxu1 }
 0x393   : > { %v7791_v55 = vpop.f32.mrf.mxu0  ;;  %v7793_v28 = vpop.f32.mrf.mxu1 }
 0x395   : > { %v7795_v46 = vpop.f32.mrf.mxu0  ;;  %v7797_v57 = vpop.f32.mrf.mxu1 }
 0x397   : > { %v7799_v48 = vpop.f32.mrf.mxu0  ;;  %v7801_v60 = vpop.f32.mrf.mxu1 }
 0x399   : > { %v7803_v29 = vpop.f32.mrf.mxu0  ;;  %v7805_v33 = vpop.f32.mrf.mxu1 }
 0x39b   : > { %v7807_v43 = vpop.f32.mrf.mxu0  ;;  %v7809_v54 = vpop.f32.mrf.mxu1 }
 0x39d   : > { %v7811_v13 = vpop.f32.mrf.mxu0  ;;  %v7813_v40 = vpop.f32.mrf.mxu1 }
 0x39f   : > { %v7815_v63 = vpop.f32.mrf.mxu0  ;;  %v7817_v12 = vpop.f32.mrf.mxu1 }
 0x3a1   : > { %v7819_v24 = vpop.f32.mrf.mxu0  ;;  %v7821_v18 = vpop.f32.mrf.mxu1 }
 0x3a3   : > { %v7823_v2 = vpop.f32.mrf.mxu0  ;;  %v7825_v58 = vpop.f32.mrf.mxu1 }
 0x3a5   : > { %v7827_v62 = vpop.f32.mrf.mxu0  ;;  %v7829_v7 = vpop.f32.mrf.mxu1 }
 0x3a7   : > { %v7831_v51 = vpop.f32.mrf.mxu0  ;;  %v7833_v50 = vpop.f32.mrf.mxu1 }
 0x3a9   : > { %v7835_v22 = vpop.f32.mrf.mxu0  ;;  %v7837_v17 = vpop.f32.mrf.mxu1 }
 0x3ab   : > { %v7839_v45 = vpop.f32.mrf.mxu0  ;;  %v7841_v20 = vpop.f32.mrf.mxu1  ;;  %2683 = sbr.rel (%p3102_p0) target bundleno = 970 (0x3ca), region = 48 }
 0x3ad   : > { %v7843_v0 = vpop.f32.mrf.mxu0  ;;  %v7845_v49 = vpop.f32.mrf.mxu1 }
 0x3af   : > { %v7847_v19 = vpop.f32.mrf.mxu0  ;;  %v7849_v14 = vpop.f32.mrf.mxu1 }
 0x3b0   : > { %v2686_v44 = vlaneseq  ;;  %v2684_v1 = vld [vmem:[%s283_s3] sm:$0x3] }
 0x3b2   : > { %v2687_v32 = vshrl.u32 %v2686_v44, 7 }
 0x3b4   : > { %v2688_v15 = vsub.s32 0, %v2687_v32  ;;  %v2692_v30 = vsub.s32 1, %v2687_v32 }
 0x3b6   : > { %v2689_v59 = vrot.slane %v2684_v1, %v2688_v15  ;;  %v2693_v47 = vrot.slane %v2684_v1, %v2692_v30 }
 0x3b8   : > { %v2696_v52 = vadd.f32 %v2689_v59, %v7787_v31  ;;  %v2697_v37 = vadd.f32 %v2693_v47, %v7791_v55  ;;  %v2698_v10 = vadd.f32 %v2689_v59, %v7795_v46  ;;  %v2699_v25 = vadd.f32 %v2693_v47, %v7799_v48 }
 0x3b9   : > { %v2700_v16 = vadd.f32 %v2689_v59, %v7803_v29  ;;  %v2701_v3 = vadd.f32 %v2693_v47, %v7807_v43  ;;  %v2702_v9 = vadd.f32 %v2689_v59, %v7811_v13  ;;  %v2703_v21 = vadd.f32 %v2693_v47, %v7815_v63 }
 0x3ba   : > { %2728 = vst [vmem:[%s3910_s6] sm:$0xff] %v2696_v52  ;;  %2729 = vst [vmem:[%s3910_s6 + $0x8] sm:$0xff] %v2697_v37  ;;  %v2704_v36 = vadd.f32 %v2689_v59, %v7819_v24  ;;  %v2705_v38 = vadd.f32 %v2693_v47, %v7823_v2  ;;  %v2706_v56 = vadd.f32 %v2689_v59, %v7827_v62 }
 0x3bb   : > { %2730 = vst [vmem:[%s3910_s6 + $0x10] sm:$0xff] %v2698_v10  ;;  %2731 = vst [vmem:[%s3910_s6 + $0x18] sm:$0xff] %v2699_v25  ;;  %v2707_v27 = vadd.f32 %v2693_v47, %v7831_v51  ;;  %v2708_v61 = vadd.f32 %v2689_v59, %v7835_v22  ;;  %v2709_v23 = vadd.f32 %v2693_v47, %v7839_v45 }
 0x3bc   : > { %2732 = vst [vmem:[%s3910_s6 + $0x20] sm:$0xff] %v2700_v16  ;;  %2733 = vst [vmem:[%s3910_s6 + $0x28] sm:$0xff] %v2701_v3  ;;  %v2710_v35 = vadd.f32 %v2689_v59, %v7843_v0  ;;  %v2711_v4 = vadd.f32 %v2693_v47, %v7847_v19  ;;  %v2712_v6 = vadd.f32 %v2689_v59, %v7789_v34 }
 0x3bd   : > { %2734 = vst [vmem:[%s3910_s6 + $0x30] sm:$0xff] %v2702_v9  ;;  %2735 = vst [vmem:[%s3910_s6 + $0x38] sm:$0xff] %v2703_v21  ;;  %v2713_v39 = vadd.f32 %v2693_v47, %v7793_v28  ;;  %v2714_v41 = vadd.f32 %v2689_v59, %v7797_v57  ;;  %v2715_v5 = vadd.f32 %v2693_v47, %v7801_v60 }
 0x3be   : > { %2736 = vst [vmem:[%s3910_s6 + $0x40] sm:$0xff] %v2704_v36  ;;  %2737 = vst [vmem:[%s3910_s6 + $0x48] sm:$0xff] %v2705_v38  ;;  %v2716_v11 = vadd.f32 %v2689_v59, %v7805_v33  ;;  %v2717_v42 = vadd.f32 %v2693_v47, %v7809_v54  ;;  %v2718_v53 = vadd.f32 %v2689_v59, %v7813_v40 }
 0x3bf   : > { %2738 = vst [vmem:[%s3910_s6 + $0x50] sm:$0xff] %v2706_v56  ;;  %2739 = vst [vmem:[%s3910_s6 + $0x58] sm:$0xff] %v2707_v27  ;;  %v2719_v8 = vadd.f32 %v2693_v47, %v7817_v12  ;;  %v2720_v26 = vadd.f32 %v2689_v59, %v7821_v18  ;;  %v2721_v44 = vadd.f32 %v2693_v47, %v7825_v58 }
 0x3c0   : > { %2740 = vst [vmem:[%s3910_s6 + $0x60] sm:$0xff] %v2708_v61  ;;  %2741 = vst [vmem:[%s3910_s6 + $0x68] sm:$0xff] %v2709_v23  ;;  %v2722_v32 = vadd.f32 %v2689_v59, %v7829_v7  ;;  %v2723_v1 = vadd.f32 %v2693_v47, %v7833_v50  ;;  %v2724_v15 = vadd.f32 %v2689_v59, %v7837_v17 }
 0x3c1   : > { %2742 = vst [vmem:[%s3910_s6 + $0x70] sm:$0xff] %v2710_v35  ;;  %2743 = vst [vmem:[%s3910_s6 + $0x78] sm:$0xff] %v2711_v4  ;;  %v2725_v30 = vadd.f32 %v2693_v47, %v7841_v20  ;;  %v2726_v52 = vadd.f32 %v2689_v59, %v7845_v49  ;;  %v2727_v37 = vadd.f32 %v2693_v47, %v7849_v14 }
 0x3c2   : > { %2744 = vst [vmem:[%s3910_s6 + $0x80] sm:$0xff] %v2712_v6  ;;  %2745 = vst [vmem:[%s3910_s6 + $0x88] sm:$0xff] %v2713_v39 }
 0x3c3   : > { %2746 = vst [vmem:[%s3910_s6 + $0x90] sm:$0xff] %v2714_v41  ;;  %2747 = vst [vmem:[%s3910_s6 + $0x98] sm:$0xff] %v2715_v5 }
 0x3c4   : > { %2748 = vst [vmem:[%s3910_s6 + $0xa0] sm:$0xff] %v2716_v11  ;;  %2749 = vst [vmem:[%s3910_s6 + $0xa8] sm:$0xff] %v2717_v42 }
 0x3c5   : > { %2750 = vst [vmem:[%s3910_s6 + $0xb0] sm:$0xff] %v2718_v53  ;;  %2751 = vst [vmem:[%s3910_s6 + $0xb8] sm:$0xff] %v2719_v8 }
 0x3c6   : > { %2752 = vst [vmem:[%s3910_s6 + $0xc0] sm:$0xff] %v2720_v26  ;;  %2753 = vst [vmem:[%s3910_s6 + $0xc8] sm:$0xff] %v2721_v44 }
 0x3c7   : > { %2754 = vst [vmem:[%s3910_s6 + $0xd0] sm:$0xff] %v2722_v32  ;;  %2755 = vst [vmem:[%s3910_s6 + $0xd8] sm:$0xff] %v2723_v1 }
 0x3c8   : > { %2756 = vst [vmem:[%s3910_s6 + $0xe0] sm:$0xff] %v2724_v15  ;;  %2757 = vst [vmem:[%s3910_s6 + $0xe8] sm:$0xff] %v2725_v30 }
 0x3c9   : > { %2758 = vst [vmem:[%s3910_s6 + $0xf0] sm:$0xff] %v2726_v52  ;;  %2759 = vst [vmem:[%s3910_s6 + $0xf8] sm:$0xff] %v2727_v37 }
 0x3ca PF: > { %s9407_s11 = sld [smem:[#allocation15_spill]] }
 0x3d0   : > { %p3103_p10 = scmp.eq.s32.totalorder %s9407_s11, 0 }
 0x3d2   : > { %2763 = sbr.rel (%p3103_p10) target bundleno = 1002 (0x3ea), region = 52 }
 0x3d7   : > { %v2764_v59 = vld [vmem:[%s3910_s6] sm:$0xff]  ;;  %v2765_v47 = vld [vmem:[%s3910_s6 + $0x8] sm:$0xff]  ;;  %v2766_v10 = vld [vmem:[%s3910_s6 + $0x10] sm:$0xff] }
 0x3d8   : > { %v2796_v25 = vadd.f32 %v2764_v59, %v7787_v31  ;;  %v2797_v16 = vadd.f32 %v2765_v47, %v7791_v55  ;;  %v2798_v3 = vadd.f32 %v2766_v10, %v7795_v46  ;;  %v2767_v9 = vld [vmem:[%s3910_s6 + $0x18] sm:$0xff]  ;;  %v2768_v21 = vld [vmem:[%s3910_s6 + $0x20] sm:$0xff]  ;;  %v2769_v36 = vld [vmem:[%s3910_s6 + $0x28] sm:$0xff] }
 0x3d9   : > { %v2799_v38 = vadd.f32 %v2767_v9, %v7799_v48  ;;  %v2800_v56 = vadd.f32 %v2768_v21, %v7803_v29  ;;  %v2801_v27 = vadd.f32 %v2769_v36, %v7807_v43  ;;  %v2770_v31 = vld [vmem:[%s3910_s6 + $0x30] sm:$0xff]  ;;  %v2771_v61 = vld [vmem:[%s3910_s6 + $0x38] sm:$0xff]  ;;  %v2772_v55 = vld [vmem:[%s3910_s6 + $0x40] sm:$0xff] }
 0x3da   : > { %2828 = vst [vmem:[%s3910_s6] sm:$0xff] %v2796_v25  ;;  %2829 = vst [vmem:[%s3910_s6 + $0x8] sm:$0xff] %v2797_v16  ;;  %v2802_v46 = vadd.f32 %v2770_v31, %v7811_v13  ;;  %v2803_v48 = vadd.f32 %v2771_v61, %v7815_v63  ;;  %v2804_v29 = vadd.f32 %v2772_v55, %v7819_v24  ;;  %v2773_v23 = vld [vmem:[%s3910_s6 + $0x48] sm:$0xff]  ;;  %v2774_v43 = vld [vmem:[%s3910_s6 + $0x50] sm:$0xff] }
 0x3db   : > { %2830 = vst [vmem:[%s3910_s6 + $0x10] sm:$0xff] %v2798_v3  ;;  %v2775_v35 = vld [vmem:[%s3910_s6 + $0x58] sm:$0xff]  ;;  %2831 = vst [vmem:[%s3910_s6 + $0x18] sm:$0xff] %v2799_v38  ;;  %v2805_v4 = vadd.f32 %v2773_v23, %v7823_v2  ;;  %v2806_v13 = vadd.f32 %v2774_v43, %v7827_v62  ;;  %v2776_v6 = vld [vmem:[%s3910_s6 + $0x60] sm:$0xff] }
 0x3dc   : > { %2832 = vst [vmem:[%s3910_s6 + $0x20] sm:$0xff] %v2800_v56  ;;  %2833 = vst [vmem:[%s3910_s6 + $0x28] sm:$0xff] %v2801_v27  ;;  %v2807_v63 = vadd.f32 %v2775_v35, %v7831_v51  ;;  %v2777_v24 = vld [vmem:[%s3910_s6 + $0x68] sm:$0xff]  ;;  %v2778_v39 = vld [vmem:[%s3910_s6 + $0x70] sm:$0xff]  ;;  %v2808_v41 = vadd.f32 %v2776_v6, %v7835_v22 }
 0x3dd   : > { %2834 = vst [vmem:[%s3910_s6 + $0x30] sm:$0xff] %v2802_v46  ;;  %2835 = vst [vmem:[%s3910_s6 + $0x38] sm:$0xff] %v2803_v48  ;;  %v2809_v2 = vadd.f32 %v2777_v24, %v7839_v45  ;;  %v2810_v62 = vadd.f32 %v2778_v39, %v7843_v0  ;;  %v2779_v5 = vld [vmem:[%s3910_s6 + $0x78] sm:$0xff]  ;;  %v2780_v51 = vld [vmem:[%s3910_s6 + $0x80] sm:$0xff] }
 0x3de   : > { %2836 = vst [vmem:[%s3910_s6 + $0x40] sm:$0xff] %v2804_v29  ;;  %v2781_v11 = vld [vmem:[%s3910_s6 + $0x88] sm:$0xff]  ;;  %2837 = vst [vmem:[%s3910_s6 + $0x48] sm:$0xff] %v2805_v4  ;;  %v2811_v42 = vadd.f32 %v2779_v5, %v7847_v19  ;;  %v2812_v22 = vadd.f32 %v2780_v51, %v7789_v34  ;;  %v2782_v53 = vld [vmem:[%s3910_s6 + $0x90] sm:$0xff] }
 0x3df   : > { %2838 = vst [vmem:[%s3910_s6 + $0x50] sm:$0xff] %v2806_v13  ;;  %2839 = vst [vmem:[%s3910_s6 + $0x58] sm:$0xff] %v2807_v63  ;;  %v2813_v45 = vadd.f32 %v2781_v11, %v7793_v28  ;;  %v2783_v0 = vld [vmem:[%s3910_s6 + $0x98] sm:$0xff]  ;;  %v2784_v8 = vld [vmem:[%s3910_s6 + $0xa0] sm:$0xff]  ;;  %v2814_v26 = vadd.f32 %v2782_v53, %v7797_v57 }
 0x3e0   : > { %2840 = vst [vmem:[%s3910_s6 + $0x60] sm:$0xff] %v2808_v41  ;;  %2841 = vst [vmem:[%s3910_s6 + $0x68] sm:$0xff] %v2809_v2  ;;  %v2815_v19 = vadd.f32 %v2783_v0, %v7801_v60  ;;  %v2816_v34 = vadd.f32 %v2784_v8, %v7805_v33  ;;  %v2785_v44 = vld [vmem:[%s3910_s6 + $0xa8] sm:$0xff]  ;;  %v2786_v28 = vld [vmem:[%s3910_s6 + $0xb0] sm:$0xff] }
 0x3e1   : > { %2842 = vst [vmem:[%s3910_s6 + $0x70] sm:$0xff] %v2810_v62  ;;  %v2787_v32 = vld [vmem:[%s3910_s6 + $0xb8] sm:$0xff]  ;;  %2843 = vst [vmem:[%s3910_s6 + $0x78] sm:$0xff] %v2811_v42  ;;  %v2817_v1 = vadd.f32 %v2785_v44, %v7809_v54  ;;  %v2818_v57 = vadd.f32 %v2786_v28, %v7813_v40  ;;  %v2788_v15 = vld [vmem:[%s3910_s6 + $0xc0] sm:$0xff] }
 0x3e2   : > { %2844 = vst [vmem:[%s3910_s6 + $0x80] sm:$0xff] %v2812_v22  ;;  %2845 = vst [vmem:[%s3910_s6 + $0x88] sm:$0xff] %v2813_v45  ;;  %v2819_v60 = vadd.f32 %v2787_v32, %v7817_v12  ;;  %v2789_v33 = vld [vmem:[%s3910_s6 + $0xc8] sm:$0xff]  ;;  %v2790_v30 = vld [vmem:[%s3910_s6 + $0xd0] sm:$0xff]  ;;  %v2820_v52 = vadd.f32 %v2788_v15, %v7821_v18 }
 0x3e3   : > { %2846 = vst [vmem:[%s3910_s6 + $0x90] sm:$0xff] %v2814_v26  ;;  %2847 = vst [vmem:[%s3910_s6 + $0x98] sm:$0xff] %v2815_v19  ;;  %v2821_v54 = vadd.f32 %v2789_v33, %v7825_v58  ;;  %v2822_v40 = vadd.f32 %v2790_v30, %v7829_v7  ;;  %v2791_v37 = vld [vmem:[%s3910_s6 + $0xd8] sm:$0xff]  ;;  %v2792_v12 = vld [vmem:[%s3910_s6 + $0xe0] sm:$0xff] }
 0x3e4   : > { %2848 = vst [vmem:[%s3910_s6 + $0xa0] sm:$0xff] %v2816_v34  ;;  %v2793_v59 = vld [vmem:[%s3910_s6 + $0xe8] sm:$0xff]  ;;  %2849 = vst [vmem:[%s3910_s6 + $0xa8] sm:$0xff] %v2817_v1  ;;  %v2823_v47 = vadd.f32 %v2791_v37, %v7833_v50  ;;  %v2824_v18 = vadd.f32 %v2792_v12, %v7837_v17  ;;  %v2794_v58 = vld [vmem:[%s3910_s6 + $0xf0] sm:$0xff] }
 0x3e5   : > { %2850 = vst [vmem:[%s3910_s6 + $0xb0] sm:$0xff] %v2818_v57  ;;  %2851 = vst [vmem:[%s3910_s6 + $0xb8] sm:$0xff] %v2819_v60  ;;  %v2825_v10 = vadd.f32 %v2793_v59, %v7841_v20  ;;  %v2795_v25 = vld [vmem:[%s3910_s6 + $0xf8] sm:$0xff]  ;;  %v2826_v7 = vadd.f32 %v2794_v58, %v7845_v49 }
 0x3e6   : > { %2852 = vst [vmem:[%s3910_s6 + $0xc0] sm:$0xff] %v2820_v52  ;;  %2853 = vst [vmem:[%s3910_s6 + $0xc8] sm:$0xff] %v2821_v54  ;;  %v2827_v16 = vadd.f32 %v2795_v25, %v7849_v14 }
 0x3e7   : > { %2854 = vst [vmem:[%s3910_s6 + $0xd0] sm:$0xff] %v2822_v40  ;;  %2855 = vst [vmem:[%s3910_s6 + $0xd8] sm:$0xff] %v2823_v47 }
 0x3e8   : > { %2856 = vst [vmem:[%s3910_s6 + $0xe0] sm:$0xff] %v2824_v18  ;;  %2857 = vst [vmem:[%s3910_s6 + $0xe8] sm:$0xff] %v2825_v10 }
 0x3e9   : > { %2858 = vst [vmem:[%s3910_s6 + $0xf0] sm:$0xff] %v2826_v7  ;;  %2859 = vst [vmem:[%s3910_s6 + $0xf8] sm:$0xff] %v2827_v16 }
 0x3ea PF: > { %s9408_s3 = sld [smem:[#allocation17_spill]]  ;;  %s2877_s13 = sshll.u32 %s3910_s6, 4  ;;  %s8021_s13 = int_to_ptr.vmem [resolvable:$true] %s2877_s13 }
 0x3eb   : > { %s9409_s2 = sld [smem:[#allocation109_spill]]  ;;  %s8030_s4 = scalar_lea.sflag [#allocation7], %s273_s12 }
 0x3ec   : > { %s3448_s8 = scalar_lea.vmem %s8021_s13, 4096 }
 0x3ed   : > { %p3449_p3 = scmp.ne.s32.totalorder %s8021_s13, %s3448_s8 }
 0x3ef   : > { %p3450_p5 = pnand %p3449_p3, %p3842_p2 }
 0x3f0   : > { %s3131_s0 = sshll.u32 %s9408_s3, 6 }
 0x3f1   : > { %s2874_s1 = sadd.s32 %s3131_s0, %s3898_s15  ;;  %p3451_p4 = pneg %p3450_p5 }
 0x3f2   : > { %s3108_s30 = sshll.u32 %s2874_s1, 7  ;;  %s3622_s15 = smov [#allocation10]  }
 0x3f3   : > { %s8026_s27 = scalar_lea.hbm %s9409_s2, %s3108_s30  ;;  %s3452_s6 = sshll.u32 %s3622_s15, 4  ;;  %s3453_s6 = int_to_ptr.vmem [resolvable:$false] %s3452_s6 }
 0x3f4   : > { %s3454_s16 = scalar_lea.vmem %s3453_s6, 8192  ;;  %p3455_p11 = scmp.lt.s32.totalorder %s8021_s13, %s3453_s6 }
 0x3f5   : > { %p3456_p1 = scmp.lt.s32.totalorder %s3454_s16, %s3448_s8 }
 0x3f7   : > { %p3457_p12 = por %p3456_p1, %p3455_p11 }
 0x3f9   : > { %p3458_p9 = pnand %p3457_p12, %p3451_p4 }
 0x3fb   : > { %3461 = shalt.err (!%p3458_p9)
}
 0x3fc   : > { %s3462_s12 = scalar_lea.hbm %s8026_s27, 4096  ;;  %s3466_s11 = scalar_lea.hbm %s9409_s2, 16384 }
 0x3fd   : > { %p3463_p6 = scmp.ne.s32.totalorder %s8026_s27, %s3462_s12  ;;  %p3467_p0 = scmp.lt.s32.totalorder %s8026_s27, %s9409_s2 }
 0x3fe   : > { %p3468_p10 = scmp.lt.s32.totalorder %s3466_s11, %s3462_s12 }
 0x3ff   : > { %p3464_p7 = pnand %p3463_p6, %p3842_p2 }
 0x400   : > { %p3469_p3 = por %p3468_p10, %p3467_p0 }
 0x401   : > { %p3465_p8 = pneg %p3464_p7 }
 0x403   : > { %p3470_p5 = pnand %p3469_p3, %p3465_p8 }
 0x405   : > { %3473 = shalt.err (!%p3470_p5)
}
 0x406   : > { %s3623_s1 = smov 256   ;;  %s3624_s30 = smov 512  }
 0x407   : > { %s3625_s10 = smov 16  }
 0x408   : > { %3168 = dma.vmem_to_hbm [thread:$0]  (%p3842_p2), %s8021_s13, 4096, %s8026_s27, %s8030_s4, %s3623_s1, %s3624_s30, %s3625_s10  }
 0x409 PF: > { %p3182_p4 = scmp.ge.s32.totalorder %s3612_s5, 2  ;;  %s2892_s29 = sand.u32 1, %s3552_s17  }
 0x40a   : > { %s2893_s8 = scalar_lea.sflag [#allocation7], %s2892_s29 }
 0x40b   : > { %p3178_p11 = pnand %p3182_p4, %p3857_p13 }
 0x40d   : > { %p3179_p1 = pneg %p3178_p11 }
 0x40f   : > { %3547 = dma.done.wait (%p3179_p1), %s2893_s8, 4096  }
 0x410   : > { %3549 = vsyncadd (%p3179_p1), %s2893_s8, 4294963200  ;;  %s24_s5 = sadd.s32 1, %s3612_s5   ;;  %s9411_s23 = sld [smem:[#allocation14_spill]] }
 0x411   : > { %p8058_p12 = scmp.ge.s32.totalorder %s24_s5, 10   ;;  %s9412_s7 = smov %s3852_s20 }
 0x412   : > { %s9413_s13 = sld [smem:[#allocation18_spill]]  ;;  %s9418_s17 = smov %s3556_s18 }
 0x413   : > { %s9414_s27 = sld [smem:[#allocation19_spill]]  ;;  %s9419_s18 = smov %s3560_s19 }
 0x414   : > { %s9415_s4 = sld [smem:[#allocation20_spill]]  ;;  %s9420_s19 = smov %s3855_s26 }
 0x415   : > { %s9416_s29 = sld [smem:[#allocation22_spill]]  ;;  %s9421_s20 = smov %s3568_s21 }
 0x416   : > { %s9417_s30 = sld [smem:[#allocation23_spill]]  ;;  %s9422_s21 = smov %s3572_s22 }
 0x417   : > { %s9423_s22 = smov %s3836_s25  ;;  %s9424_s0 = smov %s3584_s24 }
 0x418   : > { %s9425_s24 = smov %s9412_s7  ;;  %s9426_s25 = smov %s3600_s28 }
 0x419   : > { %s9427_s26 = smov %s9413_s13  ;;  %23 = sbr.rel (!%p8058_p12) target bundleno = 19 (0x13), region = 107 }
 0x41a   : > { %s9428_s28 = smov %s9415_s4 }
 0x41e   :  { %2898 = vsyncpa [#allocation6], 1 }
 0x41f   :  { %2900 = vsyncpa [#allocation6 + $0x1], 1 }
 0x420   :  { %2901 = vsyncpa [#allocation9], 1 }
 0x421   :  { %2903 = vsyncpa [#allocation9 + $0x1], 1 }
 0x422   :  { %2904 = vsyncpa [#allocation7], 1 }
 0x423   :  { %2906 = vsyncpa [#allocation7 + $0x1], 1 }

</bundles_post_ra>
